<compile_context>
chip_gen: v5e
topology: v5e:2x2
jax: 0.10.0
libtpu: 0.0.40
codegen_flags: <defaults>
</compile_context>

<pallas_src>
import functools

import jax
import jax.numpy as jnp
from jax.experimental import pallas as pl
from jax.experimental.pallas import tpu as pltpu


def _depth_attention_kernel(w_ref, b_ref, x_ref, o_ref, *, c_scale, k):
    # w_ref: (k,) conv taps in SMEM; b_ref: (1,) bias in SMEM
    # x_ref / o_ref block: (D, H, TW)  (leading batch dim squeezed by BlockSpec)
    d, h, tw = x_ref.shape

    # AdaptiveAvgPool2d((1, W)) == mean over H (H is never tiled -> true mean).
    # f32 accumulation directly from the ref; no f32 copy of the block stays live.
    pool = jnp.sum(x_ref[...], axis=1, dtype=jnp.float32) * jnp.float32(1.0 / h)  # (D, TW)

    # Conv2d(1, 1, (k, 1), padding=(k//2, 0)) along D == k shifted FMAs with
    # zero padding (cross-correlation). Operates only on the pooled (D, TW)
    # tile (H-times smaller than the block); MXU stays idle.
    pad = k // 2
    zpad = jnp.zeros((pad, tw), jnp.float32)
    padded = jnp.concatenate([zpad, pool, zpad], axis=0)            # (D + 2*pad, TW)
    y = jnp.full((d, tw), b_ref[0], dtype=jnp.float32)
    for i in range(k):                                              # static unroll over taps
        y = y + w_ref[i] * padded[i:i + d, :]

    # Softmax over D (dim=-2 of the PyTorch (N, 1, D, W) view), max-stabilized.
    y = y - jnp.max(y, axis=0, keepdims=True)
    e = jnp.exp(y)
    s = jnp.sum(e, axis=0, keepdims=True)
    r = pl.reciprocal(s, approx=True)                               # EUP slot
    r = r * (2.0 - s * r)                                           # one Newton step -> f32 accuracy
    soft = e * (r * jnp.float32(c_scale))                           # (D, TW): softmax * C folded once

    # out = soft * x, broadcast over H. Re-read x_ref (no spilled copy) and
    # multiply in the I/O dtype so the widest pass stays narrow for bf16.
    att = soft.astype(o_ref.dtype)
    o_ref[...] = (att[:, None, :] * x_ref[...]).astype(o_ref.dtype)


def _vmem_budget_bytes():
    """Generation-aware VMEM budget (~1/3 of physical, capped), safe fallback."""
    cap = 64 * 1024 * 1024
    try:
        info = pltpu.get_tpu_info()
        cap = int(getattr(info, "vmem_capacity_bytes", cap))
    except Exception:
        pass
    return max(12 * 1024 * 1024, min(cap // 3, 40 * 1024 * 1024))


def _pick_w_tile(N, D, H, W, itemsize, vmem_budget, target=2048, min_steps=4):
    """Pick a lane-dense W tile:
       * multiple of 128 (or the full W), within the VMEM budget,
       * never leaves a tail block narrower than 128 lanes,
       * keeps >= min_steps total grid steps when achievable (v7x: 2 TCs x >=2),
       * otherwise as large as possible (fewer ~0.35us grid steps)."""

    def fits(tw):
        io = 4 * D * H * tw * itemsize          # double-buffered in + out blocks
        work = (D * H + 8 * D) * tw * 4         # generous f32 in-body working set
        return io + work + (1 << 20) <= vmem_budget

    if W <= 128:
        return W                                # full-dim block is always legal

    lane_dense = [tw for tw in range(128, min(W, target) + 1, 128) if fits(tw)]
    # Only keep tiles whose tail block (if any) is still >= 128 lanes wide.
    clean = [tw for tw in lane_dense if W % tw == 0 or W % tw >= 128]
    if not clean:
        if fits(W):
            return W                            # single full-W block: no narrow step
        return lane_dense[-1] if lane_dense else 128
    balanced = [tw for tw in clean if N * pl.cdiv(W, tw) >= min_steps]
    return (balanced or clean)[-1]


def eeg_depth_attention(x, conv_w, conv_b, C, k=7):
    """x: (N, D, H, W); conv_w: (1, 1, k, 1); conv_b: (1,); C: scalar from __init__."""
    N, D, H, W = x.shape
    w = conv_w.reshape(k).astype(jnp.float32)
    b = conv_b.reshape(1).astype(jnp.float32)

    budget = _vmem_budget_bytes()
    TW = _pick_w_tile(N, D, H, W, jnp.dtype(x.dtype).itemsize, budget)
    grid = (N, pl.cdiv(W, TW))

    kernel = functools.partial(_depth_attention_kernel, c_scale=float(C), k=int(k))
    return pl.pallas_call(
        kernel,
        out_shape=jax.ShapeDtypeStruct((N, D, H, W), x.dtype),
        grid=grid,
        in_specs=[
            pl.BlockSpec(memory_space=pltpu.MemorySpace.SMEM),            # conv taps (k,)
            pl.BlockSpec(memory_space=pltpu.MemorySpace.SMEM),            # bias (1,)
            pl.BlockSpec((None, D, H, TW), lambda n, wi: (n, 0, 0, wi)),  # x tile
        ],
        out_specs=pl.BlockSpec((None, D, H, TW), lambda n, wi: (n, 0, 0, wi)),
        compiler_params=pltpu.CompilerParams(
            dimension_semantics=("parallel", "parallel"),
            vmem_limit_bytes=int(budget)),
    )(w, b, x)


def reference(x, conv_w, conv_b, C, k=7):
    """Pure-JAX reference mirroring the PyTorch forward."""
    pool = jnp.mean(x, axis=2, keepdims=True)                 # AdaptiveAvgPool2d((1, W))
    xt = jnp.transpose(pool, (0, 2, 1, 3))                    # transpose(-2, -3)
    y = jax.lax.conv_general_dilated(
        xt, conv_w, window_strides=(1, 1),
        padding=((k // 2, k // 2), (0, 0)),
        dimension_numbers=("NCHW", "OIHW", "NCHW"))
    y = y + conv_b.reshape(1, 1, 1, 1)
    y = jax.nn.softmax(y, axis=-2)                            # Softmax(dim=-2)
    y = jnp.transpose(y, (0, 2, 1, 3))                        # transpose(-2, -3)
    return y * C * x


def _run_case(key, N, D, H, W, k, dtype, atol, rtol):
    kx, kw, kb = jax.random.split(key, 3)
    C = D  # the scalar passed to EEGDepthAttention.__init__ (depth-channel count in LMDA)
    x = jax.random.normal(kx, (N, D, H, W), dtype=jnp.float32).astype(dtype)
    conv_w = 0.3 * jax.random.normal(kw, (1, 1, k, 1), dtype=jnp.float32)  # Conv2d(1,1,(k,1)) weight
    conv_b = 0.1 * jax.random.normal(kb, (1,), dtype=jnp.float32)          # Conv2d bias

    out = jax.block_until_ready(eeg_depth_attention(x, conv_w, conv_b, C, k=k))
    ref = reference(x.astype(jnp.float32), conv_w, conv_b, C, k=k)
    max_err = float(jnp.max(jnp.abs(out.astype(jnp.float32) - ref)))
    assert jnp.allclose(out.astype(jnp.float32), ref, atol=atol, rtol=rtol), (
        f"max abs err = {max_err} for shape {(N, D, H, W)} dtype {dtype}")


if __name__ == "__main__":
    keys = jax.random.split(jax.random.PRNGKey(0), 4)

    # Main config: 512-lane tiles, grid=(2, 2), both axes parallel (>=2 steps per TC).
    _run_case(keys[0], N=2, D=9, H=22, W=1024, k=7, dtype=jnp.float32, atol=1e-4, rtol=1e-4)
    # Small W (< 128): full-W tile fallback (block last dim == full array dim).
    _run_case(keys[1], N=2, D=8, H=16, W=80, k=7, dtype=jnp.float32, atol=1e-4, rtol=1e-4)
    # W not a multiple of 128-tiles: picker avoids a sub-128-lane tail step (TW=384).
    _run_case(keys[2], N=1, D=24, H=22, W=576, k=7, dtype=jnp.float32, atol=1e-4, rtol=1e-4)
    # bf16 HBM I/O: f32 pool/conv/softmax, bf16 final broadcast multiply.
    _run_case(keys[3], N=2, D=9, H=22, W=1024, k=7, dtype=jnp.bfloat16, atol=2e-2, rtol=2e-2)

    print("KERNEL_OK")
</pallas_src>

<mosaic_0001>
module attributes {stable_mosaic.version = 11 : i64} {
  func.func @_depth_attention_kernel(%arg0: i32, %arg1: i32, %arg2: memref<7xf32, #tpu.memory_space<smem>>, %arg3: memref<1xf32, #tpu.memory_space<smem>>, %arg4: memref<1x9x22x896xf32, #tpu.memory_space<vmem>>, %arg5: memref<1x9x22x896xf32, #tpu.memory_space<vmem>>) attributes {dimension_semantics = [#tpu.dimension_semantics<parallel>, #tpu.dimension_semantics<parallel>], iteration_bounds = array<i64: 2, 2>, scalar_prefetch = 0 : i64, scratch_operands = 0 : i64, tpu.core_type = #tpu.core_type<tc>, window_params = [{transform_indices = @transform_0, window_bounds = array<i64: 7>}, {transform_indices = @transform_1, window_bounds = array<i64: 1>}, {transform_indices = @transform_2, window_bounds = array<i64: 1, 9, 22, 896>}, {transform_indices = @transform_3, window_bounds = array<i64: 1, 9, 22, 896>}]} {
    %c0 = arith.constant 0 : index
    %c0_0 = arith.constant 0 : index
    %c0_1 = arith.constant 0 : index
    %c0_2 = arith.constant 0 : index
    %0 = vector.load %arg4[%c0, %c0_0, %c0_1, %c0_2] : memref<1x9x22x896xf32, #tpu.memory_space<vmem>>, vector<1x9x22x896xf32>
    %1 = vector.shape_cast %0 : vector<1x9x22x896xf32> to vector<9x22x896xf32>
    %cst = arith.constant dense<0.000000e+00> : vector<9x896xf32>
    %2 = vector.multi_reduction <add>, %1, %cst [1] : vector<9x22x896xf32> to vector<9x896xf32>
    %cst_3 = arith.constant 0.0454545468 : f32
    %3 = vector.broadcast %cst_3 : f32 to vector<9x896xf32>
    %4 = arith.mulf %2, %3 : vector<9x896xf32>
    %cst_4 = arith.constant 0.000000e+00 : f32
    %5 = vector.broadcast %cst_4 : f32 to vector<3x896xf32>
    %6 = tpu.concatenate %5, %4, %5 in 0 : vector<3x896xf32>, vector<9x896xf32>, vector<3x896xf32> -> vector<15x896xf32>
    %c0_5 = arith.constant 0 : index
    %7 = memref.load %arg3[%c0_5] : memref<1xf32, #tpu.memory_space<smem>>
    %8 = vector.broadcast %7 : f32 to vector<9x896xf32>
    %c0_6 = arith.constant 0 : index
    %9 = memref.load %arg2[%c0_6] : memref<7xf32, #tpu.memory_space<smem>>
    %10 = vector.extract_strided_slice %6 {offsets = [0, 0], sizes = [9, 896], strides = [1, 1]} : vector<15x896xf32> to vector<9x896xf32>
    %11 = vector.broadcast %9 : f32 to vector<9x896xf32>
    %12 = arith.mulf %11, %10 : vector<9x896xf32>
    %13 = arith.addf %8, %12 : vector<9x896xf32>
    %c1 = arith.constant 1 : index
    %14 = memref.load %arg2[%c1] : memref<7xf32, #tpu.memory_space<smem>>
    %15 = vector.extract_strided_slice %6 {offsets = [1, 0], sizes = [9, 896], strides = [1, 1]} : vector<15x896xf32> to vector<9x896xf32>
    %16 = vector.broadcast %14 : f32 to vector<9x896xf32>
    %17 = arith.mulf %16, %15 : vector<9x896xf32>
    %18 = arith.addf %13, %17 : vector<9x896xf32>
    %c2 = arith.constant 2 : index
    %19 = memref.load %arg2[%c2] : memref<7xf32, #tpu.memory_space<smem>>
    %20 = vector.extract_strided_slice %6 {offsets = [2, 0], sizes = [9, 896], strides = [1, 1]} : vector<15x896xf32> to vector<9x896xf32>
    %21 = vector.broadcast %19 : f32 to vector<9x896xf32>
    %22 = arith.mulf %21, %20 : vector<9x896xf32>
    %23 = arith.addf %18, %22 : vector<9x896xf32>
    %c3 = arith.constant 3 : index
    %24 = memref.load %arg2[%c3] : memref<7xf32, #tpu.memory_space<smem>>
    %25 = vector.extract_strided_slice %6 {offsets = [3, 0], sizes = [9, 896], strides = [1, 1]} : vector<15x896xf32> to vector<9x896xf32>
    %26 = vector.broadcast %24 : f32 to vector<9x896xf32>
    %27 = arith.mulf %26, %25 : vector<9x896xf32>
    %28 = arith.addf %23, %27 : vector<9x896xf32>
    %c4 = arith.constant 4 : index
    %29 = memref.load %arg2[%c4] : memref<7xf32, #tpu.memory_space<smem>>
    %30 = vector.extract_strided_slice %6 {offsets = [4, 0], sizes = [9, 896], strides = [1, 1]} : vector<15x896xf32> to vector<9x896xf32>
    %31 = vector.broadcast %29 : f32 to vector<9x896xf32>
    %32 = arith.mulf %31, %30 : vector<9x896xf32>
    %33 = arith.addf %28, %32 : vector<9x896xf32>
    %c5 = arith.constant 5 : index
    %34 = memref.load %arg2[%c5] : memref<7xf32, #tpu.memory_space<smem>>
    %35 = vector.extract_strided_slice %6 {offsets = [5, 0], sizes = [9, 896], strides = [1, 1]} : vector<15x896xf32> to vector<9x896xf32>
    %36 = vector.broadcast %34 : f32 to vector<9x896xf32>
    %37 = arith.mulf %36, %35 : vector<9x896xf32>
    %38 = arith.addf %33, %37 : vector<9x896xf32>
    %c6 = arith.constant 6 : index
    %39 = memref.load %arg2[%c6] : memref<7xf32, #tpu.memory_space<smem>>
    %40 = vector.extract_strided_slice %6 {offsets = [6, 0], sizes = [9, 896], strides = [1, 1]} : vector<15x896xf32> to vector<9x896xf32>
    %41 = vector.broadcast %39 : f32 to vector<9x896xf32>
    %42 = arith.mulf %41, %40 : vector<9x896xf32>
    %43 = arith.addf %38, %42 : vector<9x896xf32>
    %cst_7 = arith.constant dense<0xFF800000> : vector<896xf32>
    %44 = vector.multi_reduction <maximumf>, %43, %cst_7 [0] : vector<9x896xf32> to vector<896xf32>
    %45 = vector.shape_cast %44 : vector<896xf32> to vector<1x896xf32>
    %46 = vector.broadcast %45 : vector<1x896xf32> to vector<9x896xf32>
    %47 = arith.subf %43, %46 : vector<9x896xf32>
    %48 = math.exp %47 : vector<9x896xf32>
    %cst_8 = arith.constant dense<0.000000e+00> : vector<896xf32>
    %49 = vector.multi_reduction <add>, %48, %cst_8 [0] : vector<9x896xf32> to vector<896xf32>
    %50 = vector.shape_cast %49 : vector<896xf32> to vector<1x896xf32>
    %51 = tpu.reciprocal %50 {approx = true} : vector<1x896xf32> -> vector<1x896xf32>
    %52 = arith.mulf %50, %51 : vector<1x896xf32>
    %cst_9 = arith.constant 2.000000e+00 : f32
    %53 = vector.broadcast %cst_9 : f32 to vector<1x896xf32>
    %54 = arith.subf %53, %52 : vector<1x896xf32>
    %55 = arith.mulf %51, %54 : vector<1x896xf32>
    %cst_10 = arith.constant 9.000000e+00 : f32
    %56 = vector.broadcast %cst_10 : f32 to vector<1x896xf32>
    %57 = arith.mulf %55, %56 : vector<1x896xf32>
    %58 = vector.broadcast %57 : vector<1x896xf32> to vector<9x896xf32>
    %59 = arith.mulf %48, %58 : vector<9x896xf32>
    %60 = vector.shape_cast %59 : vector<9x896xf32> to vector<9x1x896xf32>
    %c0_11 = arith.constant 0 : index
    %c0_12 = arith.constant 0 : index
    %c0_13 = arith.constant 0 : index
    %c0_14 = arith.constant 0 : index
    %61 = vector.load %arg4[%c0_11, %c0_12, %c0_13, %c0_14] : memref<1x9x22x896xf32, #tpu.memory_space<vmem>>, vector<1x9x22x896xf32>
    %62 = vector.shape_cast %61 : vector<1x9x22x896xf32> to vector<9x22x896xf32>
    %63 = vector.broadcast %60 : vector<9x1x896xf32> to vector<9x22x896xf32>
    %64 = arith.mulf %63, %62 : vector<9x22x896xf32>
    %c0_15 = arith.constant 0 : index
    %c0_16 = arith.constant 0 : index
    %c0_17 = arith.constant 0 : index
    %c0_18 = arith.constant 0 : index
    %65 = vector.load %arg5[%c0_15, %c0_16, %c0_17, %c0_18] : memref<1x9x22x896xf32, #tpu.memory_space<vmem>>, vector<1x9x22x896xf32>
    %66 = vector.shape_cast %65 : vector<1x9x22x896xf32> to vector<9x22x896xf32>
    %67 = vector.shape_cast %64 : vector<9x22x896xf32> to vector<1x9x22x896xf32>
    tpu.vector_store %arg5[%c0_15, %c0_16, %c0_17, %c0_18], %67 {strides = array<i32>} : memref<1x9x22x896xf32, #tpu.memory_space<vmem>>, vector<1x9x22x896xf32>,
    return
  }
  func.func @transform_0(%arg0: i32, %arg1: i32) -> i32 {
    %c0_i32 = arith.constant 0 : i32
    %c0_i32_0 = arith.constant 0 : i32
    return %c0_i32 : i32
  }
  func.func @transform_1(%arg0: i32, %arg1: i32) -> i32 {
    %c0_i32 = arith.constant 0 : i32
    %c0_i32_0 = arith.constant 0 : i32
    return %c0_i32 : i32
  }
  func.func @transform_2(%arg0: i32, %arg1: i32) -> (i32, i32, i32, i32) {
    %c0_i32 = arith.constant 0 : i32
    %c0_i32_0 = arith.constant 0 : i32
    %c0_i32_1 = arith.constant 0 : i32
    return %arg0, %c0_i32, %c0_i32_0, %arg1 : i32, i32, i32, i32
  }
  func.func @transform_3(%arg0: i32, %arg1: i32) -> (i32, i32, i32, i32) {
    %c0_i32 = arith.constant 0 : i32
    %c0_i32_0 = arith.constant 0 : i32
    %c0_i32_1 = arith.constant 0 : i32
    return %arg0, %c0_i32, %c0_i32_0, %arg1 : i32, i32, i32, i32
  }
}

</mosaic_0001>

<bundles_post_ra>
// kernel: tpu_custom_call.1
= control target key start
LH: loop header
LB: loop body
LE: loop exit
PB: predicated region body
PF: predicated region fallthrough
CT: control target
= control target key end

     0   :  { %s8380_s0 = inlined_call_operand.vmem [shape: f32[7], index: 0, kind: input, shape index: {}]   ;;  %s8381_s1 = inlined_call_operand.<no memory space> [shape: f32[1], index: 1, kind: input, shape index: {}]   ;;  %s8382_s2 = inlined_call_operand.vmem [shape: f32[2,9,22,1024], index: 2, kind: input, shape index: {}]   ;;  %s8383_s3 = inlined_call_operand.vmem [shape: f32[2,9,22,1024], index: 3, kind: output, shape index: {}]  }
   0x1   :  { %8390 = sst [smem:[#allocation36_spill]] %s8380_s0 }
   0x2   :  { %8391 = sst [smem:[#allocation37_spill]] %s8382_s2 }
   0x3   :  { %8 = sst [smem:[#allocation2]] %s8381_s1 }
   0x4   :  { %9 = vsyncpa [#allocation4], 0  ;;  %s4887_s14 = smov 0   ;;  %s4889_s15 = smov 0  }
   0x5   :  { %s4891_s16 = smov 0   ;;  %s4893_s17 = smov 0  }
   0x6   :  { %s4895_s18 = smov 0   ;;  %s4897_s19 = smov 0  }
   0x7   :  { %s4899_s20 = smov 0  }
   0x8 LB: > { %s3891_s1 = sadd.s32 4294967295, %s4729_s20   ;;  %s24_s21 = sadd.s32 1, %s4721_s18  ;;  %s4729_s20 = sphi %s4899_s20, %s15_s20   ;;  %s4725_s19 = sphi %s4897_s19, %s8516_s19   ;;  %s4721_s18 = sphi %s4895_s18, %s8515_s18   ;;  %s4717_s17 = sphi %s4893_s17, %s8514_s17   ;;  %s4713_s16 = sphi %s4891_s16, %s8513_s16   ;;  %s4709_s15 = sphi %s4889_s15, %s8512_s15   ;;  %s4705_s14 = sphi %s4887_s14, %s8511_s14  }
   0x9   : > { %p25_p0 = scmp.ge.s32.totalorder %s24_s21, 2  ;;  %s27_s22 = sadd.s32 1, %s4725_s19 }
   0xa   : > { %s78_s23 = sadd.s32 1, %s4709_s15  ;;  %p85_p1 = scmp.ne.s32.totalorder %s4709_s15, %s4705_s14 }
   0xb   : > { %s8518_s21 = smov (%p25_p0, %s24_s21), 0  ;;  %s8520_s22 = smov (!%p25_p0, %s27_s22), %s4725_s19 }
   0xc   : > { %8392 = sst [smem:[#allocation8_spill]] %s8518_s21  ;;  %s74_s24 = ssub.s32 %s4721_s18, %s8518_s21 }
   0xd   : > { %p86_p2 = scmp.eq.s32.totalorder %s4729_s20, 0  ;;  %p29_p3 = scmp.ge.s32.totalorder %s8520_s22, 2 }
   0xe   : > { %p117_p4 = scmp.eq.s32.totalorder %s3891_s1, 3  ;;  %p3893_p6 = scmp.ge.s32.totalorder %s4729_s20, 1 }
   0xf   : > { %p4934_p5 = por %p86_p2, %p85_p1  ;;  %s8522_s22 = smov (%p29_p3, %s8520_s22), 0 }
  0x10   : > { %8394 = sst [smem:[#allocation9_spill]] %s8522_s22  ;;  %p4941_p7 = por %p117_p4, %p85_p1 }
  0x11   : > { %p130_p8 = scmp.lt.s32.totalorder %s4729_s20, 5  ;;  %s73_s27 = ssub.s32 %s4725_s19, %s8522_s22 }
  0x12   : > { %s75_s28 = sor.u32 %s74_s24, %s73_s27  ;;  %p4952_p11 = scmp.eq.s32.totalorder %s3891_s1, 0 }
  0x13   : > { %p4948_p9 = pnand %p3893_p6, %p130_p8  ;;  %p76_p10 = scmp.eq.s32.totalorder %s75_s28, 0 }
  0x14   : > { %s8398_s0 = sld [smem:[#allocation36_spill]]  ;;  %s4859_s8 = smov [#allocation3]  }
  0x15   : > { %p3974_p12 = pneg %p4948_p9  ;;  %p3895_p0 = scmp.ge.s32.totalorder %s4729_s20, 4 }
  0x16   : > { %s4962_s7 = scalar_select %p76_p10, %s4709_s15, %s78_s23  }
  0x17   : > { %p3975_p13 = pnand %p4952_p11, %p3974_p12  ;;  %152 = sbr.rel (%p3895_p0) target bundleno = 319 (0x13f), region = 24 }
  0x1a   : > { %s142_s6 = sshll.u32 %s8398_s0, 4  ;;  %s143_s6 = int_to_ptr.vmem [resolvable:$true] %s142_s6 }
  0x1b   : > { %3977 = dma.vmem_to_smem (!%p3975_p13), %s143_s6, 16, %s4859_s8, [#allocation4]  }
  0x1c   : > { %155 = sbr.rel (!%p4934_p5) target bundleno = 319 (0x13f), region = 28  ;;  %s157_s9 = sand.u32 (%p4934_p5), 1, %s4709_s15  }
  0x1d   : > { %s160_s10 = smul.u32 (%p4934_p5), 7, %s4721_s18  ;;  %s8399_s2 = sld [smem:[#allocation37_spill]] (%p4934_p5) }
  0x1e   : > { %s3966_s11 = smul.u32 (%p4934_p5), 1512, %s157_s9 }
  0x1f   : > { %s161_s12 = ssub.s32 (%p4934_p5), 8, %s160_s10  ;;  %s3967_s13 = smul.u32 (%p4934_p5), 216, %s4725_s19 }
  0x20   : > { %p162_p1 = scmp.lt.s32.totalorder (%p4934_p5), %s161_s12, 7  ;;  %s4979_s5 = scalar_lea.vmem (%p4934_p5), [#allocation5], %s3966_s11  }
  0x21   : > { %s167_s1 = sadd.s32 %s3967_s13, %s160_s10 }
  0x22   : > { %s8524_s12 = smov (!%p162_p1, %s161_s12), 7  ;;  %s3897_s23 = sshll.u32 %s167_s1, 3 }
  0x23   : > { %s164_s24 = smul.u32 216, %s8524_s12  ;;  %s4975_s4 = scalar_lea.vmem %s8399_s2, %s3897_s23  }
  0x24   : > { %s4977_s25 = sshll.u32 %s8524_s12, 3 }
  0x25   : > { %p3899_p2 = scmp.eq.s32.totalorder %s164_s24, 0 }
  0x26   : > { %p174_p3 = scmp.lt.u32.totalorder (!%p3899_p2), %s4977_s25, 8 }
  0x27   : > { %173 = sbr.rel (%p3899_p2) target bundleno = 319 (0x13f), region = 32 }
  0x2c   : > { %177 = sbr.rel (%p174_p3) target bundleno = 284 (0x11c), region = 36  ;;  %s4983_s6 = sand.u32 (!%p174_p3), 7, %s4977_s25  }
  0x2d   : > { %p246_p4 = scmp.eq.s32.totalorder (!%p174_p3), %s4983_s6, 0  ;;  %p3900_p5 = scmp.ne.s32.totalorder (!%p174_p3), %s4983_s6, 0 }
  0x31   : > { %249 = sbr.rel (%p3900_p5) target bundleno = 151 (0x97), region = 51  ;;  %s250_s8 = sshrl.u32 (!%p3900_p5), %s4977_s25, 3 }
  0x32   : > { %s4990_s9 = sshrl.u32 (!%p3900_p5), %s250_s8, 1 }
  0x33   : > { %p3901_p6 = scmp.le.s32.totalorder (!%p3900_p5), %s4990_s9, 0 }
  0x36   : > { %3743 = sbr.rel (%p3901_p6) target bundleno = 114 (0x72), region = 234  ;;  %s8400_s10 = smov (!%p3901_p6), %s4979_s5 }
  0x37   : > { %s8401_s11 = smov (!%p3901_p6), %s4975_s4  ;;  %s4999_s12 = smov (!%p3901_p6), 0  }
  0x38   : > { %s5001_s13 = smov (!%p3901_p6), 0  }
  0x3b LB: >> { %v261_v0 = vld [vmem:[%s4737_s11] sm:$0xff]  ;;  %v263_v1 = vld [vmem:[%s4737_s11 + $0x8] sm:$0xff]  ;;  %s369_s1 = sadd.s32 1, %s4741_s12  ;;  %s255_s13 = sadd.s32 1, %s4745_s13   ;;  %s4745_s13 = sphi %s5001_s13, %s255_s13   ;;  %s4741_s12 = sphi %s4999_s12, %s8404_s12   ;;  %s4737_s11 = sphi %s8401_s11, %s8403_s11   ;;  %s4733_s10 = sphi %s8400_s10, %s8402_s10  }
  0x3c   : >> { %v265_v2 = vld [vmem:[%s4737_s11 + $0x40] sm:$0xff]  ;;  %262 = vst [vmem:[%s4733_s10] sm:$0xff] %v261_v0  ;;  %v267_v3 = vld [vmem:[%s4737_s11 + $0x48] sm:$0xff]  ;;  %p370_p8 = scmp.ge.s32.totalorder %s369_s1, %s4990_s9  ;;  %p254_p10 = scmp.ge.s32.totalorder %s255_s13, %s4990_s9 }
  0x3d   : >> { %264 = vst [vmem:[%s4733_s10 + $0x8] sm:$0xff] %v263_v1  ;;  %v269_v4 = vld [vmem:[%s4737_s11 + $0x80] sm:$0xff]  ;;  %v271_v5 = vld [vmem:[%s4737_s11 + $0x88] sm:$0xff] }
  0x3e   : >> { %266 = vst [vmem:[%s4733_s10 + $0x38] sm:$0xff] %v265_v2  ;;  %s8526_s1 = smov (%p370_p8, %s369_s1), 0  ;;  %v273_v6 = vld [vmem:[%s4737_s11 + $0xc0] sm:$0xff]  ;;  %v275_v7 = vld [vmem:[%s4737_s11 + $0xc8] sm:$0xff] }
  0x3f   : >> { %268 = vst [vmem:[%s4733_s10 + $0x40] sm:$0xff] %v267_v3  ;;  %s3902_s23 = sshll.u32 %s8526_s1, 4  ;;  %v277_v8 = vld [vmem:[%s4737_s11 + $0x100] sm:$0xff]  ;;  %v279_v9 = vld [vmem:[%s4737_s11 + $0x108] sm:$0xff]  ;;  %s8404_s12 = smov %s8526_s1 }
  0x40   : >> { %270 = vst [vmem:[%s4733_s10 + $0x70] sm:$0xff] %v269_v4  ;;  %s5033_s24 = scalar_lea.vmem %s4975_s4, %s3902_s23   ;;  %s5036_s27 = scalar_lea.vmem %s4979_s5, %s3902_s23 [#allocation5]   ;;  %v281_v10 = vld [vmem:[%s4737_s11 + $0x140] sm:$0xff]  ;;  %v283_v11 = vld [vmem:[%s4737_s11 + $0x148] sm:$0xff] }
  0x41   : >> { %272 = vst [vmem:[%s4733_s10 + $0x78] sm:$0xff] %v271_v5  ;;  %v285_v12 = vld [vmem:[%s4737_s11 + $0x180] sm:$0xff]  ;;  %v287_v13 = vld [vmem:[%s4737_s11 + $0x188] sm:$0xff] }
  0x42   : >> { %274 = vst [vmem:[%s4733_s10 + $0xa8] sm:$0xff] %v273_v6  ;;  %v289_v14 = vld [vmem:[%s4737_s11 + $0x1c0] sm:$0xff]  ;;  %v291_v15 = vld [vmem:[%s4737_s11 + $0x1c8] sm:$0xff] }
  0x43   : >> { %276 = vst [vmem:[%s4733_s10 + $0xb0] sm:$0xff] %v275_v7  ;;  %v293_v16 = vld [vmem:[%s4737_s11 + $0x200] sm:$0xff]  ;;  %v295_v17 = vld [vmem:[%s4737_s11 + $0x208] sm:$0xff] }
  0x44   : >> { %278 = vst [vmem:[%s4733_s10 + $0xe0] sm:$0xff] %v277_v8  ;;  %v297_v18 = vld [vmem:[%s4737_s11 + $0x240] sm:$0xff]  ;;  %v299_v19 = vld [vmem:[%s4737_s11 + $0x248] sm:$0xff] }
  0x45   : >> { %280 = vst [vmem:[%s4733_s10 + $0xe8] sm:$0xff] %v279_v9  ;;  %v301_v20 = vld [vmem:[%s4737_s11 + $0x280] sm:$0xff]  ;;  %v303_v21 = vld [vmem:[%s4737_s11 + $0x288] sm:$0xff] }
  0x46   : >> { %282 = vst [vmem:[%s4733_s10 + $0x118] sm:$0xff] %v281_v10  ;;  %v305_v22 = vld [vmem:[%s4737_s11 + $0x2c0] sm:$0xff]  ;;  %v307_v23 = vld [vmem:[%s4737_s11 + $0x2c8] sm:$0xff] }
  0x47   : >> { %284 = vst [vmem:[%s4733_s10 + $0x120] sm:$0xff] %v283_v11  ;;  %v309_v24 = vld [vmem:[%s4737_s11 + $0x300] sm:$0xff]  ;;  %v311_v25 = vld [vmem:[%s4737_s11 + $0x308] sm:$0xff] }
  0x48   : >> { %286 = vst [vmem:[%s4733_s10 + $0x150] sm:$0xff] %v285_v12  ;;  %v313_v26 = vld [vmem:[%s4737_s11 + $0x340] sm:$0xff]  ;;  %v315_v27 = vld [vmem:[%s4737_s11 + $0x348] sm:$0xff] }
  0x49   : >> { %288 = vst [vmem:[%s4733_s10 + $0x158] sm:$0xff] %v287_v13  ;;  %v317_v28 = vld [vmem:[%s4737_s11 + $0x380] sm:$0xff]  ;;  %v319_v29 = vld [vmem:[%s4737_s11 + $0x388] sm:$0xff] }
  0x4a   : >> { %290 = vst [vmem:[%s4733_s10 + $0x188] sm:$0xff] %v289_v14  ;;  %v321_v30 = vld [vmem:[%s4737_s11 + $0x3c0] sm:$0xff]  ;;  %v323_v31 = vld [vmem:[%s4737_s11 + $0x3c8] sm:$0xff] }
  0x4b   : >> { %292 = vst [vmem:[%s4733_s10 + $0x190] sm:$0xff] %v291_v15  ;;  %v325_v32 = vld [vmem:[%s4737_s11 + $0x400] sm:$0xff]  ;;  %v327_v33 = vld [vmem:[%s4737_s11 + $0x408] sm:$0xff] }
  0x4c   : >> { %294 = vst [vmem:[%s4733_s10 + $0x1c0] sm:$0xff] %v293_v16  ;;  %v329_v34 = vld [vmem:[%s4737_s11 + $0x440] sm:$0xff]  ;;  %v331_v35 = vld [vmem:[%s4737_s11 + $0x448] sm:$0xff] }
  0x4d   : >> { %296 = vst [vmem:[%s4733_s10 + $0x1c8] sm:$0xff] %v295_v17  ;;  %v333_v36 = vld [vmem:[%s4737_s11 + $0x480] sm:$0xff]  ;;  %v335_v37 = vld [vmem:[%s4737_s11 + $0x488] sm:$0xff] }
  0x4e   : >> { %298 = vst [vmem:[%s4733_s10 + $0x1f8] sm:$0xff] %v297_v18  ;;  %v337_v38 = vld [vmem:[%s4737_s11 + $0x4c0] sm:$0xff]  ;;  %v339_v39 = vld [vmem:[%s4737_s11 + $0x4c8] sm:$0xff] }
  0x4f   : >> { %300 = vst [vmem:[%s4733_s10 + $0x200] sm:$0xff] %v299_v19  ;;  %v341_v40 = vld [vmem:[%s4737_s11 + $0x500] sm:$0xff]  ;;  %v343_v41 = vld [vmem:[%s4737_s11 + $0x508] sm:$0xff] }
  0x50   : >> { %302 = vst [vmem:[%s4733_s10 + $0x230] sm:$0xff] %v301_v20  ;;  %v345_v42 = vld [vmem:[%s4737_s11 + $0x540] sm:$0xff]  ;;  %v347_v43 = vld [vmem:[%s4737_s11 + $0x548] sm:$0xff] }
  0x51   : >> { %304 = vst [vmem:[%s4733_s10 + $0x238] sm:$0xff] %v303_v21  ;;  %v349_v44 = vld [vmem:[%s4737_s11 + $0x580] sm:$0xff]  ;;  %v351_v45 = vld [vmem:[%s4737_s11 + $0x588] sm:$0xff] }
  0x52   : >> { %306 = vst [vmem:[%s4733_s10 + $0x268] sm:$0xff] %v305_v22  ;;  %v353_v46 = vld [vmem:[%s4737_s11 + $0x5c0] sm:$0xff]  ;;  %v355_v47 = vld [vmem:[%s4737_s11 + $0x5c8] sm:$0xff] }
  0x53   : >> { %308 = vst [vmem:[%s4733_s10 + $0x270] sm:$0xff] %v307_v23  ;;  %v357_v48 = vld [vmem:[%s4737_s11 + $0x600] sm:$0xff]  ;;  %v359_v49 = vld [vmem:[%s4737_s11 + $0x608] sm:$0xff] }
  0x54   : >> { %310 = vst [vmem:[%s4733_s10 + $0x2a0] sm:$0xff] %v309_v24  ;;  %v361_v50 = vld [vmem:[%s4737_s11 + $0x640] sm:$0xff]  ;;  %v363_v51 = vld [vmem:[%s4737_s11 + $0x648] sm:$0xff] }
  0x55   : >> { %312 = vst [vmem:[%s4733_s10 + $0x2a8] sm:$0xff] %v311_v25  ;;  %v365_v52 = vld [vmem:[%s4737_s11 + $0x680] sm:$0xff]  ;;  %v367_v53 = vld [vmem:[%s4737_s11 + $0x688] sm:$0xff]  ;;  %s8403_s11 = smov %s5033_s24 }
  0x56   : >> { %314 = vst [vmem:[%s4733_s10 + $0x2d8] sm:$0xff] %v313_v26 }
  0x57   : >> { %316 = vst [vmem:[%s4733_s10 + $0x2e0] sm:$0xff] %v315_v27 }
  0x58   : >> { %318 = vst [vmem:[%s4733_s10 + $0x310] sm:$0xff] %v317_v28 }
  0x59   : >> { %320 = vst [vmem:[%s4733_s10 + $0x318] sm:$0xff] %v319_v29 }
  0x5a   : >> { %322 = vst [vmem:[%s4733_s10 + $0x348] sm:$0xff] %v321_v30 }
  0x5b   : >> { %324 = vst [vmem:[%s4733_s10 + $0x350] sm:$0xff] %v323_v31 }
  0x5c   : >> { %326 = vst [vmem:[%s4733_s10 + $0x380] sm:$0xff] %v325_v32 }
  0x5d   : >> { %328 = vst [vmem:[%s4733_s10 + $0x388] sm:$0xff] %v327_v33 }
  0x5e   : >> { %330 = vst [vmem:[%s4733_s10 + $0x3b8] sm:$0xff] %v329_v34 }
  0x5f   : >> { %332 = vst [vmem:[%s4733_s10 + $0x3c0] sm:$0xff] %v331_v35 }
  0x60   : >> { %334 = vst [vmem:[%s4733_s10 + $0x3f0] sm:$0xff] %v333_v36 }
  0x61   : >> { %336 = vst [vmem:[%s4733_s10 + $0x3f8] sm:$0xff] %v335_v37 }
  0x62   : >> { %338 = vst [vmem:[%s4733_s10 + $0x428] sm:$0xff] %v337_v38 }
  0x63   : >> { %340 = vst [vmem:[%s4733_s10 + $0x430] sm:$0xff] %v339_v39 }
  0x64   : >> { %342 = vst [vmem:[%s4733_s10 + $0x460] sm:$0xff] %v341_v40 }
  0x65   : >> { %344 = vst [vmem:[%s4733_s10 + $0x468] sm:$0xff] %v343_v41 }
  0x66   : >> { %346 = vst [vmem:[%s4733_s10 + $0x498] sm:$0xff] %v345_v42 }
  0x67   : >> { %348 = vst [vmem:[%s4733_s10 + $0x4a0] sm:$0xff] %v347_v43 }
  0x68   : >> { %350 = vst [vmem:[%s4733_s10 + $0x4d0] sm:$0xff] %v349_v44 }
  0x69   : >> { %352 = vst [vmem:[%s4733_s10 + $0x4d8] sm:$0xff] %v351_v45 }
  0x6a   : >> { %354 = vst [vmem:[%s4733_s10 + $0x508] sm:$0xff] %v353_v46 }
  0x6b   : >> { %356 = vst [vmem:[%s4733_s10 + $0x510] sm:$0xff] %v355_v47 }
  0x6c   : >> { %358 = vst [vmem:[%s4733_s10 + $0x540] sm:$0xff] %v357_v48 }
  0x6d   : >> { %360 = vst [vmem:[%s4733_s10 + $0x548] sm:$0xff] %v359_v49  ;;  %257 = sbr.rel (!%p254_p10) target bundleno = 59 (0x3b), region = 240 }
  0x6e   : >> { %362 = vst [vmem:[%s4733_s10 + $0x578] sm:$0xff] %v361_v50 }
  0x6f   : >> { %364 = vst [vmem:[%s4733_s10 + $0x580] sm:$0xff] %v363_v51 }
  0x70   : >> { %366 = vst [vmem:[%s4733_s10 + $0x5b0] sm:$0xff] %v365_v52 }
  0x71   : >> { %368 = vst [vmem:[%s4733_s10 + $0x5b8] sm:$0xff] %v367_v53  ;;  %s8402_s10 = smov %s5036_s27 }
  0x72 PF: > { %s5146_s28 = sand.u32 1, %s250_s8   ;;  %s3958_s23 = sshll.u32 %s4990_s9, 4 }
  0x73   : > { %s5150_s0 = scalar_lea.vmem %s4975_s4, %s3958_s23   ;;  %s5153_s2 = scalar_lea.vmem %s4979_s5, %s3958_s23 [#allocation5]  }
  0x74   : > { %p3907_p12 = scmp.le.s32.totalorder %s5146_s28, 0 }
  0x75   : > { %s8405_s13 = smov (!%p3907_p12), %s5153_s2  ;;  %s8406_s10 = smov (!%p3907_p12), %s5150_s0 }
  0x76   : > { %3757 = sbr.rel (%p3907_p12) target bundleno = 151 (0x97), region = 245  ;;  %s5162_s11 = smov (!%p3907_p12), 0  }
  0x77   : > { %s5164_s12 = smov (!%p3907_p12), 0  }
  0x7b LB: >> { %v392_v54 = vld [vmem:[%s4753_s10] sm:$0xff]  ;;  %s446_s8 = sadd.s32 1, %s4757_s11  ;;  %s386_s12 = sadd.s32 1, %s4761_s12   ;;  %s4761_s12 = sphi %s5164_s12, %s386_s12   ;;  %s4757_s11 = sphi %s5162_s11, %s8409_s11   ;;  %s4753_s10 = sphi %s8406_s10, %s8408_s10   ;;  %s4749_s13 = sphi %s8405_s13, %s8407_s13  }
  0x7c   : >> { %v394_v55 = vld [vmem:[%s4753_s10 + $0x40] sm:$0xff]  ;;  %393 = vst [vmem:[%s4749_s13] sm:$0xff] %v392_v54  ;;  %p447_p13 = scmp.ge.s32.totalorder %s446_s8, %s5146_s28  ;;  %p385_p0 = scmp.ge.s32.totalorder %s386_s12, %s5146_s28 }
  0x7d   : >> { %v396_v56 = vld [vmem:[%s4753_s10 + $0x80] sm:$0xff]  ;;  %395 = vst [vmem:[%s4749_s13 + $0x38] sm:$0xff] %v394_v55 }
  0x7e   : >> { %v398_v57 = vld [vmem:[%s4753_s10 + $0xc0] sm:$0xff]  ;;  %397 = vst [vmem:[%s4749_s13 + $0x70] sm:$0xff] %v396_v56  ;;  %s8528_s8 = smov (%p447_p13, %s446_s8), 0 }
  0x7f   : >> { %v400_v58 = vld [vmem:[%s4753_s10 + $0x100] sm:$0xff]  ;;  %399 = vst [vmem:[%s4749_s13 + $0xa8] sm:$0xff] %v398_v57  ;;  %s3908_s9 = sshll.u32 %s8528_s8, 3  ;;  %s8409_s11 = smov %s8528_s8 }
  0x80   : >> { %v402_v59 = vld [vmem:[%s4753_s10 + $0x140] sm:$0xff]  ;;  %401 = vst [vmem:[%s4749_s13 + $0xe0] sm:$0xff] %v400_v58  ;;  %s5196_s1 = scalar_lea.vmem %s5150_s0, %s3908_s9   ;;  %s5199_s24 = scalar_lea.vmem %s5153_s2, %s3908_s9 [#allocation5]  }
  0x81   : >> { %v404_v60 = vld [vmem:[%s4753_s10 + $0x180] sm:$0xff]  ;;  %403 = vst [vmem:[%s4749_s13 + $0x118] sm:$0xff] %v402_v59 }
  0x82   : >> { %v406_v61 = vld [vmem:[%s4753_s10 + $0x1c0] sm:$0xff]  ;;  %405 = vst [vmem:[%s4749_s13 + $0x150] sm:$0xff] %v404_v60 }
  0x83   : >> { %v408_v62 = vld [vmem:[%s4753_s10 + $0x200] sm:$0xff]  ;;  %407 = vst [vmem:[%s4749_s13 + $0x188] sm:$0xff] %v406_v61 }
  0x84   : >> { %v410_v63 = vld [vmem:[%s4753_s10 + $0x240] sm:$0xff]  ;;  %409 = vst [vmem:[%s4749_s13 + $0x1c0] sm:$0xff] %v408_v62 }
  0x85   : >> { %v412_v0 = vld [vmem:[%s4753_s10 + $0x280] sm:$0xff]  ;;  %411 = vst [vmem:[%s4749_s13 + $0x1f8] sm:$0xff] %v410_v63 }
  0x86   : >> { %v414_v1 = vld [vmem:[%s4753_s10 + $0x2c0] sm:$0xff]  ;;  %413 = vst [vmem:[%s4749_s13 + $0x230] sm:$0xff] %v412_v0 }
  0x87   : >> { %v416_v2 = vld [vmem:[%s4753_s10 + $0x300] sm:$0xff]  ;;  %415 = vst [vmem:[%s4749_s13 + $0x268] sm:$0xff] %v414_v1 }
  0x88   : >> { %v418_v3 = vld [vmem:[%s4753_s10 + $0x340] sm:$0xff]  ;;  %417 = vst [vmem:[%s4749_s13 + $0x2a0] sm:$0xff] %v416_v2 }
  0x89   : >> { %v420_v4 = vld [vmem:[%s4753_s10 + $0x380] sm:$0xff]  ;;  %419 = vst [vmem:[%s4749_s13 + $0x2d8] sm:$0xff] %v418_v3 }
  0x8a   : >> { %v422_v5 = vld [vmem:[%s4753_s10 + $0x3c0] sm:$0xff]  ;;  %421 = vst [vmem:[%s4749_s13 + $0x310] sm:$0xff] %v420_v4 }
  0x8b   : >> { %v424_v6 = vld [vmem:[%s4753_s10 + $0x400] sm:$0xff]  ;;  %423 = vst [vmem:[%s4749_s13 + $0x348] sm:$0xff] %v422_v5 }
  0x8c   : >> { %v426_v7 = vld [vmem:[%s4753_s10 + $0x440] sm:$0xff]  ;;  %425 = vst [vmem:[%s4749_s13 + $0x380] sm:$0xff] %v424_v6 }
  0x8d   : >> { %v428_v8 = vld [vmem:[%s4753_s10 + $0x480] sm:$0xff]  ;;  %427 = vst [vmem:[%s4749_s13 + $0x3b8] sm:$0xff] %v426_v7 }
  0x8e   : >> { %v430_v9 = vld [vmem:[%s4753_s10 + $0x4c0] sm:$0xff]  ;;  %429 = vst [vmem:[%s4749_s13 + $0x3f0] sm:$0xff] %v428_v8 }
  0x8f   : >> { %v432_v10 = vld [vmem:[%s4753_s10 + $0x500] sm:$0xff]  ;;  %431 = vst [vmem:[%s4749_s13 + $0x428] sm:$0xff] %v430_v9 }
  0x90   : >> { %v434_v11 = vld [vmem:[%s4753_s10 + $0x540] sm:$0xff]  ;;  %433 = vst [vmem:[%s4749_s13 + $0x460] sm:$0xff] %v432_v10 }
  0x91   : >> { %v436_v12 = vld [vmem:[%s4753_s10 + $0x580] sm:$0xff]  ;;  %435 = vst [vmem:[%s4749_s13 + $0x498] sm:$0xff] %v434_v11 }
  0x92   : >> { %v438_v13 = vld [vmem:[%s4753_s10 + $0x5c0] sm:$0xff]  ;;  %437 = vst [vmem:[%s4749_s13 + $0x4d0] sm:$0xff] %v436_v12  ;;  %388 = sbr.rel (!%p385_p0) target bundleno = 123 (0x7b), region = 251 }
  0x93   : >> { %v440_v14 = vld [vmem:[%s4753_s10 + $0x600] sm:$0xff]  ;;  %439 = vst [vmem:[%s4749_s13 + $0x508] sm:$0xff] %v438_v13 }
  0x94   : >> { %v442_v15 = vld [vmem:[%s4753_s10 + $0x640] sm:$0xff]  ;;  %441 = vst [vmem:[%s4749_s13 + $0x540] sm:$0xff] %v440_v14 }
  0x95   : >> { %v444_v16 = vld [vmem:[%s4753_s10 + $0x680] sm:$0xff]  ;;  %443 = vst [vmem:[%s4749_s13 + $0x578] sm:$0xff] %v442_v15  ;;  %s8408_s10 = smov %s5196_s1 }
  0x96   : >> { %445 = vst [vmem:[%s4749_s13 + $0x5b0] sm:$0xff] %v444_v16  ;;  %s8407_s13 = smov %s5199_s24 }
  0x97 PF: > { %455 = sbr.rel (%p246_p4) target bundleno = 284 (0x11c), region = 69  ;;  %s457_s27 = ssub.s32 (!%p246_p4), %s4977_s25, %s4983_s6 }
  0x98   : > { %s461_s23 = sshrl.u32 (!%p246_p4), %s4977_s25, 3  ;;  %s5259_s9 = scalar_lea.vmem (!%p246_p4), %s4975_s4, %s457_s27 }
  0x99   : > { %s5262_s1 = scalar_lea.vmem (!%p246_p4), %s4979_s5, %s457_s27 [#allocation5]  ;;  %s5266_s12 = sshrl.u32 (!%p246_p4), %s461_s23, 1 }
  0x9a   : > { %p3910_p1 = scmp.le.s32.totalorder (!%p246_p4), %s5266_s12, 0 }
  0x9c   : > { %3771 = sbr.rel (%p3910_p1) target bundleno = 216 (0xd8), region = 256  ;;  %s8410_s0 = smov (!%p3910_p1), %s4979_s5 }
  0x9d   : > { %s8411_s2 = smov (!%p3910_p1), %s4975_s4  ;;  %s5275_s28 = smov (!%p3910_p1), 0  }
  0x9e   : > { %s5277_s13 = smov (!%p3910_p1), 0  }
  0xa1 LB: >> { %v472_v17 = vld [vmem:[%s4769_s2] sm:$0xff]  ;;  %v474_v18 = vld [vmem:[%s4769_s2 + $0x8] sm:$0xff]  ;;  %s580_s10 = sadd.s32 1, %s4773_s28  ;;  %s466_s13 = sadd.s32 1, %s4777_s13   ;;  %s4777_s13 = sphi %s5277_s13, %s466_s13   ;;  %s4773_s28 = sphi %s5275_s28, %s8414_s28   ;;  %s4769_s2 = sphi %s8411_s2, %s8413_s2   ;;  %s4765_s0 = sphi %s8410_s0, %s8412_s0  }
  0xa2   : >> { %v476_v19 = vld [vmem:[%s4769_s2 + $0x40] sm:$0xff]  ;;  %473 = vst [vmem:[%s4765_s0] sm:$0xff] %v472_v17  ;;  %v478_v20 = vld [vmem:[%s4769_s2 + $0x48] sm:$0xff]  ;;  %p581_p2 = scmp.ge.s32.totalorder %s580_s10, %s5266_s12  ;;  %p465_p3 = scmp.ge.s32.totalorder %s466_s13, %s5266_s12 }
  0xa3   : >> { %475 = vst [vmem:[%s4765_s0 + $0x8] sm:$0xff] %v474_v18  ;;  %v480_v21 = vld [vmem:[%s4769_s2 + $0x80] sm:$0xff]  ;;  %v482_v22 = vld [vmem:[%s4769_s2 + $0x88] sm:$0xff] }
  0xa4   : >> { %477 = vst [vmem:[%s4765_s0 + $0x38] sm:$0xff] %v476_v19  ;;  %s8530_s10 = smov (%p581_p2, %s580_s10), 0  ;;  %v484_v23 = vld [vmem:[%s4769_s2 + $0xc0] sm:$0xff]  ;;  %v486_v24 = vld [vmem:[%s4769_s2 + $0xc8] sm:$0xff] }
  0xa5   : >> { %479 = vst [vmem:[%s4765_s0 + $0x40] sm:$0xff] %v478_v20  ;;  %s3911_s11 = sshll.u32 %s8530_s10, 4  ;;  %v488_v25 = vld [vmem:[%s4769_s2 + $0x100] sm:$0xff]  ;;  %v490_v26 = vld [vmem:[%s4769_s2 + $0x108] sm:$0xff]  ;;  %s8414_s28 = smov %s8530_s10 }
  0xa6   : >> { %481 = vst [vmem:[%s4765_s0 + $0x70] sm:$0xff] %v480_v21  ;;  %s5309_s8 = scalar_lea.vmem %s4975_s4, %s3911_s11   ;;  %s5312_s24 = scalar_lea.vmem %s4979_s5, %s3911_s11 [#allocation5]   ;;  %v492_v27 = vld [vmem:[%s4769_s2 + $0x140] sm:$0xff]  ;;  %v494_v28 = vld [vmem:[%s4769_s2 + $0x148] sm:$0xff] }
  0xa7   : >> { %483 = vst [vmem:[%s4765_s0 + $0x78] sm:$0xff] %v482_v22  ;;  %v496_v29 = vld [vmem:[%s4769_s2 + $0x180] sm:$0xff]  ;;  %v498_v30 = vld [vmem:[%s4769_s2 + $0x188] sm:$0xff] }
  0xa8   : >> { %485 = vst [vmem:[%s4765_s0 + $0xa8] sm:$0xff] %v484_v23  ;;  %v500_v31 = vld [vmem:[%s4769_s2 + $0x1c0] sm:$0xff]  ;;  %v502_v32 = vld [vmem:[%s4769_s2 + $0x1c8] sm:$0xff] }
  0xa9   : >> { %487 = vst [vmem:[%s4765_s0 + $0xb0] sm:$0xff] %v486_v24  ;;  %v504_v33 = vld [vmem:[%s4769_s2 + $0x200] sm:$0xff]  ;;  %v506_v34 = vld [vmem:[%s4769_s2 + $0x208] sm:$0xff] }
  0xaa   : >> { %489 = vst [vmem:[%s4765_s0 + $0xe0] sm:$0xff] %v488_v25  ;;  %v508_v35 = vld [vmem:[%s4769_s2 + $0x240] sm:$0xff]  ;;  %v510_v36 = vld [vmem:[%s4769_s2 + $0x248] sm:$0xff] }
  0xab   : >> { %491 = vst [vmem:[%s4765_s0 + $0xe8] sm:$0xff] %v490_v26  ;;  %v512_v37 = vld [vmem:[%s4769_s2 + $0x280] sm:$0xff]  ;;  %v514_v38 = vld [vmem:[%s4769_s2 + $0x288] sm:$0xff] }
  0xac   : >> { %493 = vst [vmem:[%s4765_s0 + $0x118] sm:$0xff] %v492_v27  ;;  %v516_v39 = vld [vmem:[%s4769_s2 + $0x2c0] sm:$0xff]  ;;  %v518_v40 = vld [vmem:[%s4769_s2 + $0x2c8] sm:$0xff] }
  0xad   : >> { %495 = vst [vmem:[%s4765_s0 + $0x120] sm:$0xff] %v494_v28  ;;  %v520_v41 = vld [vmem:[%s4769_s2 + $0x300] sm:$0xff]  ;;  %v522_v42 = vld [vmem:[%s4769_s2 + $0x308] sm:$0xff] }
  0xae   : >> { %497 = vst [vmem:[%s4765_s0 + $0x150] sm:$0xff] %v496_v29  ;;  %v524_v43 = vld [vmem:[%s4769_s2 + $0x340] sm:$0xff]  ;;  %v526_v44 = vld [vmem:[%s4769_s2 + $0x348] sm:$0xff] }
  0xaf   : >> { %499 = vst [vmem:[%s4765_s0 + $0x158] sm:$0xff] %v498_v30  ;;  %v528_v45 = vld [vmem:[%s4769_s2 + $0x380] sm:$0xff]  ;;  %v530_v46 = vld [vmem:[%s4769_s2 + $0x388] sm:$0xff] }
  0xb0   : >> { %501 = vst [vmem:[%s4765_s0 + $0x188] sm:$0xff] %v500_v31  ;;  %v532_v47 = vld [vmem:[%s4769_s2 + $0x3c0] sm:$0xff]  ;;  %v534_v48 = vld [vmem:[%s4769_s2 + $0x3c8] sm:$0xff] }
  0xb1   : >> { %503 = vst [vmem:[%s4765_s0 + $0x190] sm:$0xff] %v502_v32  ;;  %v536_v49 = vld [vmem:[%s4769_s2 + $0x400] sm:$0xff]  ;;  %v538_v50 = vld [vmem:[%s4769_s2 + $0x408] sm:$0xff] }
  0xb2   : >> { %505 = vst [vmem:[%s4765_s0 + $0x1c0] sm:$0xff] %v504_v33  ;;  %v540_v51 = vld [vmem:[%s4769_s2 + $0x440] sm:$0xff]  ;;  %v542_v52 = vld [vmem:[%s4769_s2 + $0x448] sm:$0xff] }
  0xb3   : >> { %507 = vst [vmem:[%s4765_s0 + $0x1c8] sm:$0xff] %v506_v34  ;;  %v544_v53 = vld [vmem:[%s4769_s2 + $0x480] sm:$0xff]  ;;  %v546_v54 = vld [vmem:[%s4769_s2 + $0x488] sm:$0xff] }
  0xb4   : >> { %509 = vst [vmem:[%s4765_s0 + $0x1f8] sm:$0xff] %v508_v35  ;;  %v548_v55 = vld [vmem:[%s4769_s2 + $0x4c0] sm:$0xff]  ;;  %v550_v56 = vld [vmem:[%s4769_s2 + $0x4c8] sm:$0xff] }
  0xb5   : >> { %511 = vst [vmem:[%s4765_s0 + $0x200] sm:$0xff] %v510_v36  ;;  %v552_v57 = vld [vmem:[%s4769_s2 + $0x500] sm:$0xff]  ;;  %v554_v58 = vld [vmem:[%s4769_s2 + $0x508] sm:$0xff] }
  0xb6   : >> { %513 = vst [vmem:[%s4765_s0 + $0x230] sm:$0xff] %v512_v37  ;;  %v556_v59 = vld [vmem:[%s4769_s2 + $0x540] sm:$0xff]  ;;  %v558_v60 = vld [vmem:[%s4769_s2 + $0x548] sm:$0xff] }
  0xb7   : >> { %515 = vst [vmem:[%s4765_s0 + $0x238] sm:$0xff] %v514_v38  ;;  %v560_v61 = vld [vmem:[%s4769_s2 + $0x580] sm:$0xff]  ;;  %v562_v62 = vld [vmem:[%s4769_s2 + $0x588] sm:$0xff] }
  0xb8   : >> { %517 = vst [vmem:[%s4765_s0 + $0x268] sm:$0xff] %v516_v39  ;;  %v564_v63 = vld [vmem:[%s4769_s2 + $0x5c0] sm:$0xff]  ;;  %v566_v0 = vld [vmem:[%s4769_s2 + $0x5c8] sm:$0xff] }
  0xb9   : >> { %519 = vst [vmem:[%s4765_s0 + $0x270] sm:$0xff] %v518_v40  ;;  %v568_v1 = vld [vmem:[%s4769_s2 + $0x600] sm:$0xff]  ;;  %v570_v2 = vld [vmem:[%s4769_s2 + $0x608] sm:$0xff] }
  0xba   : >> { %521 = vst [vmem:[%s4765_s0 + $0x2a0] sm:$0xff] %v520_v41  ;;  %v572_v3 = vld [vmem:[%s4769_s2 + $0x640] sm:$0xff]  ;;  %v574_v4 = vld [vmem:[%s4769_s2 + $0x648] sm:$0xff] }
  0xbb   : >> { %523 = vst [vmem:[%s4765_s0 + $0x2a8] sm:$0xff] %v522_v42  ;;  %v576_v5 = vld [vmem:[%s4769_s2 + $0x680] sm:$0xff]  ;;  %v578_v6 = vld [vmem:[%s4769_s2 + $0x688] sm:$0xff]  ;;  %s8413_s2 = smov %s5309_s8 }
  0xbc   : >> { %525 = vst [vmem:[%s4765_s0 + $0x2d8] sm:$0xff] %v524_v43 }
  0xbd   : >> { %527 = vst [vmem:[%s4765_s0 + $0x2e0] sm:$0xff] %v526_v44 }
  0xbe   : >> { %529 = vst [vmem:[%s4765_s0 + $0x310] sm:$0xff] %v528_v45 }
  0xbf   : >> { %531 = vst [vmem:[%s4765_s0 + $0x318] sm:$0xff] %v530_v46 }
  0xc0   : >> { %533 = vst [vmem:[%s4765_s0 + $0x348] sm:$0xff] %v532_v47 }
  0xc1   : >> { %535 = vst [vmem:[%s4765_s0 + $0x350] sm:$0xff] %v534_v48 }
  0xc2   : >> { %537 = vst [vmem:[%s4765_s0 + $0x380] sm:$0xff] %v536_v49 }
  0xc3   : >> { %539 = vst [vmem:[%s4765_s0 + $0x388] sm:$0xff] %v538_v50 }
  0xc4   : >> { %541 = vst [vmem:[%s4765_s0 + $0x3b8] sm:$0xff] %v540_v51 }
  0xc5   : >> { %543 = vst [vmem:[%s4765_s0 + $0x3c0] sm:$0xff] %v542_v52 }
  0xc6   : >> { %545 = vst [vmem:[%s4765_s0 + $0x3f0] sm:$0xff] %v544_v53 }
  0xc7   : >> { %547 = vst [vmem:[%s4765_s0 + $0x3f8] sm:$0xff] %v546_v54 }
  0xc8   : >> { %549 = vst [vmem:[%s4765_s0 + $0x428] sm:$0xff] %v548_v55 }
  0xc9   : >> { %551 = vst [vmem:[%s4765_s0 + $0x430] sm:$0xff] %v550_v56 }
  0xca   : >> { %553 = vst [vmem:[%s4765_s0 + $0x460] sm:$0xff] %v552_v57 }
  0xcb   : >> { %555 = vst [vmem:[%s4765_s0 + $0x468] sm:$0xff] %v554_v58 }
  0xcc   : >> { %557 = vst [vmem:[%s4765_s0 + $0x498] sm:$0xff] %v556_v59 }
  0xcd   : >> { %559 = vst [vmem:[%s4765_s0 + $0x4a0] sm:$0xff] %v558_v60 }
  0xce   : >> { %561 = vst [vmem:[%s4765_s0 + $0x4d0] sm:$0xff] %v560_v61 }
  0xcf   : >> { %563 = vst [vmem:[%s4765_s0 + $0x4d8] sm:$0xff] %v562_v62 }
  0xd0   : >> { %565 = vst [vmem:[%s4765_s0 + $0x508] sm:$0xff] %v564_v63 }
  0xd1   : >> { %567 = vst [vmem:[%s4765_s0 + $0x510] sm:$0xff] %v566_v0 }
  0xd2   : >> { %569 = vst [vmem:[%s4765_s0 + $0x540] sm:$0xff] %v568_v1 }
  0xd3   : >> { %571 = vst [vmem:[%s4765_s0 + $0x548] sm:$0xff] %v570_v2  ;;  %468 = sbr.rel (!%p465_p3) target bundleno = 161 (0xa1), region = 262 }
  0xd4   : >> { %573 = vst [vmem:[%s4765_s0 + $0x578] sm:$0xff] %v572_v3 }
  0xd5   : >> { %575 = vst [vmem:[%s4765_s0 + $0x580] sm:$0xff] %v574_v4 }
  0xd6   : >> { %577 = vst [vmem:[%s4765_s0 + $0x5b0] sm:$0xff] %v576_v5 }
  0xd7   : >> { %579 = vst [vmem:[%s4765_s0 + $0x5b8] sm:$0xff] %v578_v6  ;;  %s8412_s0 = smov %s5312_s24 }
  0xd8 PF: > { %s5422_s27 = sand.u32 1, %s461_s23   ;;  %s3960_s11 = sshll.u32 %s5266_s12, 4 }
  0xd9   : > { %s5426_s22 = scalar_lea.vmem %s4975_s4, %s3960_s11   ;;  %s5429_s21 = scalar_lea.vmem %s4979_s5, %s3960_s11 [#allocation5]  }
  0xda   : > { %p3916_p4 = scmp.le.s32.totalorder %s5422_s27, 0 }
  0xdb   : > { %s8415_s13 = smov (!%p3916_p4), %s5429_s21  ;;  %s8416_s0 = smov (!%p3916_p4), %s5426_s22 }
  0xdc   : > { %3785 = sbr.rel (%p3916_p4) target bundleno = 253 (0xfd), region = 267  ;;  %s5438_s2 = smov (!%p3916_p4), 0  }
  0xdd   : > { %s5440_s28 = smov (!%p3916_p4), 0  }
  0xe1 LB: >> { %v603_v7 = vld [vmem:[%s4785_s0] sm:$0xff]  ;;  %s657_s23 = sadd.s32 1, %s4789_s2  ;;  %s597_s28 = sadd.s32 1, %s4793_s28   ;;  %s4793_s28 = sphi %s5440_s28, %s597_s28   ;;  %s4789_s2 = sphi %s5438_s2, %s8419_s2   ;;  %s4785_s0 = sphi %s8416_s0, %s8418_s0   ;;  %s4781_s13 = sphi %s8415_s13, %s8417_s13  }
  0xe2   : >> { %v605_v8 = vld [vmem:[%s4785_s0 + $0x40] sm:$0xff]  ;;  %604 = vst [vmem:[%s4781_s13] sm:$0xff] %v603_v7  ;;  %p658_p5 = scmp.ge.s32.totalorder %s657_s23, %s5422_s27  ;;  %p596_p6 = scmp.ge.s32.totalorder %s597_s28, %s5422_s27 }
  0xe3   : >> { %v607_v9 = vld [vmem:[%s4785_s0 + $0x80] sm:$0xff]  ;;  %606 = vst [vmem:[%s4781_s13 + $0x38] sm:$0xff] %v605_v8 }
  0xe4   : >> { %v609_v10 = vld [vmem:[%s4785_s0 + $0xc0] sm:$0xff]  ;;  %608 = vst [vmem:[%s4781_s13 + $0x70] sm:$0xff] %v607_v9  ;;  %s8532_s23 = smov (%p658_p5, %s657_s23), 0 }
  0xe5   : >> { %v611_v11 = vld [vmem:[%s4785_s0 + $0x100] sm:$0xff]  ;;  %610 = vst [vmem:[%s4781_s13 + $0xa8] sm:$0xff] %v609_v10  ;;  %s3917_s12 = sshll.u32 %s8532_s23, 3  ;;  %s8419_s2 = smov %s8532_s23 }
  0xe6   : >> { %v613_v12 = vld [vmem:[%s4785_s0 + $0x140] sm:$0xff]  ;;  %612 = vst [vmem:[%s4781_s13 + $0xe0] sm:$0xff] %v611_v11  ;;  %s5472_s10 = scalar_lea.vmem %s5426_s22, %s3917_s12   ;;  %s5475_s8 = scalar_lea.vmem %s5429_s21, %s3917_s12 [#allocation5]  }
  0xe7   : >> { %v615_v13 = vld [vmem:[%s4785_s0 + $0x180] sm:$0xff]  ;;  %614 = vst [vmem:[%s4781_s13 + $0x118] sm:$0xff] %v613_v12 }
  0xe8   : >> { %v617_v14 = vld [vmem:[%s4785_s0 + $0x1c0] sm:$0xff]  ;;  %616 = vst [vmem:[%s4781_s13 + $0x150] sm:$0xff] %v615_v13 }
  0xe9   : >> { %v619_v15 = vld [vmem:[%s4785_s0 + $0x200] sm:$0xff]  ;;  %618 = vst [vmem:[%s4781_s13 + $0x188] sm:$0xff] %v617_v14 }
  0xea   : >> { %v621_v16 = vld [vmem:[%s4785_s0 + $0x240] sm:$0xff]  ;;  %620 = vst [vmem:[%s4781_s13 + $0x1c0] sm:$0xff] %v619_v15 }
  0xeb   : >> { %v623_v17 = vld [vmem:[%s4785_s0 + $0x280] sm:$0xff]  ;;  %622 = vst [vmem:[%s4781_s13 + $0x1f8] sm:$0xff] %v621_v16 }
  0xec   : >> { %v625_v18 = vld [vmem:[%s4785_s0 + $0x2c0] sm:$0xff]  ;;  %624 = vst [vmem:[%s4781_s13 + $0x230] sm:$0xff] %v623_v17 }
  0xed   : >> { %v627_v19 = vld [vmem:[%s4785_s0 + $0x300] sm:$0xff]  ;;  %626 = vst [vmem:[%s4781_s13 + $0x268] sm:$0xff] %v625_v18 }
  0xee   : >> { %v629_v20 = vld [vmem:[%s4785_s0 + $0x340] sm:$0xff]  ;;  %628 = vst [vmem:[%s4781_s13 + $0x2a0] sm:$0xff] %v627_v19 }
  0xef   : >> { %v631_v21 = vld [vmem:[%s4785_s0 + $0x380] sm:$0xff]  ;;  %630 = vst [vmem:[%s4781_s13 + $0x2d8] sm:$0xff] %v629_v20 }
  0xf0   : >> { %v633_v22 = vld [vmem:[%s4785_s0 + $0x3c0] sm:$0xff]  ;;  %632 = vst [vmem:[%s4781_s13 + $0x310] sm:$0xff] %v631_v21 }
  0xf1   : >> { %v635_v23 = vld [vmem:[%s4785_s0 + $0x400] sm:$0xff]  ;;  %634 = vst [vmem:[%s4781_s13 + $0x348] sm:$0xff] %v633_v22 }
  0xf2   : >> { %v637_v24 = vld [vmem:[%s4785_s0 + $0x440] sm:$0xff]  ;;  %636 = vst [vmem:[%s4781_s13 + $0x380] sm:$0xff] %v635_v23 }
  0xf3   : >> { %v639_v25 = vld [vmem:[%s4785_s0 + $0x480] sm:$0xff]  ;;  %638 = vst [vmem:[%s4781_s13 + $0x3b8] sm:$0xff] %v637_v24 }
  0xf4   : >> { %v641_v26 = vld [vmem:[%s4785_s0 + $0x4c0] sm:$0xff]  ;;  %640 = vst [vmem:[%s4781_s13 + $0x3f0] sm:$0xff] %v639_v25 }
  0xf5   : >> { %v643_v27 = vld [vmem:[%s4785_s0 + $0x500] sm:$0xff]  ;;  %642 = vst [vmem:[%s4781_s13 + $0x428] sm:$0xff] %v641_v26 }
  0xf6   : >> { %v645_v28 = vld [vmem:[%s4785_s0 + $0x540] sm:$0xff]  ;;  %644 = vst [vmem:[%s4781_s13 + $0x460] sm:$0xff] %v643_v27 }
  0xf7   : >> { %v647_v29 = vld [vmem:[%s4785_s0 + $0x580] sm:$0xff]  ;;  %646 = vst [vmem:[%s4781_s13 + $0x498] sm:$0xff] %v645_v28 }
  0xf8   : >> { %v649_v30 = vld [vmem:[%s4785_s0 + $0x5c0] sm:$0xff]  ;;  %648 = vst [vmem:[%s4781_s13 + $0x4d0] sm:$0xff] %v647_v29  ;;  %599 = sbr.rel (!%p596_p6) target bundleno = 225 (0xe1), region = 273 }
  0xf9   : >> { %v651_v31 = vld [vmem:[%s4785_s0 + $0x600] sm:$0xff]  ;;  %650 = vst [vmem:[%s4781_s13 + $0x508] sm:$0xff] %v649_v30 }
  0xfa   : >> { %v653_v32 = vld [vmem:[%s4785_s0 + $0x640] sm:$0xff]  ;;  %652 = vst [vmem:[%s4781_s13 + $0x540] sm:$0xff] %v651_v31 }
  0xfb   : >> { %v655_v33 = vld [vmem:[%s4785_s0 + $0x680] sm:$0xff]  ;;  %654 = vst [vmem:[%s4781_s13 + $0x578] sm:$0xff] %v653_v32  ;;  %s8418_s0 = smov %s5472_s10 }
  0xfc   : >> { %656 = vst [vmem:[%s4781_s13 + $0x5b0] sm:$0xff] %v655_v33  ;;  %s8417_s13 = smov %s5475_s8 }
  0xfd PF: > { %s4860_s24 = smov 1  }
  0xfe   : > { %s664_s11 = sshll.u32 %s4860_s24, %s4983_s6 }
  0xff   : > { %s5530_s28 = sadd.s32 4294967295, %s664_s11 }
 0x100   : > { %v674_v34 = vld [vmem:[%s5259_s9] sm:%s5530_s28] }
 0x101   : > { %v676_v35 = vld [vmem:[%s5259_s9 + $0x40] sm:%s5530_s28]  ;;  %675 = vst [vmem:[%s5262_s1] sm:%s5530_s28] %v674_v34 }
 0x102   : > { %v678_v36 = vld [vmem:[%s5259_s9 + $0x80] sm:%s5530_s28]  ;;  %677 = vst [vmem:[%s5262_s1 + $0x38] sm:%s5530_s28] %v676_v35 }
 0x103   : > { %v680_v37 = vld [vmem:[%s5259_s9 + $0xc0] sm:%s5530_s28]  ;;  %679 = vst [vmem:[%s5262_s1 + $0x70] sm:%s5530_s28] %v678_v36 }
 0x104   : > { %v682_v38 = vld [vmem:[%s5259_s9 + $0x100] sm:%s5530_s28]  ;;  %681 = vst [vmem:[%s5262_s1 + $0xa8] sm:%s5530_s28] %v680_v37 }
 0x105   : > { %v684_v39 = vld [vmem:[%s5259_s9 + $0x140] sm:%s5530_s28]  ;;  %683 = vst [vmem:[%s5262_s1 + $0xe0] sm:%s5530_s28] %v682_v38 }
 0x106   : > { %v686_v40 = vld [vmem:[%s5259_s9 + $0x180] sm:%s5530_s28]  ;;  %685 = vst [vmem:[%s5262_s1 + $0x118] sm:%s5530_s28] %v684_v39 }
 0x107   : > { %v688_v41 = vld [vmem:[%s5259_s9 + $0x1c0] sm:%s5530_s28]  ;;  %687 = vst [vmem:[%s5262_s1 + $0x150] sm:%s5530_s28] %v686_v40 }
 0x108   : > { %v690_v42 = vld [vmem:[%s5259_s9 + $0x200] sm:%s5530_s28]  ;;  %689 = vst [vmem:[%s5262_s1 + $0x188] sm:%s5530_s28] %v688_v41 }
 0x109   : > { %v692_v43 = vld [vmem:[%s5259_s9 + $0x240] sm:%s5530_s28]  ;;  %691 = vst [vmem:[%s5262_s1 + $0x1c0] sm:%s5530_s28] %v690_v42 }
 0x10a   : > { %v694_v44 = vld [vmem:[%s5259_s9 + $0x280] sm:%s5530_s28]  ;;  %693 = vst [vmem:[%s5262_s1 + $0x1f8] sm:%s5530_s28] %v692_v43 }
 0x10b   : > { %v696_v45 = vld [vmem:[%s5259_s9 + $0x2c0] sm:%s5530_s28]  ;;  %695 = vst [vmem:[%s5262_s1 + $0x230] sm:%s5530_s28] %v694_v44 }
 0x10c   : > { %v698_v46 = vld [vmem:[%s5259_s9 + $0x300] sm:%s5530_s28]  ;;  %697 = vst [vmem:[%s5262_s1 + $0x268] sm:%s5530_s28] %v696_v45 }
 0x10d   : > { %v700_v47 = vld [vmem:[%s5259_s9 + $0x340] sm:%s5530_s28]  ;;  %699 = vst [vmem:[%s5262_s1 + $0x2a0] sm:%s5530_s28] %v698_v46 }
 0x10e   : > { %v702_v48 = vld [vmem:[%s5259_s9 + $0x380] sm:%s5530_s28]  ;;  %701 = vst [vmem:[%s5262_s1 + $0x2d8] sm:%s5530_s28] %v700_v47 }
 0x10f   : > { %v704_v49 = vld [vmem:[%s5259_s9 + $0x3c0] sm:%s5530_s28]  ;;  %703 = vst [vmem:[%s5262_s1 + $0x310] sm:%s5530_s28] %v702_v48 }
 0x110   : > { %v706_v50 = vld [vmem:[%s5259_s9 + $0x400] sm:%s5530_s28]  ;;  %705 = vst [vmem:[%s5262_s1 + $0x348] sm:%s5530_s28] %v704_v49 }
 0x111   : > { %v708_v51 = vld [vmem:[%s5259_s9 + $0x440] sm:%s5530_s28]  ;;  %707 = vst [vmem:[%s5262_s1 + $0x380] sm:%s5530_s28] %v706_v50 }
 0x112   : > { %v710_v52 = vld [vmem:[%s5259_s9 + $0x480] sm:%s5530_s28]  ;;  %709 = vst [vmem:[%s5262_s1 + $0x3b8] sm:%s5530_s28] %v708_v51 }
 0x113   : > { %v712_v53 = vld [vmem:[%s5259_s9 + $0x4c0] sm:%s5530_s28]  ;;  %711 = vst [vmem:[%s5262_s1 + $0x3f0] sm:%s5530_s28] %v710_v52 }
 0x114   : > { %v714_v54 = vld [vmem:[%s5259_s9 + $0x500] sm:%s5530_s28]  ;;  %713 = vst [vmem:[%s5262_s1 + $0x428] sm:%s5530_s28] %v712_v53 }
 0x115   : > { %v716_v55 = vld [vmem:[%s5259_s9 + $0x540] sm:%s5530_s28]  ;;  %715 = vst [vmem:[%s5262_s1 + $0x460] sm:%s5530_s28] %v714_v54 }
 0x116   : > { %v718_v56 = vld [vmem:[%s5259_s9 + $0x580] sm:%s5530_s28]  ;;  %717 = vst [vmem:[%s5262_s1 + $0x498] sm:%s5530_s28] %v716_v55 }
 0x117   : > { %v720_v57 = vld [vmem:[%s5259_s9 + $0x5c0] sm:%s5530_s28]  ;;  %719 = vst [vmem:[%s5262_s1 + $0x4d0] sm:%s5530_s28] %v718_v56 }
 0x118   : > { %v722_v58 = vld [vmem:[%s5259_s9 + $0x600] sm:%s5530_s28]  ;;  %721 = vst [vmem:[%s5262_s1 + $0x508] sm:%s5530_s28] %v720_v57 }
 0x119   : > { %v724_v59 = vld [vmem:[%s5259_s9 + $0x640] sm:%s5530_s28]  ;;  %723 = vst [vmem:[%s5262_s1 + $0x540] sm:%s5530_s28] %v722_v58 }
 0x11a   : > { %v726_v60 = vld [vmem:[%s5259_s9 + $0x680] sm:%s5530_s28]  ;;  %725 = vst [vmem:[%s5262_s1 + $0x578] sm:%s5530_s28] %v724_v59 }
 0x11b   : > { %727 = vst [vmem:[%s5262_s1 + $0x5b0] sm:%s5530_s28] %v726_v60 }
 0x11c PF: > { %p3920_p8 = scmp.ge.u32.totalorder %s4977_s25, 8 }
 0x11d   : > { %s4861_s21 = smov (!%p3920_p8), 1  }
 0x11e   : > { %180 = sbr.rel (%p3920_p8) target bundleno = 319 (0x13f), region = 40  ;;  %s181_s22 = sshll.u32 (!%p3920_p8), %s4861_s21, %s4977_s25 }
 0x11f   : > { %s5642_s6 = sadd.s32 (!%p3920_p8), 4294967295, %s181_s22 }
 0x123   : > { %v191_v61 = vld [vmem:[%s4975_s4] sm:%s5642_s6] }
 0x124   : > { %v193_v62 = vld [vmem:[%s4975_s4 + $0x40] sm:%s5642_s6]  ;;  %192 = vst [vmem:[%s4979_s5] sm:%s5642_s6] %v191_v61 }
 0x125   : > { %v195_v63 = vld [vmem:[%s4975_s4 + $0x80] sm:%s5642_s6]  ;;  %194 = vst [vmem:[%s4979_s5 + $0x38] sm:%s5642_s6] %v193_v62 }
 0x126   : > { %v197_v0 = vld [vmem:[%s4975_s4 + $0xc0] sm:%s5642_s6]  ;;  %196 = vst [vmem:[%s4979_s5 + $0x70] sm:%s5642_s6] %v195_v63 }
 0x127   : > { %v199_v1 = vld [vmem:[%s4975_s4 + $0x100] sm:%s5642_s6]  ;;  %198 = vst [vmem:[%s4979_s5 + $0xa8] sm:%s5642_s6] %v197_v0 }
 0x128   : > { %v201_v2 = vld [vmem:[%s4975_s4 + $0x140] sm:%s5642_s6]  ;;  %200 = vst [vmem:[%s4979_s5 + $0xe0] sm:%s5642_s6] %v199_v1 }
 0x129   : > { %v203_v3 = vld [vmem:[%s4975_s4 + $0x180] sm:%s5642_s6]  ;;  %202 = vst [vmem:[%s4979_s5 + $0x118] sm:%s5642_s6] %v201_v2 }
 0x12a   : > { %v205_v4 = vld [vmem:[%s4975_s4 + $0x1c0] sm:%s5642_s6]  ;;  %204 = vst [vmem:[%s4979_s5 + $0x150] sm:%s5642_s6] %v203_v3 }
 0x12b   : > { %v207_v5 = vld [vmem:[%s4975_s4 + $0x200] sm:%s5642_s6]  ;;  %206 = vst [vmem:[%s4979_s5 + $0x188] sm:%s5642_s6] %v205_v4 }
 0x12c   : > { %v209_v6 = vld [vmem:[%s4975_s4 + $0x240] sm:%s5642_s6]  ;;  %208 = vst [vmem:[%s4979_s5 + $0x1c0] sm:%s5642_s6] %v207_v5 }
 0x12d   : > { %v211_v7 = vld [vmem:[%s4975_s4 + $0x280] sm:%s5642_s6]  ;;  %210 = vst [vmem:[%s4979_s5 + $0x1f8] sm:%s5642_s6] %v209_v6 }
 0x12e   : > { %v213_v8 = vld [vmem:[%s4975_s4 + $0x2c0] sm:%s5642_s6]  ;;  %212 = vst [vmem:[%s4979_s5 + $0x230] sm:%s5642_s6] %v211_v7 }
 0x12f   : > { %v215_v9 = vld [vmem:[%s4975_s4 + $0x300] sm:%s5642_s6]  ;;  %214 = vst [vmem:[%s4979_s5 + $0x268] sm:%s5642_s6] %v213_v8 }
 0x130   : > { %v217_v10 = vld [vmem:[%s4975_s4 + $0x340] sm:%s5642_s6]  ;;  %216 = vst [vmem:[%s4979_s5 + $0x2a0] sm:%s5642_s6] %v215_v9 }
 0x131   : > { %v219_v11 = vld [vmem:[%s4975_s4 + $0x380] sm:%s5642_s6]  ;;  %218 = vst [vmem:[%s4979_s5 + $0x2d8] sm:%s5642_s6] %v217_v10 }
 0x132   : > { %v221_v12 = vld [vmem:[%s4975_s4 + $0x3c0] sm:%s5642_s6]  ;;  %220 = vst [vmem:[%s4979_s5 + $0x310] sm:%s5642_s6] %v219_v11 }
 0x133   : > { %v223_v13 = vld [vmem:[%s4975_s4 + $0x400] sm:%s5642_s6]  ;;  %222 = vst [vmem:[%s4979_s5 + $0x348] sm:%s5642_s6] %v221_v12 }
 0x134   : > { %v225_v14 = vld [vmem:[%s4975_s4 + $0x440] sm:%s5642_s6]  ;;  %224 = vst [vmem:[%s4979_s5 + $0x380] sm:%s5642_s6] %v223_v13 }
 0x135   : > { %v227_v15 = vld [vmem:[%s4975_s4 + $0x480] sm:%s5642_s6]  ;;  %226 = vst [vmem:[%s4979_s5 + $0x3b8] sm:%s5642_s6] %v225_v14 }
 0x136   : > { %v229_v16 = vld [vmem:[%s4975_s4 + $0x4c0] sm:%s5642_s6]  ;;  %228 = vst [vmem:[%s4979_s5 + $0x3f0] sm:%s5642_s6] %v227_v15 }
 0x137   : > { %v231_v17 = vld [vmem:[%s4975_s4 + $0x500] sm:%s5642_s6]  ;;  %230 = vst [vmem:[%s4979_s5 + $0x428] sm:%s5642_s6] %v229_v16 }
 0x138   : > { %v233_v18 = vld [vmem:[%s4975_s4 + $0x540] sm:%s5642_s6]  ;;  %232 = vst [vmem:[%s4979_s5 + $0x460] sm:%s5642_s6] %v231_v17 }
 0x139   : > { %v235_v19 = vld [vmem:[%s4975_s4 + $0x580] sm:%s5642_s6]  ;;  %234 = vst [vmem:[%s4979_s5 + $0x498] sm:%s5642_s6] %v233_v18 }
 0x13a   : > { %v237_v20 = vld [vmem:[%s4975_s4 + $0x5c0] sm:%s5642_s6]  ;;  %236 = vst [vmem:[%s4979_s5 + $0x4d0] sm:%s5642_s6] %v235_v19 }
 0x13b   : > { %v239_v21 = vld [vmem:[%s4975_s4 + $0x600] sm:%s5642_s6]  ;;  %238 = vst [vmem:[%s4979_s5 + $0x508] sm:%s5642_s6] %v237_v20 }
 0x13c   : > { %v241_v22 = vld [vmem:[%s4975_s4 + $0x640] sm:%s5642_s6]  ;;  %240 = vst [vmem:[%s4979_s5 + $0x540] sm:%s5642_s6] %v239_v21 }
 0x13d   : > { %v243_v23 = vld [vmem:[%s4975_s4 + $0x680] sm:%s5642_s6]  ;;  %242 = vst [vmem:[%s4979_s5 + $0x578] sm:%s5642_s6] %v241_v22 }
 0x13e   : > { %244 = vst [vmem:[%s4979_s5 + $0x5b0] sm:%s5642_s6] %v243_v23 }
 0x13f PF: > { %734 = sbr.rel (%p4948_p9) target bundleno = 1148 (0x47c), region = 94 }
 0x144   : > { %4700 = dma.done.wait (%p4952_p11), [#allocation4], 16  }
 0x145   : > { %4702 = vsyncadd (%p4952_p11), [#allocation4], 4294967280  ;;  %s742_s25 = sand.u32 1, %s4705_s14  }
 0x146   : > { %s5759_s9 = smul.u32 1512, %s742_s25 }
 0x148   : > { %s5762_s4 = scalar_lea.vmem [#allocation5], %s5759_s9 }
 0x149   : > { %748 = sfence }
 0x14a   : > { %v776_v24 = vld [vmem:[%s5762_s4 + $0x8] sm:$0xff]  ;;  %v777_v25 = vld [vmem:[%s5762_s4 + $0x10] sm:$0xff]  ;;  %v778_v26 = vld [vmem:[%s5762_s4 + $0x18] sm:$0xff]  ;;  %vm965_vm0 = vcmask 1045504   ;;  %s6194_s14 = sld [smem:[#allocation3]]  ;;  %vm1658_vm1 = vcmask 1044484  }
 0x14b   : > { %v779_v27 = vld [vmem:[%s5762_s4 + $0x20] sm:$0xff]  ;;  %v780_v28 = vld [vmem:[%s5762_s4 + $0x28] sm:$0xff]  ;;  %v785_v32 = vld [vmem:[%s5762_s4 + $0x50] sm:$0xff]  ;;  %s6197_s29 = sld [smem:[#allocation2]]  ;;  %vm1660_vm2 = vcmask 1045509   ;;  %vm1662_vm3 = vcmask 1046534  }
 0x14c   : > { %v775_v29 = vld [vmem:[%s5762_s4] sm:$0xff]  ;;  %v784_v31 = vld [vmem:[%s5762_s4 + $0x48] sm:$0xff]  ;;  %v782_v33 = vld [vmem:[%s5762_s4 + $0x38] sm:$0xff]  ;;  %v992_v44 = vadd.f32 %v785_v32, %v778_v26  ;;  %vm1664_vm4 = vcmask 1047559   ;;  %vm1690_vm5 = vcmask 1041409   ;;  %vm8386_vm6 = vcmask 1042434  }
 0x14d   : > { %v783_v30 = vld [vmem:[%s5762_s4 + $0x40] sm:$0xff]  ;;  %v786_v34 = vld [vmem:[%s5762_s4 + $0x58] sm:$0xff]  ;;  %v792_v38 = vld [vmem:[%s5762_s4 + $0x88] sm:$0x3f]  ;;  %v983_v43 = vadd.f32 %v784_v31, %v777_v25  ;;  %v964_v50 = vadd.f32 %v782_v33, %v775_v29  ;;  %vm8389_vm7 = vcmask 1043459   ;;  %vm1728_vm8 = vcmask 1042432  }
 0x14e   : > { %v787_v35 = vld [vmem:[%s5762_s4 + $0x60] sm:$0xff]  ;;  %v790_v36 = vld [vmem:[%s5762_s4 + $0x78] sm:$0x3f]  ;;  %v781_v39 = vld [vmem:[%s5762_s4 + $0x30] sm:$0xff]  ;;  %v974_v42 = vadd.f32 %v783_v30, %v776_v24  ;;  %v1001_v47 = vadd.f32 %v786_v34, %v779_v27  ;;  %v993_v53 = vsel %vm965_vm0, %v792_v38, 0.0  ;;  %s6378_s30 = sld [smem:[#allocation3 + $0x1]] }
 0x14f   : > { %v791_v37 = vld [vmem:[%s5762_s4 + $0x80] sm:$0x3f]  ;;  %v788_v40 = vld [vmem:[%s5762_s4 + $0x68] sm:$0xff]  ;;  %v789_v41 = vld [vmem:[%s5762_s4 + $0x70] sm:$0x3f]  ;;  %v1010_v48 = vadd.f32 %v787_v35, %v780_v28  ;;  %v975_v51 = vsel %vm965_vm0, %v790_v36, 0.0  ;;  %v994_v59 = vadd.f32 %v993_v53, %v992_v44 }
 0x150   : > { %v793_v45 = vld [vmem:[%s5762_s4 + $0x90] sm:$0x3f]  ;;  %v794_v46 = vld [vmem:[%s5762_s4 + $0x98] sm:$0x3f]  ;;  %v795_v49 = vld [vmem:[%s5762_s4 + $0xa0] sm:$0x3f]  ;;  %v976_v55 = vadd.f32 %v975_v51, %v974_v42  ;;  %v1019_v57 = vadd.f32 %v788_v40, %v781_v39 }
 0x151   : > { %v984_v52 = vsel %vm965_vm0, %v791_v37, 0.0  ;;  %v966_v54 = vsel %vm965_vm0, %v789_v41, 0.0  ;;  %v1002_v60 = vsel %vm965_vm0, %v793_v45, 0.0  ;;  %v1011_v61 = vsel %vm965_vm0, %v794_v46, 0.0  ;;  %v796_v2 = vld [vmem:[%s5762_s4 + $0xa8] sm:$0xff]  ;;  %v803_v3 = vld [vmem:[%s5762_s4 + $0xe0] sm:$0xff] }
 0x152   : > { %v985_v56 = vadd.f32 %v984_v52, %v983_v43  ;;  %v967_v58 = vadd.f32 %v966_v54, %v964_v50  ;;  %v977_v62 = vrot.slane %v976_v55, 4  ;;  %v1003_v0 = vadd.f32 %v1002_v60, %v1001_v47  ;;  %v810_v6 = vld [vmem:[%s5762_s4 + $0x118] sm:$0x3f]  ;;  %v797_v11 = vld [vmem:[%s5762_s4 + $0xb0] sm:$0xff]  ;;  %v799_v14 = vld [vmem:[%s5762_s4 + $0xc0] sm:$0xff]  ;;  %s6480_s5 = sld [smem:[#allocation3 + $0x2]] }
 0x153   : > { %v1020_v1 = vsel %vm965_vm0, %v795_v49, 0.0  ;;  %v1012_v5 = vadd.f32 %v1011_v61, %v1010_v48  ;;  %v995_v8 = vrot.slane %v994_v59, 4  ;;  %v798_v12 = vld [vmem:[%s5762_s4 + $0xb8] sm:$0xff]  ;;  %v800_v15 = vld [vmem:[%s5762_s4 + $0xc8] sm:$0xff]  ;;  %v1028_v19 = vadd.f32 %v803_v3, %v796_v2  ;;  %v801_v20 = vld [vmem:[%s5762_s4 + $0xd0] sm:$0xff]  ;;  %s6482_s1 = sld [smem:[#allocation3 + $0x3]] }
 0x154   : > { %v986_v63 = vrot.slane %v985_v56, 4  ;;  %v978_v4 = vadd.f32 %v977_v62, %v976_v55  ;;  %v968_v7 = vrot.slane %v967_v58, 4  ;;  %v1004_v9 = vrot.slane %v1003_v0, 4  ;;  %v804_v16 = vld [vmem:[%s5762_s4 + $0xe8] sm:$0xff]  ;;  %v802_v21 = vld [vmem:[%s5762_s4 + $0xd8] sm:$0xff]  ;;  %v805_v22 = vld [vmem:[%s5762_s4 + $0xf0] sm:$0xff] }
 0x155   : > { %v1021_v10 = vadd.f32 %v1020_v1, %v1019_v57  ;;  %v996_v18 = vadd.f32 %v995_v8, %v994_v59  ;;  %v806_v23 = vld [vmem:[%s5762_s4 + $0xf8] sm:$0xff]  ;;  %v1013_v25 = vrot.slane %v1012_v5, 4  ;;  %v1029_v26 = vsel %vm965_vm0, %v810_v6, 0.0  ;;  %v807_v27 = vld [vmem:[%s5762_s4 + $0x100] sm:$0xff]  ;;  %v808_v28 = vld [vmem:[%s5762_s4 + $0x108] sm:$0xff]  ;;  %s6503_s27 = sld [smem:[#allocation3 + $0x4]] }
 0x156   : > { %v987_v13 = vadd.f32 %v986_v63, %v985_v56  ;;  %v969_v17 = vadd.f32 %v968_v7, %v967_v58  ;;  %v979_v24 = vrot.slane %v978_v4, 2  ;;  %v809_v29 = vld [vmem:[%s5762_s4 + $0x110] sm:$0xff]  ;;  %v1005_v30 = vadd.f32 %v1004_v9, %v1003_v0  ;;  %v818_v33 = vld [vmem:[%s5762_s4 + $0x158] sm:$0xff]  ;;  %v819_v34 = vld [vmem:[%s5762_s4 + $0x160] sm:$0xff]  ;;  %s6597_s13 = sld [smem:[#allocation3 + $0x5]]  ;;  %s6834_s2 = scalar_lea.vmem [#allocation6], %s5759_s9  }
 0x157   : > { %v1022_v31 = vrot.slane %v1021_v10, 4  ;;  %v817_v32 = vld [vmem:[%s5762_s4 + $0x150] sm:$0xff]  ;;  %v1037_v36 = vadd.f32 %v804_v16, %v797_v11  ;;  %v824_v37 = vld [vmem:[%s5762_s4 + $0x188] sm:$0xff]  ;;  %v826_v39 = vld [vmem:[%s5762_s4 + $0x198] sm:$0xff]  ;;  %v997_v41 = vrot.slane %v996_v18, 2  ;;  %v1030_v42 = vadd.f32 %v1029_v26, %v1028_v19  ;;  %s6622_s0 = sld [smem:[#allocation3 + $0x6]] }
 0x158   : > { %v988_v35 = vrot.slane %v987_v13, 2  ;;  %v825_v38 = vld [vmem:[%s5762_s4 + $0x190] sm:$0xff]  ;;  %v970_v40 = vrot.slane %v969_v17, 2  ;;  %v1046_v43 = vadd.f32 %v805_v22, %v798_v12  ;;  %v820_v44 = vld [vmem:[%s5762_s4 + $0x168] sm:$0xff]  ;;  %v827_v45 = vld [vmem:[%s5762_s4 + $0x1a0] sm:$0xff]  ;;  %v980_v46 = vadd.f32 %v979_v24, %v978_v4  ;;  %s3064_s23 = smul.u32 (%p4941_p7), 7, %s4713_s16 }
 0x159   : > { %v1014_v47 = vadd.f32 %v1013_v25, %v1012_v5  ;;  %v1055_v48 = vadd.f32 %v806_v23, %v799_v14  ;;  %v5816_v49 = vadd.f32 %v807_v27, %v800_v15  ;;  %v811_v50 = vld [vmem:[%s5762_s4 + $0x120] sm:$0x3f]  ;;  %v821_v51 = vld [vmem:[%s5762_s4 + $0x170] sm:$0xff]  ;;  %v828_v52 = vld [vmem:[%s5762_s4 + $0x1a8] sm:$0xff]  ;;  %v1006_v53 = vrot.slane %v1005_v30, 2  ;;  %s3969_s12 = smul.u32 (%p4941_p7), 216, %s4717_s17 }
 0x15a   : > { %v1023_v54 = vadd.f32 %v1022_v31, %v1021_v10  ;;  %v1073_v55 = vadd.f32 %v808_v28, %v801_v20  ;;  %v5821_v56 = vadd.f32 %v809_v29, %v802_v21  ;;  %v822_v57 = vld [vmem:[%s5762_s4 + $0x178] sm:$0xff]  ;;  %v823_v58 = vld [vmem:[%s5762_s4 + $0x180] sm:$0xff]  ;;  %v829_v59 = vld [vmem:[%s5762_s4 + $0x1b0] sm:$0xff]  ;;  %v989_v60 = vadd.f32 %v988_v35, %v987_v13  ;;  %s3065_s10 = ssub.s32 (%p4941_p7), 8, %s3064_s23 }
 0x15b   : > { %v5826_v61 = vadd.f32 %v824_v37, %v817_v32  ;;  %v5828_v62 = vadd.f32 %v825_v38, %v818_v33  ;;  %v5830_v63 = vadd.f32 %v826_v39, %v819_v34  ;;  %v830_v0 = vld [vmem:[%s5762_s4 + $0x1b8] sm:$0xff]  ;;  %v845_v2 = vld [vmem:[%s5762_s4 + $0x230] sm:$0xff]  ;;  %v971_v3 = vadd.f32 %v970_v40, %v969_v17  ;;  %v839_v7 = vld [vmem:[%s5762_s4 + $0x200] sm:$0xff]  ;;  %p3066_p9 = scmp.lt.s32.totalorder (%p4941_p7), %s3065_s10, 7  ;;  %s3071_s8 = sadd.s32 (%p4941_p7), %s3969_s12, %s3064_s23 }
 0x15c   : > { %v838_v1 = vld [vmem:[%s5762_s4 + $0x1f8] sm:$0xff]  ;;  %v998_v4 = vadd.f32 %v997_v41, %v996_v18  ;;  %v1031_v5 = vrot.slane %v1030_v42, 4  ;;  %v5835_v6 = vadd.f32 %v827_v45, %v820_v44  ;;  %v981_v9 = vrot.slane %v980_v46, 1  ;;  %v812_v13 = vld [vmem:[%s5762_s4 + $0x128] sm:$0x3f]  ;;  %v841_v34 = vld [vmem:[%s5762_s4 + $0x210] sm:$0xff] }
 0x15d   : > { %v846_v8 = vld [vmem:[%s5762_s4 + $0x238] sm:$0xff]  ;;  %v1015_v10 = vrot.slane %v1014_v47, 2  ;;  %v1038_v11 = vsel %vm965_vm0, %v811_v50, 0.0  ;;  %v5840_v12 = vadd.f32 %v828_v52, %v821_v51  ;;  %v813_v14 = vld [vmem:[%s5762_s4 + $0x130] sm:$0x3f]  ;;  %v1007_v15 = vadd.f32 %v1006_v53, %v1005_v30  ;;  %v840_v33 = vld [vmem:[%s5762_s4 + $0x208] sm:$0xff] }
 0x15e   : > { %v1024_v16 = vrot.slane %v1023_v54, 2  ;;  %v1032_v19 = vadd.f32 %v1031_v5, %v1030_v42  ;;  %v1039_v17 = vadd.f32 %v1038_v11, %v1037_v36  ;;  %v814_v18 = vld [vmem:[%s5762_s4 + $0x138] sm:$0x3f]  ;;  %v990_v20 = vrot.slane %v989_v60, 1  ;;  %v815_v24 = vld [vmem:[%s5762_s4 + $0x140] sm:$0x3f] }
 0x15f   : > { %v5845_v21 = vadd.f32 %v829_v59, %v822_v57  ;;  %v5847_v22 = vadd.f32 %v830_v0, %v823_v58  ;;  %v5849_v23 = vadd.f32 %v845_v2, %v838_v1  ;;  %v972_v25 = vrot.slane %v971_v3, 1  ;;  %v847_v35 = vld [vmem:[%s5762_s4 + $0x240] sm:$0xff]  ;;  %v842_v40 = vld [vmem:[%s5762_s4 + $0x218] sm:$0xff]  ;;  %v848_v41 = vld [vmem:[%s5762_s4 + $0x248] sm:$0xff]  ;;  %s3931_s24 = sshll.u32 (%p4941_p7), %s3071_s8, 3 }
 0x160   : > { %v999_v26 = vrot.slane %v998_v4, 1  ;;  %v1033_v27 = vrot.slane %v1032_v19, 2  ;;  %v5852_v28 = vadd.f32 %v846_v8, %v839_v7  ;;  %v5854_v29 = vadd.f32 %v981_v9, %v980_v46  ;;  %v849_v42 = vld [vmem:[%s5762_s4 + $0x250] sm:$0xff]  ;;  %v831_v59 = vld [vmem:[%s5762_s4 + $0x1c0] sm:$0x3f]  ;;  %v850_v8 = vld [vmem:[%s5762_s4 + $0x258] sm:$0xff]  ;;  %s7584_s21 = scalar_lea.vmem (%p4941_p7), %s8383_s3, %s3931_s24  }
 0x161   : > { %v1040_v30 = vrot.slane %v1039_v17, 4  ;;  %v1047_v31 = vsel %vm965_vm0, %v812_v13, 0.0  ;;  %v1056_v32 = vsel %vm965_vm0, %v813_v14, 0.0  ;;  %v1008_v36 = vrot.slane %v1007_v15, 1  ;;  %v832_v2 = vld [vmem:[%s5762_s4 + $0x1c8] sm:$0x3f] }
 0x162   : > { %v1016_v37 = vadd.f32 %v1015_v10, %v1014_v47  ;;  %v1025_v38 = vadd.f32 %v1024_v16, %v1023_v54  ;;  %v1048_v39 = vadd.f32 %v1047_v31, %v1046_v43  ;;  %v1057_v45 = vadd.f32 %v1056_v32, %v1055_v48  ;;  %v816_v47 = vld [vmem:[%s5762_s4 + $0x148] sm:$0x3f]  ;;  %v843_v7 = vld [vmem:[%s5762_s4 + $0x220] sm:$0xff] }
 0x163   : > { %v1041_v44 = vadd.f32 %v1040_v30, %v1039_v17  ;;  %v1065_v46 = vsel %vm965_vm0, %v814_v18, 0.0  ;;  %v1074_v50 = vsel %vm965_vm0, %v815_v24, 0.0  ;;  %v1034_v51 = vadd.f32 %v1033_v27, %v1032_v19  ;;  %v844_v14 = vld [vmem:[%s5762_s4 + $0x228] sm:$0xff]  ;;  %v859_v16 = vld [vmem:[%s5762_s4 + $0x2a0] sm:$0xff] }
 0x164   : > { %v1049_v52 = vrot.slane %v1048_v39, 4  ;;  %v1066_v53 = vadd.f32 %v1065_v46, %v5816_v49  ;;  %v1075_v57 = vadd.f32 %v1074_v50, %v1073_v55  ;;  %v5868_v43 = vadd.f32 %v972_v25, %v971_v3  ;;  %v860_v24 = vld [vmem:[%s5762_s4 + $0x2a8] sm:$0xff]  ;;  %v866_v25 = vld [vmem:[%s5762_s4 + $0x2d8] sm:$0xff]  ;;  %v869_v50 = vld [vmem:[%s5762_s4 + $0x2f0] sm:$0xff] }
 0x165   : > { %v5870_v54 = vadd.f32 %v990_v20, %v989_v60  ;;  %v5872_v58 = vadd.f32 %v999_v26, %v998_v4  ;;  %v5874_v48 = vadd.f32 %v847_v35, %v840_v33  ;;  %v5877_v0 = vadd.f32 %v1008_v36, %v1007_v15  ;;  %v851_v15 = vld [vmem:[%s5762_s4 + $0x260] sm:$0xff]  ;;  %v862_v46 = vld [vmem:[%s5762_s4 + $0x2b8] sm:$0xff] }
 0x166   : > { %v1050_v1 = vadd.f32 %v1049_v52, %v1048_v39  ;;  %v5879_v49 = vadd.f32 %v848_v41, %v841_v34  ;;  %v5881_v55 = vadd.f32 %v849_v42, %v842_v40  ;;  %v1017_v3 = vrot.slane %v1016_v37, 1  ;;  %v867_v26 = vld [vmem:[%s5762_s4 + $0x2e0] sm:$0xff]  ;;  %v833_v39 = vld [vmem:[%s5762_s4 + $0x1d0] sm:$0x3f]  ;;  %v868_v41 = vld [vmem:[%s5762_s4 + $0x2e8] sm:$0xff] }
 0x167   : > { %v1042_v5 = vrot.slane %v1041_v44, 2  ;;  %v1058_v60 = vrot.slane %v1057_v45, 4  ;;  %v1067_v4 = vrot.slane %v1066_v53, 4  ;;  %v1026_v9 = vrot.slane %v1025_v38, 1  ;;  %v861_v40 = vld [vmem:[%s5762_s4 + $0x2b0] sm:$0xff] }
 0x168   : > { %v1035_v10 = vrot.slane %v1034_v51, 1  ;;  %v1076_v11 = vrot.slane %v1075_v57, 4  ;;  %v1083_v13 = vsel %vm965_vm0, %v816_v47, 0.0  ;;  %v1051_v17 = vrot.slane %v1050_v1, 2 }
 0x169   : > { %v1043_v19 = vadd.f32 %v1042_v5, %v1041_v44  ;;  %v1059_v18 = vadd.f32 %v1058_v60, %v1057_v45  ;;  %v1068_v20 = vadd.f32 %v1067_v4, %v1066_v53  ;;  %v1084_v30 = vadd.f32 %v1083_v13, %v5821_v56 }
 0x16a   : > { %v1077_v27 = vadd.f32 %v1076_v11, %v1075_v57  ;;  %v1092_v31 = vsel %vm965_vm0, %v831_v59, 0.0  ;;  %v1101_v32 = vsel %vm965_vm0, %v832_v2, 0.0  ;;  %v5898_v36 = vadd.f32 %v850_v8, %v843_v7  ;;  %v834_v59 = vld [vmem:[%s5762_s4 + $0x1d8] sm:$0x3f]  ;;  %v835_v8 = vld [vmem:[%s5762_s4 + $0x1e0] sm:$0x3f] }
 0x16b   : > { %v1060_v33 = vrot.slane %v1059_v18, 2  ;;  %v1093_v34 = vadd.f32 %v1092_v31, %v5826_v61  ;;  %v1102_v35 = vadd.f32 %v1101_v32, %v5828_v62  ;;  %v5903_v42 = vadd.f32 %v1017_v3, %v1016_v37 }
 0x16c   : > { %v5905_v44 = vadd.f32 %v1026_v9, %v1025_v38  ;;  %v5907_v56 = vadd.f32 %v1035_v10, %v1034_v51  ;;  %v5909_v45 = vadd.f32 %v851_v15, %v844_v14  ;;  %v1044_v52 = vrot.slane %v1043_v19, 1  ;;  %v863_v9 = vld [vmem:[%s5762_s4 + $0x2c0] sm:$0xff]  ;;  %v870_v10 = vld [vmem:[%s5762_s4 + $0x2f8] sm:$0xff] }
 0x16d   : > { %v1052_v61 = vadd.f32 %v1051_v17, %v1050_v1  ;;  %v5913_v62 = vadd.f32 %v866_v25, %v859_v16  ;;  %v5915_v53 = vadd.f32 %v867_v26, %v860_v24  ;;  %v1061_v57 = vadd.f32 %v1060_v33, %v1059_v18  ;;  %v836_v16 = vld [vmem:[%s5762_s4 + $0x1e8] sm:$0x3f]  ;;  %v837_v25 = vld [vmem:[%s5762_s4 + $0x1f0] sm:$0x3f] }
 0x16e   : > { %v1069_v37 = vrot.slane %v1068_v20, 2  ;;  %v1078_v47 = vrot.slane %v1077_v27, 2  ;;  %v1085_v38 = vrot.slane %v1084_v30, 4  ;;  %v1094_v51 = vrot.slane %v1093_v34, 4 }
 0x16f   : > { %v1103_v2 = vrot.slane %v1102_v35, 4  ;;  %v1110_v3 = vsel %vm965_vm0, %v833_v39, 0.0  ;;  %v5919_v5 = vadd.f32 %v868_v41, %v861_v40  ;;  %v5921_v7 = vadd.f32 %v869_v50, %v862_v46 }
 0x170   : > { %v1070_v1 = vadd.f32 %v1069_v37, %v1068_v20  ;;  %v1079_v60 = vadd.f32 %v1078_v47, %v1077_v27  ;;  %v1086_v4 = vadd.f32 %v1085_v38, %v1084_v30  ;;  %v5926_v11 = vadd.f32 %v1044_v52, %v1043_v19  ;;  %v852_v52 = vld [vmem:[%s5762_s4 + $0x268] sm:$0x3f] }
 0x171   : > { %v1095_v13 = vadd.f32 %v1094_v51, %v1093_v34  ;;  %v1104_v14 = vadd.f32 %v1103_v2, %v1102_v35  ;;  %v1111_v15 = vadd.f32 %v1110_v3, %v5830_v63  ;;  %v1053_v17 = vrot.slane %v1052_v61, 1  ;;  %v853_v51 = vld [vmem:[%s5762_s4 + $0x270] sm:$0x3f] }
 0x172   : > { %v1062_v18 = vrot.slane %v1061_v57, 1  ;;  %v1087_v24 = vrot.slane %v1086_v4, 2  ;;  %v1119_v20 = vsel %vm965_vm0, %v834_v59, 0.0  ;;  %v1071_v26 = vrot.slane %v1070_v1, 1 }
 0x173   : > { %v1096_v27 = vrot.slane %v1095_v13, 2  ;;  %v1112_v30 = vrot.slane %v1111_v15, 4  ;;  %v1120_v31 = vadd.f32 %v1119_v20, %v5835_v6  ;;  %v1080_v32 = vrot.slane %v1079_v60, 1 }
 0x174   : > { %v1105_v19 = vrot.slane %v1104_v14, 2  ;;  %v1128_v33 = vsel %vm965_vm0, %v835_v8, 0.0  ;;  %v5934_v34 = vadd.f32 %v870_v10, %v863_v9  ;;  %v1088_v63 = vadd.f32 %v1087_v24, %v1086_v4 }
 0x175   : > { %v1097_v35 = vadd.f32 %v1096_v27, %v1095_v13  ;;  %v1113_v39 = vadd.f32 %v1112_v30, %v1111_v15  ;;  %v1121_v40 = vrot.slane %v1120_v31, 4  ;;  %v5936_v41 = vadd.f32 %v1053_v17, %v1052_v61  ;;  %v854_v13 = vld [vmem:[%s5762_s4 + $0x278] sm:$0x3f] }
 0x176   : > { %v1129_v46 = vadd.f32 %v1128_v33, %v5840_v12  ;;  %v1137_v50 = vsel %vm965_vm0, %v836_v16, 0.0  ;;  %v1146_v6 = vsel %vm965_vm0, %v837_v25, 0.0  ;;  %v5942_v37 = vadd.f32 %v1062_v18, %v1061_v57 }
 0x177   : > { %v5944_v47 = vadd.f32 %v1071_v26, %v1070_v1  ;;  %v1114_v38 = vrot.slane %v1113_v39, 2  ;;  %v1122_v59 = vadd.f32 %v1121_v40, %v1120_v31  ;;  %v5947_v2 = vadd.f32 %v1080_v32, %v1079_v60  ;;  %v856_v32 = vld [vmem:[%s5762_s4 + $0x288] sm:$0x3f] }
 0x178   : > { %v1130_v3 = vrot.slane %v1129_v46, 4  ;;  %v1138_v61 = vadd.f32 %v1137_v50, %v5845_v21  ;;  %v1147_v12 = vadd.f32 %v1146_v6, %v5847_v22  ;;  %v1089_v4 = vrot.slane %v1088_v63, 1  ;;  %v855_v21 = vld [vmem:[%s5762_s4 + $0x280] sm:$0x3f] }
 0x179   : > { %v1098_v8 = vrot.slane %v1097_v35, 1  ;;  %v1106_v9 = vadd.f32 %v1105_v19, %v1104_v14  ;;  %v1123_v10 = vrot.slane %v1122_v59, 2  ;;  %v1155_v16 = vsel %vm965_vm0, %v852_v52, 0.0 }
 0x17a   : > { %v1131_v57 = vadd.f32 %v1130_v3, %v1129_v46  ;;  %v1139_v15 = vrot.slane %v1138_v61, 4  ;;  %v1148_v1 = vrot.slane %v1147_v12, 4  ;;  %v1115_v17 = vadd.f32 %v1114_v38, %v1113_v39 }
 0x17b   : > { %v1124_v60 = vadd.f32 %v1123_v10, %v1122_v59  ;;  %v1156_v18 = vadd.f32 %v1155_v16, %v5849_v23  ;;  %v1164_v24 = vsel %vm965_vm0, %v853_v51, 0.0  ;;  %v5957_v26 = vadd.f32 %v1089_v4, %v1088_v63  ;;  %v857_v59 = vld [vmem:[%s5762_s4 + $0x290] sm:$0x3f] }
 0x17c   : > { %v1132_v20 = vrot.slane %v1131_v57, 2  ;;  %v1140_v22 = vadd.f32 %v1139_v15, %v1138_v61  ;;  %v1149_v25 = vadd.f32 %v1148_v1, %v1147_v12  ;;  %v1165_v14 = vadd.f32 %v1164_v24, %v5852_v28  ;;  %v873_v15 = vld [vmem:[%s5762_s4 + $0x310] sm:$0x3f] }
 0x17d   : > { %v1107_v27 = vrot.slane %v1106_v9, 1  ;;  %v1157_v30 = vrot.slane %v1156_v18, 4  ;;  %v1173_v31 = vsel %vm965_vm0, %v854_v13, 0.0  ;;  %v1116_v40 = vrot.slane %v1115_v17, 1 }
 0x17e   : > { %v1133_v19 = vadd.f32 %v1132_v20, %v1131_v57  ;;  %v1141_v33 = vrot.slane %v1140_v22, 2  ;;  %v1150_v39 = vrot.slane %v1149_v25, 2  ;;  %v1166_v23 = vrot.slane %v1165_v14, 4  ;;  %v858_v57 = vld [vmem:[%s5762_s4 + $0x298] sm:$0x3f] }
 0x17f   : > { %v1158_v46 = vadd.f32 %v1157_v30, %v1156_v18  ;;  %v1174_v50 = vadd.f32 %v1173_v31, %v5874_v48  ;;  %v1182_v28 = vsel %vm965_vm0, %v855_v21, 0.0  ;;  %v1125_v63 = vrot.slane %v1124_v60, 1 }
 0x180   : > { %v1142_v6 = vadd.f32 %v1141_v33, %v1140_v22  ;;  %v1151_v52 = vadd.f32 %v1150_v39, %v1149_v25  ;;  %v1167_v38 = vadd.f32 %v1166_v23, %v1165_v14  ;;  %v1183_v61 = vadd.f32 %v1182_v28, %v5879_v49  ;;  %v874_v14 = vld [vmem:[%s5762_s4 + $0x318] sm:$0x3f]  ;;  %v875_v39 = vld [vmem:[%s5762_s4 + $0x320] sm:$0x3f] }
 0x181   : > { %v1159_v51 = vrot.slane %v1158_v46, 2  ;;  %v1175_v3 = vrot.slane %v1174_v50, 4  ;;  %v1191_v12 = vsel %vm965_vm0, %v856_v32, 0.0  ;;  %v5966_v4 = vadd.f32 %v1098_v8, %v1097_v35 }
 0x182   : > { %v5968_v10 = vadd.f32 %v1107_v27, %v1106_v9  ;;  %v1134_v13 = vrot.slane %v1133_v19, 1  ;;  %v1143_v48 = vrot.slane %v1142_v6, 1  ;;  %v1168_v1 = vrot.slane %v1167_v38, 2 }
 0x183   : > { %v1176_v16 = vadd.f32 %v1175_v3, %v1174_v50  ;;  %v1184_v18 = vrot.slane %v1183_v61, 4  ;;  %v1192_v24 = vadd.f32 %v1191_v12, %v5881_v55  ;;  %v5973_v21 = vadd.f32 %v1116_v40, %v1115_v17 }
 0x184   : > { %v5975_v20 = vadd.f32 %v1125_v63, %v1124_v60  ;;  %v1152_v49 = vrot.slane %v1151_v52, 1  ;;  %v1200_v35 = vsel %vm965_vm0, %v857_v59, 0.0  ;;  %v1160_v8 = vadd.f32 %v1159_v51, %v1158_v46  ;;  %v876_v59 = vld [vmem:[%s5762_s4 + $0x328] sm:$0x3f] }
 0x185   : > { %v1177_v9 = vrot.slane %v1176_v16, 2  ;;  %v1185_v22 = vadd.f32 %v1184_v18, %v1183_v61  ;;  %v1193_v25 = vrot.slane %v1192_v24, 4  ;;  %v5979_v27 = vadd.f32 %v1134_v13, %v1133_v19  ;;  %v877_v13 = vld [vmem:[%s5762_s4 + $0x330] sm:$0x3f] }
 0x186   : > { %v1201_v30 = vadd.f32 %v1200_v35, %v5898_v36  ;;  %v1209_v55 = vsel %vm965_vm0, %v858_v57, 0.0  ;;  %v1218_v17 = vsel %vm965_vm0, %v873_v15, 0.0  ;;  %v5984_v60 = vadd.f32 %v1143_v48, %v1142_v6 }
 0x187   : > { %v1169_v31 = vadd.f32 %v1168_v1, %v1167_v38  ;;  %v1186_v32 = vrot.slane %v1185_v22, 2  ;;  %v1194_v33 = vadd.f32 %v1193_v25, %v1192_v24  ;;  %v5987_v23 = vadd.f32 %v1152_v49, %v1151_v52  ;;  %v864_v49 = vld [vmem:[%s5762_s4 + $0x2c8] sm:$0xff] }
 0x188   : > { %v1202_v40 = vrot.slane %v1201_v30, 4  ;;  %v1210_v19 = vadd.f32 %v1209_v55, %v5909_v45  ;;  %v1219_v46 = vadd.f32 %v1218_v17, %v5913_v62  ;;  %v1161_v36 = vrot.slane %v1160_v8, 1  ;;  %v878_v17 = vld [vmem:[%s5762_s4 + $0x338] sm:$0x3f] }
 0x189   : > { %v1178_v50 = vadd.f32 %v1177_v9, %v1176_v16  ;;  %v1195_v28 = vrot.slane %v1194_v33, 2  ;;  %v1227_v63 = vsel %vm965_vm0, %v874_v14, 0.0  ;;  %v1170_v3 = vrot.slane %v1169_v31, 1 }
 0x18a   : > { %v1203_v6 = vadd.f32 %v1202_v40, %v1201_v30  ;;  %v1211_v51 = vrot.slane %v1210_v19, 4  ;;  %v1220_v38 = vrot.slane %v1219_v46, 4  ;;  %v1228_v52 = vadd.f32 %v1227_v63, %v5915_v53  ;;  %v871_v53 = vld [vmem:[%s5762_s4 + $0x300] sm:$0xff]  ;;  %v872_v63 = vld [vmem:[%s5762_s4 + $0x308] sm:$0xff] }
 0x18b   : > { %v1187_v61 = vadd.f32 %v1186_v32, %v1185_v22  ;;  %v1196_v12 = vadd.f32 %v1195_v28, %v1194_v33  ;;  %v1236_v45 = vsel %vm965_vm0, %v875_v39, 0.0  ;;  %v5996_v1 = vadd.f32 %v1161_v36, %v1160_v8  ;;  %v865_v28 = vld [vmem:[%s5762_s4 + $0x2d0] sm:$0xff] }
 0x18c   : > { %v1204_v62 = vrot.slane %v1203_v6, 2  ;;  %v1212_v48 = vadd.f32 %v1211_v51, %v1210_v19  ;;  %v1221_v57 = vadd.f32 %v1220_v38, %v1219_v46  ;;  %v1229_v15 = vrot.slane %v1228_v52, 4 }
 0x18d   : > { %v1179_v16 = vrot.slane %v1178_v50, 1  ;;  %v1237_v18 = vadd.f32 %v1236_v45, %v5919_v5  ;;  %v1245_v24 = vsel %vm965_vm0, %v876_v59, 0.0  ;;  %v1188_v14 = vrot.slane %v1187_v61, 1  ;;  %v879_v59 = vld [vmem:[%s5762_s4 + $0x340] sm:$0x3f] }
 0x18e   : > { %v1205_v35 = vadd.f32 %v1204_v62, %v1203_v6  ;;  %v1213_v9 = vrot.slane %v1212_v48, 2  ;;  %v1222_v22 = vrot.slane %v1221_v57, 2  ;;  %v1230_v25 = vadd.f32 %v1229_v15, %v1228_v52  ;;  %v880_v52 = vld [vmem:[%s5762_s4 + $0x348] sm:$0xff]  ;;  %v887_v45 = vld [vmem:[%s5762_s4 + $0x380] sm:$0xff] }
 0x18f   : > { %v1238_v30 = vrot.slane %v1237_v18, 4  ;;  %v1246_v55 = vadd.f32 %v1245_v24, %v5921_v7  ;;  %v1254_v8 = vsel %vm965_vm0, %v877_v13, 0.0  ;;  %v1197_v5 = vrot.slane %v1196_v12, 1  ;;  %v895_v24 = vld [vmem:[%s5762_s4 + $0x3c0] sm:$0x3f] }
 0x190   : > { %v1214_v32 = vadd.f32 %v1213_v9, %v1212_v48  ;;  %v1223_v33 = vadd.f32 %v1222_v22, %v1221_v57  ;;  %v1231_v39 = vrot.slane %v1230_v25, 2  ;;  %v1255_v46 = vadd.f32 %v1254_v8, %v5934_v34  ;;  %v881_v57 = vld [vmem:[%s5762_s4 + $0x350] sm:$0xff] }
 0x191   : > { %v1239_v40 = vadd.f32 %v1238_v30, %v1237_v18  ;;  %v1247_v19 = vrot.slane %v1246_v55, 4  ;;  %v1262_v36 = vadd.f32 %v871_v53, %v864_v49  ;;  %v6009_v7 = vadd.f32 %v1170_v3, %v1169_v31  ;;  %v894_v18 = vld [vmem:[%s5762_s4 + $0x3b8] sm:$0x3f] }
 0x192   : > { %v6011_v6 = vadd.f32 %v1179_v16, %v1178_v50  ;;  %v1206_v51 = vrot.slane %v1205_v35, 1  ;;  %v1232_v38 = vadd.f32 %v1231_v39, %v1230_v25  ;;  %v1256_v48 = vrot.slane %v1255_v46, 4  ;;  %v888_v16 = vld [vmem:[%s5762_s4 + $0x388] sm:$0xff] }
 0x193   : > { %v1240_v13 = vrot.slane %v1239_v40, 2  ;;  %v1248_v62 = vadd.f32 %v1247_v19, %v1246_v55  ;;  %v1263_v34 = vsel %vm965_vm0, %v878_v17, 0.0  ;;  %v6017_v15 = vadd.f32 %v1188_v14, %v1187_v61  ;;  %v882_v14 = vld [vmem:[%s5762_s4 + $0x358] sm:$0xff]  ;;  %v896_v19 = vld [vmem:[%s5762_s4 + $0x3c8] sm:$0x3f] }
 0x194   : > { %v6019_v31 = vadd.f32 %v1197_v5, %v1196_v12  ;;  %v1215_v3 = vrot.slane %v1214_v32, 1  ;;  %v1264_v50 = vadd.f32 %v1263_v34, %v1262_v36  ;;  %v1224_v49 = vrot.slane %v1223_v33, 1  ;;  %v889_v12 = vld [vmem:[%s5762_s4 + $0x390] sm:$0xff] }
 0x195   : > { %v1241_v53 = vadd.f32 %v1240_v13, %v1239_v40  ;;  %v1257_v9 = vadd.f32 %v1256_v48, %v1255_v46  ;;  %v1271_v22 = vadd.f32 %v872_v63, %v865_v28  ;;  %v6024_v25 = vadd.f32 %v1206_v51, %v1205_v35  ;;  %v897_v13 = vld [vmem:[%s5762_s4 + $0x3d0] sm:$0x3f] }
 0x196   : > { %v1265_v30 = vrot.slane %v1264_v50, 4  ;;  %v1272_v55 = vsel %vm965_vm0, %v879_v59, 0.0  ;;  %v1280_v61 = vadd.f32 %v887_v45, %v880_v52  ;;  %v1233_v8 = vrot.slane %v1232_v38, 1  ;;  %v883_v52 = vld [vmem:[%s5762_s4 + $0x360] sm:$0xff]  ;;  %v890_v45 = vld [vmem:[%s5762_s4 + $0x398] sm:$0xff] }
 0x197   : > { %8420 = vst [vmem:[#allocation10_spill] sm:$0xff] %v6024_v25  ;;  %v1242_v17 = vrot.slane %v1241_v53, 1  ;;  %v1249_v5 = vrot.slane %v1248_v62, 2  ;;  %v1273_v39 = vadd.f32 %v1272_v55, %v1271_v22  ;;  %v1281_v40 = vsel %vm965_vm0, %v894_v18, 0.0  ;;  %v891_v18 = vld [vmem:[%s5762_s4 + $0x3a0] sm:$0xff] }
 0x198   : > { %v1266_v36 = vadd.f32 %v1265_v30, %v1264_v50  ;;  %v1289_v46 = vadd.f32 %v888_v16, %v881_v57  ;;  %v1290_v35 = vsel %vm965_vm0, %v895_v24, 0.0  ;;  %v6032_v28 = vadd.f32 %v1215_v3, %v1214_v32  ;;  %v898_v24 = vld [vmem:[%s5762_s4 + $0x3d8] sm:$0x3f] }
 0x199   : > { %v6034_v63 = vadd.f32 %v1224_v49, %v1223_v33  ;;  %v1258_v59 = vrot.slane %v1257_v9, 2  ;;  %v1274_v51 = vrot.slane %v1273_v39, 4  ;;  %v1282_v34 = vadd.f32 %v1281_v40, %v1280_v61  ;;  %v884_v33 = vld [vmem:[%s5762_s4 + $0x368] sm:$0xff] }
 0x19a   : > { %8421 = vst [vmem:[#allocation11_spill] sm:$0xff] %v6032_v28  ;;  %v1267_v48 = vrot.slane %v1266_v36, 2  ;;  %v1291_v50 = vadd.f32 %v1290_v35, %v1289_v46  ;;  %v1298_v22 = vadd.f32 %v889_v12, %v882_v14  ;;  %v6039_v57 = vadd.f32 %v1233_v8, %v1232_v38  ;;  %v885_v12 = vld [vmem:[%s5762_s4 + $0x370] sm:$0xff]  ;;  %v899_v46 = vld [vmem:[%s5762_s4 + $0x3e0] sm:$0x3f] }
 0x19b   : > { %8422 = vst [vmem:[#allocation12_spill] sm:$0xff] %v6034_v63  ;;  %v1250_v16 = vadd.f32 %v1249_v5, %v1248_v62  ;;  %v1275_v32 = vadd.f32 %v1274_v51, %v1273_v39  ;;  %v1299_v3 = vsel %vm965_vm0, %v896_v19, 0.0  ;;  %v6045_v49 = vadd.f32 %v1242_v17, %v1241_v53  ;;  %v892_v62 = vld [vmem:[%s5762_s4 + $0x3a8] sm:$0xff] }
 0x19c   : > { %8423 = vst [vmem:[#allocation13_spill] sm:$0xff] %v6039_v57  ;;  %v1283_v30 = vrot.slane %v1282_v34, 4  ;;  %v1292_v55 = vrot.slane %v1291_v50, 4  ;;  %v1300_v63 = vadd.f32 %v1299_v3, %v1298_v22  ;;  %v1259_v61 = vadd.f32 %v1258_v59, %v1257_v9  ;;  %v893_v22 = vld [vmem:[%s5762_s4 + $0x3b0] sm:$0xff]  ;;  %v900_v3 = vld [vmem:[%s5762_s4 + $0x3e8] sm:$0x3f] }
 0x19d   : > { %8424 = vst [vmem:[#allocation14_spill] sm:$0xff] %v6045_v49  ;;  %v1276_v40 = vrot.slane %v1275_v32, 2  ;;  %v1307_v14 = vadd.f32 %v890_v45, %v883_v52  ;;  %v1308_v38 = vsel %vm965_vm0, %v897_v13, 0.0  ;;  %v1268_v8 = vadd.f32 %v1267_v48, %v1266_v36  ;;  %v886_v13 = vld [vmem:[%s5762_s4 + $0x378] sm:$0xff] }
 0x19e   : > { %v1284_v5 = vadd.f32 %v1283_v30, %v1282_v34  ;;  %v1293_v39 = vadd.f32 %v1292_v55, %v1291_v50  ;;  %v1301_v19 = vrot.slane %v1300_v63, 4  ;;  %v1251_v53 = vrot.slane %v1250_v16, 1 }
 0x19f   : > { %v1309_v17 = vadd.f32 %v1308_v38, %v1307_v14  ;;  %v1316_v35 = vadd.f32 %v891_v18, %v884_v33  ;;  %v1317_v51 = vsel %vm965_vm0, %v898_v24, 0.0  ;;  %v1277_v9 = vadd.f32 %v1276_v40, %v1275_v32  ;;  %v901_v14 = vld [vmem:[%s5762_s4 + $0x3f0] sm:$0xff]  ;;  %v902_v38 = vld [vmem:[%s5762_s4 + $0x3f8] sm:$0xff] }
 0x1a0   : > { %v1285_v59 = vrot.slane %v1284_v5, 2  ;;  %v1294_v52 = vrot.slane %v1293_v39, 2  ;;  %v1302_v45 = vadd.f32 %v1301_v19, %v1300_v63  ;;  %v1260_v36 = vrot.slane %v1259_v61, 1  ;;  %v908_v19 = vld [vmem:[%s5762_s4 + $0x428] sm:$0xff] }
 0x1a1   : > { %v1310_v48 = vrot.slane %v1309_v17, 4  ;;  %v1318_v34 = vadd.f32 %v1317_v51, %v1316_v35  ;;  %v1325_v50 = vadd.f32 %v892_v62, %v885_v12  ;;  %v1269_v30 = vrot.slane %v1268_v8, 1  ;;  %v915_v51 = vld [vmem:[%s5762_s4 + $0x460] sm:$0x3f] }
 0x1a2   : > { %v1286_v33 = vadd.f32 %v1285_v59, %v1284_v5  ;;  %v1303_v18 = vrot.slane %v1302_v45, 2  ;;  %v1326_v32 = vsel %vm965_vm0, %v899_v46, 0.0  ;;  %v1295_v24 = vadd.f32 %v1294_v52, %v1293_v39  ;;  %v909_v5 = vld [vmem:[%s5762_s4 + $0x430] sm:$0xff]  ;;  %v903_v52 = vld [vmem:[%s5762_s4 + $0x400] sm:$0xff] }
 0x1a3   : > { %v1311_v55 = vadd.f32 %v1310_v48, %v1309_v17  ;;  %v1319_v63 = vrot.slane %v1318_v34, 4  ;;  %v1327_v40 = vadd.f32 %v1326_v32, %v1325_v50  ;;  %v6059_v49 = vadd.f32 %v1251_v53, %v1250_v16  ;;  %v910_v32 = vld [vmem:[%s5762_s4 + $0x438] sm:$0xff] }
 0x1a4   : > { %v1278_v12 = vrot.slane %v1277_v9, 1  ;;  %v1304_v62 = vadd.f32 %v1303_v18, %v1302_v45  ;;  %v1334_v35 = vadd.f32 %v893_v22, %v886_v13  ;;  %v1335_v17 = vsel %vm965_vm0, %v900_v3, 0.0  ;;  %v917_v45 = vld [vmem:[%s5762_s4 + $0x470] sm:$0x3f] }
 0x1a5   : > { %8425 = vst [vmem:[#allocation15_spill] sm:$0xff] %v6059_v49  ;;  %v1312_v59 = vrot.slane %v1311_v55, 2  ;;  %v1320_v46 = vadd.f32 %v1319_v63, %v1318_v34  ;;  %v1328_v39 = vrot.slane %v1327_v40, 4  ;;  %v6065_v48 = vadd.f32 %v1260_v36, %v1259_v61  ;;  %v916_v49 = vld [vmem:[%s5762_s4 + $0x468] sm:$0x3f] }
 0x1a6   : > { %v6067_v50 = vadd.f32 %v1269_v30, %v1268_v8  ;;  %v1287_v16 = vrot.slane %v1286_v33, 1  ;;  %v1336_v53 = vadd.f32 %v1335_v17, %v1334_v35  ;;  %v1296_v13 = vrot.slane %v1295_v24, 1  ;;  %v904_v36 = vld [vmem:[%s5762_s4 + $0x408] sm:$0xff]  ;;  %v911_v8 = vld [vmem:[%s5762_s4 + $0x440] sm:$0xff] }
 0x1a7   : > { %8426 = vst [vmem:[#allocation16_spill] sm:$0xff] %v6065_v48  ;;  %v1313_v22 = vadd.f32 %v1312_v59, %v1311_v55  ;;  %v1329_v18 = vadd.f32 %v1328_v39, %v1327_v40  ;;  %v1343_v34 = vadd.f32 %v908_v19, %v901_v14  ;;  %v6072_v63 = vadd.f32 %v1278_v12, %v1277_v9  ;;  %v918_v48 = vld [vmem:[%s5762_s4 + $0x478] sm:$0x3f]  ;;  %v919_v59 = vld [vmem:[%s5762_s4 + $0x480] sm:$0x3f] }
 0x1a8   : > { %8427 = vst [vmem:[#allocation17_spill] sm:$0xff] %v6067_v50  ;;  %v1337_v3 = vrot.slane %v1336_v53, 4  ;;  %v1344_v57 = vsel %vm965_vm0, %v915_v51, 0.0  ;;  %v1352_v61 = vadd.f32 %v909_v5, %v902_v38  ;;  %v1305_v30 = vrot.slane %v1304_v62, 1  ;;  %v905_v5 = vld [vmem:[%s5762_s4 + $0x410] sm:$0xff]  ;;  %v912_v51 = vld [vmem:[%s5762_s4 + $0x448] sm:$0xff] }
 0x1a9   : > { %8428 = vst [vmem:[#allocation18_spill] sm:$0xff] %v6072_v63  ;;  %v1314_v35 = vrot.slane %v1313_v22, 1  ;;  %v1321_v17 = vrot.slane %v1320_v46, 2  ;;  %v1345_v50 = vadd.f32 %v1344_v57, %v1343_v34  ;;  %v1353_v55 = vsel %vm965_vm0, %v916_v49, 0.0 }
 0x1aa   : > { %v1338_v28 = vadd.f32 %v1337_v3, %v1336_v53  ;;  %v1361_v40 = vadd.f32 %v910_v32, %v903_v52  ;;  %v1362_v9 = vsel %vm965_vm0, %v917_v45, 0.0  ;;  %v6080_v14 = vadd.f32 %v1287_v16, %v1286_v33  ;;  %v913_v32 = vld [vmem:[%s5762_s4 + $0x450] sm:$0xff]  ;;  %v920_v45 = vld [vmem:[%s5762_s4 + $0x488] sm:$0x3f] }
 0x1ab   : > { %v6082_v38 = vadd.f32 %v1296_v13, %v1295_v24  ;;  %v1330_v19 = vrot.slane %v1329_v18, 2  ;;  %v1346_v12 = vrot.slane %v1345_v50, 4  ;;  %v1354_v39 = vadd.f32 %v1353_v55, %v1352_v61  ;;  %v906_v24 = vld [vmem:[%s5762_s4 + $0x418] sm:$0xff] }
 0x1ac   : > { %8429 = vst [vmem:[#allocation19_spill] sm:$0xff] %v6080_v14  ;;  %v1339_v57 = vrot.slane %v1338_v28, 2  ;;  %v1363_v53 = vadd.f32 %v1362_v9, %v1361_v40  ;;  %v1370_v34 = vadd.f32 %v911_v8, %v904_v36  ;;  %v6087_v49 = vadd.f32 %v1305_v30, %v1304_v62  ;;  %v907_v8 = vld [vmem:[%s5762_s4 + $0x420] sm:$0xff]  ;;  %v921_v40 = vld [vmem:[%s5762_s4 + $0x490] sm:$0x3f] }
 0x1ad   : > { %8430 = vst [vmem:[#allocation20_spill] sm:$0xff] %v6082_v38  ;;  %v1322_v52 = vadd.f32 %v1321_v17, %v1320_v46  ;;  %v1347_v33 = vadd.f32 %v1346_v12, %v1345_v50  ;;  %v1371_v16 = vsel %vm965_vm0, %v918_v48, 0.0  ;;  %v6093_v13 = vadd.f32 %v1314_v35, %v1313_v22  ;;  %v914_v46 = vld [vmem:[%s5762_s4 + $0x458] sm:$0xff] }
 0x1ae   : > { %8431 = vst [vmem:[#allocation21_spill] sm:$0xff] %v6087_v49  ;;  %v1355_v3 = vrot.slane %v1354_v39, 4  ;;  %v1364_v38 = vrot.slane %v1363_v53, 4  ;;  %v1372_v14 = vadd.f32 %v1371_v16, %v1370_v34  ;;  %v1331_v61 = vadd.f32 %v1330_v19, %v1329_v18  ;;  %v929_v34 = vld [vmem:[%s5762_s4 + $0x4d0] sm:$0xff] }
 0x1af   : > { %8432 = vst [vmem:[#allocation22_spill] sm:$0xff] %v6093_v13  ;;  %v1348_v55 = vrot.slane %v1347_v33, 2  ;;  %v1379_v36 = vadd.f32 %v912_v51, %v905_v5  ;;  %v1380_v62 = vsel %vm965_vm0, %v919_v59, 0.0  ;;  %v1340_v50 = vadd.f32 %v1339_v57, %v1338_v28  ;;  %v922_v59 = vld [vmem:[%s5762_s4 + $0x498] sm:$0xff] }
 0x1b0   : > { %v1356_v48 = vadd.f32 %v1355_v3, %v1354_v39  ;;  %v1365_v30 = vadd.f32 %v1364_v38, %v1363_v53  ;;  %v1373_v17 = vrot.slane %v1372_v14, 4  ;;  %v1323_v22 = vrot.slane %v1322_v52, 1  ;;  %v936_v53 = vld [vmem:[%s5762_s4 + $0x508] sm:$0x3f] }
 0x1b1   : > { %v1381_v35 = vadd.f32 %v1380_v62, %v1379_v36  ;;  %v1388_v9 = vadd.f32 %v913_v32, %v906_v24  ;;  %v1389_v12 = vsel %vm965_vm0, %v920_v45, 0.0  ;;  %v1349_v18 = vadd.f32 %v1348_v55, %v1347_v33  ;;  %v923_v36 = vld [vmem:[%s5762_s4 + $0x4a0] sm:$0xff]  ;;  %v924_v62 = vld [vmem:[%s5762_s4 + $0x4a8] sm:$0xff] }
 0x1b2   : > { %v1357_v19 = vrot.slane %v1356_v48, 2  ;;  %v1366_v5 = vrot.slane %v1365_v30, 2  ;;  %v1374_v51 = vadd.f32 %v1373_v17, %v1372_v14  ;;  %v1332_v28 = vrot.slane %v1331_v61, 1  ;;  %v930_v17 = vld [vmem:[%s5762_s4 + $0x4d8] sm:$0xff] }
 0x1b3   : > { %v1382_v57 = vrot.slane %v1381_v35, 4  ;;  %v1390_v38 = vadd.f32 %v1389_v12, %v1388_v9  ;;  %v1397_v39 = vadd.f32 %v914_v46, %v907_v8  ;;  %v1341_v16 = vrot.slane %v1340_v50, 1  ;;  %v937_v12 = vld [vmem:[%s5762_s4 + $0x510] sm:$0x3f] }
 0x1b4   : > { %v1358_v24 = vadd.f32 %v1357_v19, %v1356_v48  ;;  %v1375_v32 = vrot.slane %v1374_v51, 2  ;;  %v1398_v33 = vsel %vm965_vm0, %v921_v40, 0.0  ;;  %v1367_v45 = vadd.f32 %v1366_v5, %v1365_v30  ;;  %v931_v48 = vld [vmem:[%s5762_s4 + $0x4e0] sm:$0xff]  ;;  %v925_v5 = vld [vmem:[%s5762_s4 + $0x4b0] sm:$0xff] }
 0x1b5   : > { %v1383_v3 = vadd.f32 %v1382_v57, %v1381_v35  ;;  %v1391_v14 = vrot.slane %v1390_v38, 4  ;;  %v1399_v55 = vadd.f32 %v1398_v33, %v1397_v39  ;;  %v6107_v13 = vadd.f32 %v1323_v22, %v1322_v52  ;;  %v932_v57 = vld [vmem:[%s5762_s4 + $0x4e8] sm:$0xff] }
 0x1b6   : > { %v1350_v8 = vrot.slane %v1349_v18, 1  ;;  %v1376_v46 = vadd.f32 %v1375_v32, %v1374_v51  ;;  %v1406_v9 = vadd.f32 %v929_v34, %v922_v59  ;;  %v1407_v35 = vsel %vm965_vm0, %v936_v53, 0.0  ;;  %v939_v51 = vld [vmem:[%s5762_s4 + $0x520] sm:$0x3f] }
 0x1b7   : > { %8433 = vst [vmem:[#allocation23_spill] sm:$0xff] %v6107_v13  ;;  %v1384_v19 = vrot.slane %v1383_v3, 2  ;;  %v1392_v40 = vadd.f32 %v1391_v14, %v1390_v38  ;;  %v1400_v30 = vrot.slane %v1399_v55, 4  ;;  %v6114_v39 = vadd.f32 %v1332_v28, %v1331_v61  ;;  %v938_v13 = vld [vmem:[%s5762_s4 + $0x518] sm:$0x3f] }
 0x1b8   : > { %v6116_v52 = vadd.f32 %v1341_v16, %v1340_v50  ;;  %v1359_v22 = vrot.slane %v1358_v24, 1  ;;  %v1408_v33 = vadd.f32 %v1407_v35, %v1406_v9  ;;  %v1368_v59 = vrot.slane %v1367_v45, 1  ;;  %v926_v61 = vld [vmem:[%s5762_s4 + $0x4b8] sm:$0xff]  ;;  %v933_v50 = vld [vmem:[%s5762_s4 + $0x4f0] sm:$0xff] }
 0x1b9   : > { %8434 = vst [vmem:[#allocation24_spill] sm:$0xff] %v6114_v39  ;;  %v1393_v34 = vrot.slane %v1392_v40, 2  ;;  %v1401_v32 = vadd.f32 %v1400_v30, %v1399_v55  ;;  %v1415_v38 = vadd.f32 %v930_v17, %v923_v36  ;;  %v6120_v14 = vadd.f32 %v1350_v8, %v1349_v18 }
 0x1ba   : > { %8435 = vst [vmem:[#allocation25_spill] sm:$0xff] %v6116_v52  ;;  %v1409_v53 = vrot.slane %v1408_v33, 4  ;;  %v1416_v49 = vsel %vm965_vm0, %v937_v12, 0.0  ;;  %v1424_v63 = vadd.f32 %v931_v48, %v924_v62  ;;  %v1377_v28 = vrot.slane %v1376_v46, 1  ;;  %v940_v52 = vld [vmem:[%s5762_s4 + $0x528] sm:$0x3f] }
 0x1bb   : > { %8436 = vst [vmem:[#allocation26_spill] sm:$0xff] %v6120_v14  ;;  %v1385_v16 = vadd.f32 %v1384_v19, %v1383_v3  ;;  %v1402_v9 = vrot.slane %v1401_v32, 2  ;;  %v1417_v35 = vadd.f32 %v1416_v49, %v1415_v38  ;;  %v1425_v55 = vsel %vm965_vm0, %v938_v13, 0.0  ;;  %v927_v12 = vld [vmem:[%s5762_s4 + $0x4c0] sm:$0xff]  ;;  %v934_v3 = vld [vmem:[%s5762_s4 + $0x4f8] sm:$0xff] }
 0x1bc   : > { %v1410_v39 = vadd.f32 %v1409_v53, %v1408_v33  ;;  %v1433_v36 = vadd.f32 %v932_v57, %v925_v5  ;;  %v1434_v18 = vsel %vm965_vm0, %v939_v51, 0.0  ;;  %v6128_v17 = vadd.f32 %v1359_v22, %v1358_v24  ;;  %v941_v19 = vld [vmem:[%s5762_s4 + $0x530] sm:$0x3f]  ;;  %v935_v22 = vld [vmem:[%s5762_s4 + $0x500] sm:$0xff] }
 0x1bd   : > { %v6130_v62 = vadd.f32 %v1368_v59, %v1367_v45  ;;  %v1394_v8 = vadd.f32 %v1393_v34, %v1392_v40  ;;  %v1418_v48 = vrot.slane %v1417_v35, 4  ;;  %v1426_v30 = vadd.f32 %v1425_v55, %v1424_v63  ;;  %v928_v45 = vld [vmem:[%s5762_s4 + $0x4c8] sm:$0xff]  ;;  %v942_v40 = vld [vmem:[%s5762_s4 + $0x538] sm:$0x3f]  ;;  %v963_v14 = vld [vmem:[%s5762_s4 + $0x5e0] sm:$0x3f] }
 0x1be   : > { %8437 = vst [vmem:[#allocation27_spill] sm:$0xff] %v6128_v17  ;;  %v1411_v49 = vrot.slane %v1410_v39, 2  ;;  %v1435_v33 = vadd.f32 %v1434_v18, %v1433_v36  ;;  %v1442_v38 = vadd.f32 %v933_v50, %v926_v61  ;;  %v6135_v13 = vadd.f32 %v1377_v28, %v1376_v46  ;;  %v943_v46 = vld [vmem:[%s5762_s4 + $0x540] sm:$0xff]  ;;  %v950_v50 = vld [vmem:[%s5762_s4 + $0x578] sm:$0xff]  ;;  %v957_v18 = vld [vmem:[%s5762_s4 + $0x5b0] sm:$0x3f] }
 0x1bf   : > { %8438 = vst [vmem:[#allocation28_spill] sm:$0xff] %v6130_v62  ;;  %v1386_v5 = vrot.slane %v1385_v16, 1  ;;  %v1419_v24 = vadd.f32 %v1418_v48, %v1417_v35  ;;  %v1443_v57 = vsel %vm965_vm0, %v940_v52, 0.0  ;;  %v1403_v51 = vadd.f32 %v1402_v9, %v1401_v32  ;;  %v951_v17 = vld [vmem:[%s5762_s4 + $0x580] sm:$0xff] }
 0x1c0   : > { %8439 = vst [vmem:[#allocation29_spill] sm:$0xff] %v6135_v13  ;;  %v1427_v59 = vrot.slane %v1426_v30, 4  ;;  %v1436_v34 = vrot.slane %v1435_v33, 4  ;;  %v1444_v53 = vadd.f32 %v1443_v57, %v1442_v38  ;;  %v1395_v62 = vrot.slane %v1394_v8, 1 }
 0x1c1   : > { %v1420_v63 = vrot.slane %v1419_v24, 2  ;;  %v1451_v55 = vadd.f32 %v934_v3, %v927_v12  ;;  %v1452_v61 = vsel %vm965_vm0, %v941_v19, 0.0  ;;  %v1412_v28 = vadd.f32 %v1411_v49, %v1410_v39  ;;  %v944_v19 = vld [vmem:[%s5762_s4 + $0x548] sm:$0xff] }
 0x1c2   : > { %v1428_v35 = vadd.f32 %v1427_v59, %v1426_v30  ;;  %v1437_v52 = vadd.f32 %v1436_v34, %v1435_v33  ;;  %v1445_v36 = vrot.slane %v1444_v53, 4  ;;  %v1460_v9 = vadd.f32 %v935_v22, %v928_v45  ;;  %v958_v59 = vld [vmem:[%s5762_s4 + $0x5b8] sm:$0x3f] }
 0x1c3   : > { %v1421_v48 = vadd.f32 %v1420_v63, %v1419_v24  ;;  %v1453_v32 = vadd.f32 %v1452_v61, %v1451_v55  ;;  %v1461_v38 = vsel %vm965_vm0, %v942_v40, 0.0  ;;  %v1404_v57 = vrot.slane %v1403_v51, 1  ;;  %v945_v61 = vld [vmem:[%s5762_s4 + $0x550] sm:$0xff] }
 0x1c4   : > { %v1429_v13 = vrot.slane %v1428_v35, 2  ;;  %v1438_v12 = vrot.slane %v1437_v52, 2  ;;  %v1446_v3 = vadd.f32 %v1445_v36, %v1444_v53  ;;  %v6148_v39 = vadd.f32 %v1386_v5, %v1385_v16  ;;  %v946_v36 = vld [vmem:[%s5762_s4 + $0x558] sm:$0xff]  ;;  %v952_v16 = vld [vmem:[%s5762_s4 + $0x588] sm:$0xff] }
 0x1c5   : > { %v1454_v49 = vrot.slane %v1453_v32, 4  ;;  %v1462_v30 = vadd.f32 %v1461_v38, %v1460_v9  ;;  %v1469_v33 = vadd.f32 %v950_v50, %v943_v46  ;;  %v1413_v24 = vrot.slane %v1412_v28, 1 }
 0x1c6   : > { %8440 = vst [vmem:[#allocation30_spill] sm:$0xff] %v6148_v39  ;;  %v1422_v45 = vrot.slane %v1421_v48, 1  ;;  %v1430_v22 = vadd.f32 %v1429_v13, %v1428_v35  ;;  %v1470_v40 = vsel %vm965_vm0, %v957_v18, 0.0  ;;  %v1447_v34 = vrot.slane %v1446_v3, 2  ;;  %v953_v13 = vld [vmem:[%s5762_s4 + $0x590] sm:$0xff] }
 0x1c7   : > { %v1455_v53 = vadd.f32 %v1454_v49, %v1453_v32  ;;  %v1463_v63 = vrot.slane %v1462_v30, 4  ;;  %v1471_v55 = vadd.f32 %v1470_v40, %v1469_v33  ;;  %v6155_v5 = vadd.f32 %v1395_v62, %v1394_v8  ;;  %v959_v35 = vld [vmem:[%s5762_s4 + $0x5c0] sm:$0x3f] }
 0x1c8   : > { %v6157_v46 = vadd.f32 %v1404_v57, %v1403_v51  ;;  %v1439_v50 = vadd.f32 %v1438_v12, %v1437_v52  ;;  %v1478_v9 = vadd.f32 %v951_v17, %v944_v19  ;;  %v1479_v49 = vsel %vm965_vm0, %v958_v59, 0.0  ;;  %v947_v33 = vld [vmem:[%s5762_s4 + $0x560] sm:$0xff]  ;;  %v954_v57 = vld [vmem:[%s5762_s4 + $0x598] sm:$0xff]  ;;  %v961_v17 = vld [vmem:[%s5762_s4 + $0x5d0] sm:$0x3f] }
 0x1c9   : > { %8441 = vst [vmem:[#allocation31_spill] sm:$0xff] %v6155_v5  ;;  %v1456_v18 = vrot.slane %v1455_v53, 2  ;;  %v1464_v38 = vadd.f32 %v1463_v63, %v1462_v30  ;;  %v1472_v32 = vrot.slane %v1471_v55, 4  ;;  %v6163_v40 = vadd.f32 %v1413_v24, %v1412_v28  ;;  %v948_v28 = vld [vmem:[%s5762_s4 + $0x568] sm:$0xff] }
 0x1ca   : > { %8442 = vst [vmem:[#allocation32_spill] sm:$0xff] %v6157_v46  ;;  %v6165_v62 = vadd.f32 %v1422_v45, %v1421_v48  ;;  %v1431_v8 = vrot.slane %v1430_v22, 1  ;;  %v1480_v51 = vadd.f32 %v1479_v49, %v1478_v9  ;;  %v960_v46 = vld [vmem:[%s5762_s4 + $0x5c8] sm:$0x3f]  ;;  %v1448_v52 = vadd.f32 %v1447_v34, %v1446_v3  ;;  %v955_v48 = vld [vmem:[%s5762_s4 + $0x5a0] sm:$0xff] }
 0x1cb   : > { %8443 = vst [vmem:[#allocation33_spill] sm:$0xff] %v6163_v40  ;;  %v1465_v12 = vrot.slane %v1464_v38, 2  ;;  %v1473_v19 = vadd.f32 %v1472_v32, %v1471_v55  ;;  %v1487_v30 = vadd.f32 %v952_v16, %v945_v61  ;;  %v1440_v63 = vrot.slane %v1439_v50, 1  ;;  %v956_v32 = vld [vmem:[%s5762_s4 + $0x5a8] sm:$0xff] }
 0x1cc   : > { %8444 = vst [vmem:[#allocation34_spill] sm:$0xff] %v6165_v62  ;;  %v1481_v5 = vrot.slane %v1480_v51, 4  ;;  %v1488_v59 = vsel %vm965_vm0, %v959_v35, 0.0  ;;  %v1496_v39 = vadd.f32 %v953_v13, %v946_v36  ;;  %v1457_v24 = vadd.f32 %v1456_v18, %v1455_v53  ;;  %v962_v62 = vld [vmem:[%s5762_s4 + $0x5d8] sm:$0x3f]  ;;  %v949_v35 = vld [vmem:[%s5762_s4 + $0x570] sm:$0xff] }
 0x1cd   : > { %v1466_v45 = vadd.f32 %v1465_v12, %v1464_v38  ;;  %v1474_v9 = vrot.slane %v1473_v19, 2  ;;  %v1489_v49 = vadd.f32 %v1488_v59, %v1487_v30  ;;  %v1497_v3 = vsel %vm965_vm0, %v960_v46, 0.0 }
 0x1ce   : > { %v1482_v40 = vadd.f32 %v1481_v5, %v1480_v51  ;;  %v1505_v34 = vadd.f32 %v954_v57, %v947_v33  ;;  %v1506_v55 = vsel %vm965_vm0, %v961_v17, 0.0  ;;  %v6176_v61 = vadd.f32 %v1431_v8, %v1430_v22 }
 0x1cf   : > { %v1449_v16 = vrot.slane %v1448_v52, 1  ;;  %v1475_v36 = vadd.f32 %v1474_v9, %v1473_v19  ;;  %v1490_v13 = vrot.slane %v1489_v49, 4  ;;  %v1498_v53 = vadd.f32 %v1497_v3, %v1496_v39 }
 0x1d0   : > { %8445 = vst [vmem:[#allocation35_spill] sm:$0xff] %v6176_v61  ;;  %v1483_v25 = vrot.slane %v1482_v40, 2  ;;  %v1507_v18 = vadd.f32 %v1506_v55, %v1505_v34  ;;  %v1514_v38 = vadd.f32 %v955_v48, %v948_v28  ;;  %v1458_v12 = vrot.slane %v1457_v24, 1 }
 0x1d1   : > { %v1467_v30 = vrot.slane %v1466_v45, 1  ;;  %v1491_v5 = vadd.f32 %v1490_v13, %v1489_v49  ;;  %v1515_v46 = vsel %vm965_vm0, %v962_v62, 0.0  ;;  %v1476_v33 = vrot.slane %v1475_v36, 1 }
 0x1d2   : > { %v1499_v51 = vrot.slane %v1498_v53, 4  ;;  %v1508_v57 = vrot.slane %v1507_v18, 4  ;;  %v1516_v22 = vadd.f32 %v1515_v46, %v1514_v38  ;;  %v1484_v8 = vadd.f32 %v1483_v25, %v1482_v40 }
 0x1d3   : > { %v1492_v17 = vrot.slane %v1491_v5, 2  ;;  %v1523_v19 = vadd.f32 %v956_v32, %v949_v35  ;;  %v1524_v59 = vsel %vm965_vm0, %v963_v14, 0.0  ;;  %v6183_v9 = vadd.f32 %v1440_v63, %v1439_v50 }
 0x1d4   : > { %v1500_v61 = vadd.f32 %v1499_v51, %v1498_v53  ;;  %v1509_v39 = vadd.f32 %v1508_v57, %v1507_v18  ;;  %v1517_v3 = vrot.slane %v1516_v22, 4  ;;  %v6185_v28 = vadd.f32 %v1449_v16, %v1448_v52 }
 0x1d5   : > { %v6187_v48 = vadd.f32 %v1458_v12, %v1457_v24  ;;  %v6189_v49 = vadd.f32 %v1467_v30, %v1466_v45  ;;  %v1525_v62 = vadd.f32 %v1524_v59, %v1523_v19  ;;  %v1493_v34 = vadd.f32 %v1492_v17, %v1491_v5  ;;  %v8446_v59 = vld [vmem:[#allocation10_spill] sm:$0xff] }
 0x1d6   : > { %v1501_v55 = vrot.slane %v1500_v61, 2  ;;  %v1510_v13 = vrot.slane %v1509_v39, 2  ;;  %v1518_v25 = vadd.f32 %v1517_v3, %v1516_v22  ;;  %v6191_v40 = vadd.f32 %v1476_v33, %v1475_v36 }
 0x1d7   : > { %v1485_v35 = vrot.slane %v1484_v8, 1  ;;  %v1526_v14 = vrot.slane %v1525_v62, 4  ;;  %v1532_v50 = vmul.f32 0.045454547, %v5868_v43  ;;  %v1533_v24 = vmul.f32 0.045454547, %v5854_v29 }
 0x1d8   : > { %v1502_v63 = vadd.f32 %v1501_v55, %v1500_v61  ;;  %v1511_v52 = vadd.f32 %v1510_v13, %v1509_v39  ;;  %v1519_v16 = vrot.slane %v1518_v25, 2  ;;  %v1534_v32 = vmul.f32 0.045454547, %v5870_v54  ;;  %v8447_v39 = vld [vmem:[#allocation11_spill] sm:$0xff]  ;;  %v8450_v55 = vld [vmem:[#allocation14_spill] sm:$0xff] }
 0x1d9   : > { %v1527_v45 = vadd.f32 %v1526_v14, %v1525_v62  ;;  %v1535_v53 = vmul.f32 0.045454547, %v5872_v58  ;;  %v6202_v36 = vmul.f32 0.045454547, %v5877_v0  ;;  %v1494_v18 = vrot.slane %v1493_v34, 1  ;;  %v8451_v13 = vld [vmem:[#allocation15_spill] sm:$0xff] }
 0x1da   : > { %v1503_v38 = vrot.slane %v1502_v63, 1  ;;  %v6205_v43 = vmul.f32 0.045454547, %v5903_v42  ;;  %v6208_v61 = vmul.f32 0.045454547, %v5905_v44  ;;  %v1520_v12 = vadd.f32 %v1519_v16, %v1518_v25  ;;  %v8452_v25 = vld [vmem:[#allocation16_spill] sm:$0xff] }
 0x1db   : > { %v1528_v29 = vrot.slane %v1527_v45, 2  ;;  %v1539_v30 = vmul.f32 0.045454547, %v5907_v56  ;;  %v1540_v5 = vmul.f32 0.045454547, %v5926_v11  ;;  %v1512_v54 = vrot.slane %v1511_v52, 1 }
 0x1dc   : > { %v1541_v58 = vmul.f32 0.045454547, %v5936_v41  ;;  %v1542_v0 = vmul.f32 0.045454547, %v5942_v37  ;;  %v1543_v33 = vmul.f32 0.045454547, %v5944_v47  ;;  %v1486_v51 = vadd.f32 %v1485_v35, %v1484_v8 }
 0x1dd   : > { %v1529_v46 = vadd.f32 %v1528_v29, %v1527_v45  ;;  %v1544_v42 = vmul.f32 0.045454547, %v5947_v2  ;;  %v1545_v44 = vmul.f32 0.045454547, %v5957_v26  ;;  %v6218_v57 = vmul.f32 0.045454547, %v5966_v4 }
 0x1de   : > { %v6221_v56 = vmul.f32 0.045454547, %v5968_v10  ;;  %v6224_v11 = vmul.f32 0.045454547, %v5973_v21  ;;  %v1521_v41 = vrot.slane %v1520_v12, 1  ;;  %v1495_v2 = vadd.f32 %v1494_v18, %v1493_v34  ;;  %v8449_v34 = vld [vmem:[#allocation13_spill] sm:$0xff] }
 0x1df   : > { %v1530_v37 = vrot.slane %v1529_v46, 1  ;;  %v6227_v22 = vmul.f32 0.045454547, %v5975_v20  ;;  %v6230_v47 = vmul.f32 0.045454547, %v5979_v27  ;;  %v1504_v8 = vadd.f32 %v1503_v38, %v1502_v63  ;;  %v8455_v45 = vld [vmem:[#allocation19_spill] sm:$0xff] }
 0x1e0   : > { %v6233_v26 = vmul.f32 0.045454547, %v5984_v60  ;;  %v6236_v4 = vmul.f32 0.045454547, %v5987_v23  ;;  %v1553_v10 = vmul.f32 0.045454547, %v5996_v1  ;;  %v1513_v19 = vadd.f32 %v1512_v54, %v1511_v52 }
 0x1e1   : > { %v1554_v21 = vmul.f32 0.045454547, %v6009_v7  ;;  %v1555_v17 = vmul.f32 0.045454547, %v6011_v6  ;;  %v6242_v20 = vmul.f32 0.045454547, %v6017_v15  ;;  %v1522_v3 = vadd.f32 %v1521_v41, %v1520_v12 }
 0x1e2   : > { %v6245_v27 = vmul.f32 0.045454547, %v6019_v31  ;;  %v6248_v60 = vmul.f32 0.045454547, %v8446_v59  ;;  %v6251_v23 = vmul.f32 0.045454547, %v8447_v39  ;;  %v1659_v63 = vsel %vm1658_vm1, %v1539_v30, %v1532_v50 }
 0x1e3   : > { %v8448_v1 = vld [vmem:[#allocation12_spill] sm:$0xff]  ;;  %v1561_v7 = vmul.f32 0.045454547, %v8449_v34  ;;  %v1562_v6 = vmul.f32 0.045454547, %v8450_v55  ;;  %v8453_v31 = vld [vmem:[#allocation17_spill] sm:$0xff]  ;;  %v1666_v29 = vsel %vm1658_vm1, %v1540_v5, %v1533_v24  ;;  %v1531_v54 = vadd.f32 %v1530_v37, %v1529_v46 }
 0x1e4   : > { %v1560_v62 = vmul.f32 0.045454547, %v8448_v1  ;;  %v1563_v15 = vmul.f32 0.045454547, %v8451_v13  ;;  %v6258_v35 = vmul.f32 0.045454547, %v8452_v25  ;;  %v1670_v24 = vsel %vm1658_vm1, %v1541_v58, %v1534_v32 }
 0x1e5   : > { %v6261_v14 = vmul.f32 0.045454547, %v8453_v31  ;;  %v8454_v52 = vld [vmem:[#allocation18_spill] sm:$0xff]  ;;  %v6268_v18 = vmul.f32 0.045454547, %v8455_v45  ;;  %v8456_v38 = vld [vmem:[#allocation20_spill] sm:$0xff] }
 0x1e6   : > { %v6265_v16 = vmul.f32 0.045454547, %v8454_v52  ;;  %v6271_v12 = vmul.f32 0.045454547, %v8456_v38  ;;  %v8458_v41 = vld [vmem:[#allocation21_spill] sm:$0xff]  ;;  %v8460_v39 = vld [vmem:[#allocation22_spill] sm:$0xff] }
 0x1e7   : > { %v6275_v59 = vmul.f32 0.045454547, %v8458_v41  ;;  %v6278_v1 = vmul.f32 0.045454547, %v8460_v39  ;;  %v8462_v34 = vld [vmem:[#allocation23_spill] sm:$0xff]  ;;  %v8464_v30 = vld [vmem:[#allocation24_spill] sm:$0xff]  ;;  %v1674_v39 = vsel %vm1658_vm1, %v1542_v0, %v1535_v53  ;;  %v1682_v53 = vsel %vm1658_vm1, %v1544_v42, %v6205_v43 }
 0x1e8   : > { %8457 = vst [vmem:[#allocation10_spill] sm:$0xff] %v6271_v12  ;;  %v6281_v50 = vmul.f32 0.045454547, %v8462_v34  ;;  %v6284_v55 = vmul.f32 0.045454547, %v8464_v30  ;;  %v8466_v13 = vld [vmem:[#allocation25_spill] sm:$0xff]  ;;  %v6316_v43 = vstv %s6194_s14 }
 0x1e9   : > { %8459 = vst [vmem:[#allocation11_spill] sm:$0xff] %v6275_v59  ;;  %v6287_v25 = vmul.f32 0.045454547, %v8466_v13  ;;  %v8468_v31 = vld [vmem:[#allocation26_spill] sm:$0xff]  ;;  %v8469_v5 = vld [vmem:[#allocation27_spill] sm:$0xff]  ;;  %v8470_v37 = vld [vmem:[#allocation28_spill] sm:$0xff] }
 0x1ea   : > { %8461 = vst [vmem:[#allocation12_spill] sm:$0xff] %v6278_v1  ;;  %v1574_v52 = vmul.f32 0.045454547, %v8468_v31  ;;  %v1575_v46 = vmul.f32 0.045454547, %v8469_v5  ;;  %v8471_v38 = vld [vmem:[#allocation29_spill] sm:$0xff]  ;;  %v1678_v31 = vsel %vm1658_vm1, %v1543_v33, %v6202_v36 }
 0x1eb   : > { %8463 = vst [vmem:[#allocation13_spill] sm:$0xff] %v6281_v50  ;;  %v1576_v45 = vmul.f32 0.045454547, %v8470_v37  ;;  %v1577_v41 = vmul.f32 0.045454547, %v8471_v38  ;;  %v8472_v34 = vld [vmem:[#allocation30_spill] sm:$0xff] }
 0x1ec   : > { %8465 = vst [vmem:[#allocation14_spill] sm:$0xff] %v6284_v55  ;;  %v1578_v50 = vmul.f32 0.045454547, %v8472_v34  ;;  %v8473_v30 = vld [vmem:[#allocation31_spill] sm:$0xff]  ;;  %v8474_v1 = vld [vmem:[#allocation32_spill] sm:$0xff]  ;;  %v8476_v58 = vld [vmem:[#allocation34_spill] sm:$0xff] }
 0x1ed   : > { %8467 = vst [vmem:[#allocation15_spill] sm:$0xff] %v6287_v25  ;;  %v1579_v55 = vmul.f32 0.045454547, %v8473_v30  ;;  %v1580_v13 = vmul.f32 0.045454547, %v8474_v1  ;;  %v8475_v25 = vld [vmem:[#allocation33_spill] sm:$0xff]  ;;  %v1686_v1 = vsel %vm1658_vm1, %v1545_v44, %v6208_v61  ;;  %v6313_v30 = vstv %s6197_s29 }
 0x1ee   : > { %v1581_v32 = vmul.f32 0.045454547, %v8475_v25  ;;  %v1582_v5 = vmul.f32 0.045454547, %v8476_v58  ;;  %v8477_v37 = vld [vmem:[#allocation35_spill] sm:$0xff]  ;;  %vm1736_vm9 = vcmask 1043456  }
 0x1ef   : > { %v1583_v59 = vmul.f32 0.045454547, %v8477_v37  ;;  %v1584_v0 = vmul.f32 0.045454547, %v6183_v9  ;;  %v1585_v38 = vmul.f32 0.045454547, %v6185_v28  ;;  %v1661_v28 = vsel %vm1660_vm2, %v6218_v57, %v1659_v63 }
 0x1f0   : > { %v1586_v34 = vmul.f32 0.045454547, %v6187_v48  ;;  %v1587_v36 = vmul.f32 0.045454547, %v6189_v49  ;;  %v1588_v33 = vmul.f32 0.045454547, %v6191_v40  ;;  %v1667_v48 = vsel %vm1660_vm2, %v6221_v56, %v1666_v29 }
 0x1f1   : > { %v1589_v25 = vmul.f32 0.045454547, %v1486_v51  ;;  %v1590_v58 = vmul.f32 0.045454547, %v1495_v2  ;;  %v1591_v37 = vmul.f32 0.045454547, %v1504_v8  ;;  %v1671_v49 = vsel %vm1660_vm2, %v6224_v11, %v1670_v24 }
 0x1f2   : > { %v1592_v12 = vmul.f32 0.045454547, %v1513_v19  ;;  %v1593_v9 = vmul.f32 0.045454547, %v1522_v3  ;;  %v1594_v42 = vmul.f32 0.045454547, %v1531_v54  ;;  %v1663_v40 = vsel %vm1662_vm3, %v1553_v10, %v1661_v28 }
 0x1f3   : > { %v1668_v61 = vsel %vm1662_vm3, %v1554_v21, %v1667_v48  ;;  %v1672_v44 = vsel %vm1662_vm3, %v1555_v17, %v1671_v49  ;;  %v1675_v51 = vsel %vm1660_vm2, %v6227_v22, %v1674_v39  ;;  %v1665_v2 = vsel %vm1664_vm4, %v1560_v62, %v1663_v40  ;;  %v8479_v62 = vld [vmem:[#allocation11_spill] sm:$0xff] }
 0x1f4   : > { %v1669_v57 = vsel %vm1664_vm4, %v1561_v7, %v1668_v61  ;;  %v1673_v8 = vsel %vm1664_vm4, %v1562_v6, %v1672_v44  ;;  %v1676_v56 = vsel %vm1662_vm3, %v6242_v20, %v1675_v51  ;;  %v1679_v10 = vsel %vm1660_vm2, %v6230_v47, %v1678_v31 }
 0x1f5   : > { %v1677_v11 = vsel %vm1664_vm4, %v1563_v15, %v1676_v56  ;;  %v1683_v21 = vsel %vm1660_vm2, %v6233_v26, %v1682_v53  ;;  %v1687_v22 = vsel %vm1660_vm2, %v6236_v4, %v1686_v1  ;;  %v1680_v17 = vsel %vm1662_vm3, %v6245_v27, %v1679_v10  ;;  %v8478_v27 = vld [vmem:[#allocation10_spill] sm:$0xff] }
 0x1f6   : > { %v1684_v19 = vsel %vm1662_vm3, %v6248_v60, %v1683_v21  ;;  %v1688_v20 = vsel %vm1662_vm3, %v6251_v23, %v1687_v22  ;;  %v1681_v3 = vsel %vm1664_vm4, %v6258_v35, %v1680_v17  ;;  %v1691_v4 = vsel %vm1690_vm5, %v1574_v52, %v6268_v18  ;;  %v8480_v35 = vld [vmem:[#allocation12_spill] sm:$0xff]  ;;  %v8481_v52 = vld [vmem:[#allocation13_spill] sm:$0xff] }
 0x1f7   : > { %v1685_v47 = vsel %vm1664_vm4, %v6261_v14, %v1684_v19  ;;  %v1689_v26 = vsel %vm1664_vm4, %v6265_v16, %v1688_v20  ;;  %v1696_v60 = vsel %vm1690_vm5, %v1575_v46, %v8478_v27  ;;  %v1699_v23 = vsel %vm1690_vm5, %v1576_v45, %v8479_v62  ;;  %v8482_v46 = vld [vmem:[#allocation14_spill] sm:$0xff] }
 0x1f8   : > { %v1693_v7 = vsel %vm8386_vm6, %v1581_v32, %v1691_v4  ;;  %v1697_v6 = vsel %vm8386_vm6, %v1582_v5, %v1696_v60  ;;  %v1700_v15 = vsel %vm8386_vm6, %v1583_v59, %v1699_v23  ;;  %v1702_v14 = vsel %vm1690_vm5, %v1577_v41, %v8480_v35  ;;  %v8483_v59 = vld [vmem:[#allocation15_spill] sm:$0xff] }
 0x1f9   : > { %v1695_v63 = vsel %vm8389_vm7, %v1588_v33, %v1693_v7  ;;  %v1698_v16 = vsel %vm8389_vm7, %v1589_v25, %v1697_v6  ;;  %v1701_v18 = vsel %vm8389_vm7, %v1590_v58, %v1700_v15  ;;  %v1703_v29 = vsel %vm8386_vm6, %v1584_v0, %v1702_v14 }
 0x1fa   : > { %v1704_v54 = vsel %vm8389_vm7, %v1591_v37, %v1703_v29  ;;  %v1705_v24 = vsel %vm1690_vm5, %v1578_v50, %v8481_v52  ;;  %v1708_v45 = vsel %vm1690_vm5, %v1579_v55, %v8482_v46  ;;  %v1711_v39 = vsel %vm1690_vm5, %v1580_v13, %v8483_v59 }
 0x1fb   : > { %v1706_v41 = vsel %vm8386_vm6, %v1585_v38, %v1705_v24  ;;  %v1709_v31 = vsel %vm8386_vm6, %v1586_v34, %v1708_v45  ;;  %v1712_v32 = vsel %vm8386_vm6, %v1587_v36, %v1711_v39  ;;  %v6384_v55 = vsel %vm1728_vm8, 0.0, %v1665_v2 }
 0x1fc   : > { %v1707_v5 = vsel %vm8389_vm7, %v1592_v12, %v1706_v41  ;;  %v1710_v53 = vsel %vm8389_vm7, %v1593_v9, %v1709_v31  ;;  %v1713_v50 = vsel %vm8389_vm7, %v1594_v42, %v1712_v32  ;;  %v6387_v13 = vsel %vm1728_vm8, 0.0, %v1669_v57 }
 0x1fd   : > { %v6390_v0 = vsel %vm1728_vm8, 0.0, %v1673_v8  ;;  %v6393_v38 = vsel %vm1728_vm8, 0.0, %v1677_v11  ;;  %v6396_v34 = vsel %vm1728_vm8, 0.0, %v1681_v3  ;;  %v6399_v12 = vsel %vm1728_vm8, 0.0, %v1685_v47 }
 0x1fe   : > { %v6402_v1 = vsel %vm1728_vm8, 0.0, %v1689_v26  ;;  %v1748_v36 = vmul.f32 %v6316_v43, %v6384_v55  ;;  %v6407_v33 = vsel %vm1736_vm9, %v1695_v63, 0.0  ;;  %v6410_v25 = vsel %vm1736_vm9, %v1698_v16, 0.0 }
 0x1ff   : > { %v6413_v58 = vsel %vm1736_vm9, %v1701_v18, 0.0  ;;  %v6416_v37 = vsel %vm1736_vm9, %v1704_v54, 0.0  ;;  %v6419_v9 = vsel %vm1736_vm9, %v1707_v5, 0.0  ;;  %v6422_v42 = vsel %vm1736_vm9, %v1710_v53, 0.0 }
 0x200   : > { %v6425_v28 = vsel %vm1736_vm9, %v1713_v50, 0.0  ;;  %v1749_v48 = vmul.f32 %v6316_v43, %v6387_v13  ;;  %v1750_v49 = vmul.f32 %v6316_v43, %v6390_v0  ;;  %v1751_v40 = vmul.f32 %v6316_v43, %v6393_v38 }
 0x201   : > { %v1752_v61 = vmul.f32 %v6316_v43, %v6396_v34  ;;  %v1753_v44 = vmul.f32 %v6316_v43, %v6399_v12  ;;  %v1754_v51 = vmul.f32 %v6316_v43, %v6402_v1  ;;  %v1755_v2 = vmul.f32 %v6316_v43, %v6407_v33 }
 0x202   : > { %v1756_v57 = vmul.f32 %v6316_v43, %v6410_v25  ;;  %v1757_v8 = vmul.f32 %v6316_v43, %v6413_v58  ;;  %v1758_v56 = vmul.f32 %v6316_v43, %v6416_v37  ;;  %v1759_v11 = vmul.f32 %v6316_v43, %v6419_v9 }
 0x203   : > { %v1777_v10 = vstv %s6378_s30  ;;  %v1760_v21 = vmul.f32 %v6316_v43, %v6422_v42  ;;  %v1761_v22 = vmul.f32 %v6316_v43, %v6425_v28  ;;  %v1762_v17 = vadd.f32 %v1748_v36, %v6313_v30 }
 0x204   : > { %v1763_v19 = vadd.f32 %v1749_v48, %v6313_v30  ;;  %v1764_v20 = vadd.f32 %v1750_v49, %v6313_v30  ;;  %v1765_v3 = vadd.f32 %v1751_v40, %v6313_v30  ;;  %v1766_v47 = vadd.f32 %v1752_v61, %v6313_v30 }
 0x205   : > { %v1767_v26 = vadd.f32 %v1753_v44, %v6313_v30  ;;  %v1768_v4 = vadd.f32 %v1754_v51, %v6313_v30  ;;  %v1769_v27 = vadd.f32 %v1755_v2, %v6313_v30  ;;  %v1770_v60 = vadd.f32 %v1756_v57, %v6313_v30 }
 0x206   : > { %v1771_v43 = vadd.f32 %v1757_v8, %v6313_v30  ;;  %v1772_v62 = vadd.f32 %v1758_v56, %v6313_v30  ;;  %v1773_v23 = vadd.f32 %v1759_v11, %v6313_v30  ;;  %v1778_v7 = vmul.f32 %v1777_v10, %v6384_v55 }
 0x207   : > { %v1779_v6 = vmul.f32 %v1777_v10, %v6387_v13  ;;  %v1780_v15 = vmul.f32 %v1777_v10, %v6390_v0  ;;  %v1781_v35 = vmul.f32 %v1777_v10, %v6393_v38  ;;  %v1782_v14 = vmul.f32 %v1777_v10, %v6396_v34 }
 0x208   : > { %v1783_v63 = vmul.f32 %v1777_v10, %v6399_v12  ;;  %v1784_v16 = vmul.f32 %v1777_v10, %v6402_v1  ;;  %v1785_v18 = vmul.f32 %v1777_v10, %v6407_v33  ;;  %v1786_v29 = vmul.f32 %v1777_v10, %v6410_v25 }
 0x209   : > { %v1787_v54 = vmul.f32 %v1777_v10, %v6413_v58  ;;  %v1788_v52 = vmul.f32 %v1777_v10, %v6416_v37  ;;  %v1789_v24 = vmul.f32 %v1777_v10, %v6419_v9  ;;  %v1790_v46 = vmul.f32 %v1777_v10, %v6422_v42 }
 0x20a   : > { %v1791_v45 = vmul.f32 %v1777_v10, %v6425_v28  ;;  %vm1806_vm10 = vcmask 1046528   ;;  %v1807_v59 = vrot.slane %v1778_v7, 1  ;;  %v1808_v39 = vrot.slane %v1785_v18, 1 }
 0x20b   : > { %v1810_v41 = vrot.slane %v1779_v6, 1  ;;  %v1811_v31 = vrot.slane %v1786_v29, 1  ;;  %v1813_v32 = vrot.slane %v1780_v15, 1  ;;  %v1814_v5 = vrot.slane %v1787_v54, 1 }
 0x20c   : > { %v1816_v53 = vrot.slane %v1781_v35, 1  ;;  %v1809_v50 = vsel %vm1806_vm10, %v1807_v59, %v1808_v39  ;;  %v1817_v36 = vrot.slane %v1788_v52, 1  ;;  %v1819_v48 = vrot.slane %v1782_v14, 1 }
 0x20d   : > { %v1820_v49 = vrot.slane %v1789_v24, 1  ;;  %v1812_v40 = vsel %vm1806_vm10, %v1810_v41, %v1811_v31  ;;  %v1815_v61 = vsel %vm1806_vm10, %v1813_v32, %v1814_v5  ;;  %v1822_v44 = vrot.slane %v1783_v63, 1 }
 0x20e   : > { %v1823_v51 = vrot.slane %v1790_v46, 1  ;;  %v1818_v2 = vsel %vm1806_vm10, %v1816_v53, %v1817_v36  ;;  %v1825_v8 = vrot.slane %v1784_v16, 1  ;;  %v1826_v56 = vrot.slane %v1791_v45, 1 }
 0x20f   : > { %v1821_v57 = vsel %vm1806_vm10, %v1819_v48, %v1820_v49  ;;  %v1774_v11 = vadd.f32 %v1760_v21, %v6313_v30  ;;  %v1775_v10 = vadd.f32 %v1761_v22, %v6313_v30  ;;  %v1842_v6 = vadd.f32 %v1809_v50, %v1762_v17 }
 0x210   : > { %v1824_v7 = vsel %vm1806_vm10, %v1822_v44, %v1823_v51  ;;  %v1827_v15 = vsel %vm1806_vm10, %v1825_v8, %v1826_v56  ;;  %v1843_v35 = vadd.f32 %v1812_v40, %v1763_v19  ;;  %v1844_v14 = vadd.f32 %v1815_v61, %v1764_v20 }
 0x211   : > { %v1845_v63 = vadd.f32 %v1818_v2, %v1765_v3  ;;  %v1846_v18 = vadd.f32 %v1821_v57, %v1766_v47  ;;  %v1847_v29 = vadd.f32 %v1824_v7, %v1767_v26  ;;  %v1848_v54 = vadd.f32 %v1827_v15, %v1768_v4 }
 0x212   : > { %v1849_v52 = vadd.f32 %v1808_v39, %v1769_v27  ;;  %v1850_v16 = vadd.f32 %v1811_v31, %v1770_v60  ;;  %v1851_v24 = vadd.f32 %v1814_v5, %v1771_v43  ;;  %v1852_v46 = vadd.f32 %v1817_v36, %v1772_v62 }
 0x213   : > { %v1853_v21 = vadd.f32 %v1820_v49, %v1773_v23  ;;  %v1854_v45 = vadd.f32 %v1823_v51, %v1774_v11  ;;  %v6493_v30 = vadd.f32 %v1826_v56, %v1775_v10  ;;  %v1857_v22 = vstv %s6480_s5 }
 0x214   : > { %v6497_v59 = vstv %s6482_s1  ;;  %v1858_v17 = vmul.f32 %v1857_v22, %v6384_v55  ;;  %v1859_v19 = vmul.f32 %v1857_v22, %v6387_v13  ;;  %v1860_v20 = vmul.f32 %v1857_v22, %v6390_v0 }
 0x215   : > { %v1861_v3 = vmul.f32 %v1857_v22, %v6393_v38  ;;  %v1862_v47 = vmul.f32 %v1857_v22, %v6396_v34  ;;  %v1863_v26 = vmul.f32 %v1857_v22, %v6399_v12  ;;  %v1864_v4 = vmul.f32 %v1857_v22, %v6402_v1 }
 0x216   : > { %v1865_v27 = vmul.f32 %v1857_v22, %v6407_v33  ;;  %v1866_v60 = vmul.f32 %v1857_v22, %v6410_v25  ;;  %v1867_v43 = vmul.f32 %v1857_v22, %v6413_v58  ;;  %v1868_v62 = vmul.f32 %v1857_v22, %v6416_v37 }
 0x217   : > { %v1869_v23 = vmul.f32 %v1857_v22, %v6419_v9  ;;  %v1870_v39 = vmul.f32 %v1857_v22, %v6422_v42  ;;  %v6515_v41 = vmul.f32 %v1857_v22, %v6425_v28  ;;  %v1886_v31 = vrot.slane %v1858_v17, 2 }
 0x218   : > { %v1887_v32 = vrot.slane %v1865_v27, 2  ;;  %v1889_v5 = vrot.slane %v1859_v19, 2  ;;  %v1890_v53 = vrot.slane %v1866_v60, 2  ;;  %v1892_v50 = vrot.slane %v1860_v20, 2 }
 0x219   : > { %v1893_v36 = vrot.slane %v1867_v43, 2  ;;  %v1895_v49 = vrot.slane %v1861_v3, 2  ;;  %v1896_v40 = vrot.slane %v1868_v62, 2  ;;  %v1898_v61 = vrot.slane %v1862_v47, 2 }
 0x21a   : > { %v1888_v48 = vsel %vm965_vm0, %v1886_v31, %v1887_v32  ;;  %v1891_v44 = vsel %vm965_vm0, %v1889_v5, %v1890_v53  ;;  %v1899_v2 = vrot.slane %v1869_v23, 2  ;;  %v1901_v57 = vrot.slane %v1863_v26, 2 }
 0x21b   : > { %v1894_v51 = vsel %vm965_vm0, %v1892_v50, %v1893_v36  ;;  %v1897_v8 = vsel %vm965_vm0, %v1895_v49, %v1896_v40  ;;  %v1902_v56 = vrot.slane %v1870_v39, 2  ;;  %v1904_v11 = vrot.slane %v1864_v4, 2 }
 0x21c   : > { %v1905_v10 = vrot.slane %v6515_v41, 2  ;;  %vm1965_vm11 = vcmask 1044480   ;;  %v1900_v7 = vsel %vm965_vm0, %v1898_v61, %v1899_v2  ;;  %v1921_v15 = vadd.f32 %v1888_v48, %v1842_v6 }
 0x21d   : > { %v1922_v22 = vadd.f32 %v1891_v44, %v1843_v35  ;;  %v6524_v17 = vstv %s6503_s27  ;;  %v1903_v19 = vsel %vm965_vm0, %v1901_v57, %v1902_v56  ;;  %v1923_v3 = vadd.f32 %v1894_v51, %v1844_v14 }
 0x21e   : > { %v1906_v20 = vsel %vm965_vm0, %v1904_v11, %v1905_v10  ;;  %v1924_v47 = vadd.f32 %v1897_v8, %v1845_v63  ;;  %v1925_v26 = vadd.f32 %v1900_v7, %v1846_v18  ;;  %v1926_v27 = vadd.f32 %v1903_v19, %v1847_v29 }
 0x21f   : > { %v1927_v60 = vadd.f32 %v1906_v20, %v1848_v54  ;;  %v1928_v43 = vadd.f32 %v1887_v32, %v1849_v52  ;;  %v1929_v4 = vadd.f32 %v1890_v53, %v1850_v16  ;;  %v1930_v62 = vadd.f32 %v1893_v36, %v1851_v24 }
 0x220   : > { %v1931_v23 = vadd.f32 %v1896_v40, %v1852_v46  ;;  %v1932_v39 = vadd.f32 %v1899_v2, %v1853_v21  ;;  %v1933_v41 = vadd.f32 %v1902_v56, %v1854_v45  ;;  %v1937_v6 = vmul.f32 %v6497_v59, %v6384_v55 }
 0x221   : > { %v1938_v35 = vmul.f32 %v6497_v59, %v6387_v13  ;;  %v1939_v31 = vmul.f32 %v6497_v59, %v6390_v0  ;;  %v1940_v14 = vmul.f32 %v6497_v59, %v6393_v38  ;;  %v1941_v63 = vmul.f32 %v6497_v59, %v6396_v34 }
 0x222   : > { %v1942_v18 = vmul.f32 %v6497_v59, %v6399_v12  ;;  %v1943_v29 = vmul.f32 %v6497_v59, %v6402_v1  ;;  %v1944_v54 = vmul.f32 %v6497_v59, %v6407_v33  ;;  %v1945_v52 = vmul.f32 %v6497_v59, %v6410_v25 }
 0x223   : > { %v1946_v16 = vmul.f32 %v6497_v59, %v6413_v58  ;;  %v1947_v24 = vmul.f32 %v6497_v59, %v6416_v37  ;;  %v1948_v46 = vmul.f32 %v6497_v59, %v6419_v9  ;;  %v1949_v21 = vmul.f32 %v6497_v59, %v6422_v42 }
 0x224   : > { %v6556_v45 = vmul.f32 %v6497_v59, %v6425_v28  ;;  %v1966_v32 = vrot.slane %v1937_v6, 3  ;;  %v1967_v5 = vrot.slane %v1944_v54, 3  ;;  %v1969_v53 = vrot.slane %v1938_v35, 3 }
 0x225   : > { %v1970_v50 = vrot.slane %v1945_v52, 3  ;;  %v1972_v36 = vrot.slane %v1939_v31, 3  ;;  %v1973_v48 = vrot.slane %v1946_v16, 3  ;;  %v1975_v49 = vrot.slane %v1940_v14, 3 }
 0x226   : > { %v1976_v40 = vrot.slane %v1947_v24, 3  ;;  %v1978_v61 = vrot.slane %v1941_v63, 3  ;;  %v1968_v44 = vsel %vm1965_vm11, %v1966_v32, %v1967_v5  ;;  %v1979_v2 = vrot.slane %v1948_v46, 3 }
 0x227   : > { %v1971_v51 = vsel %vm1965_vm11, %v1969_v53, %v1970_v50  ;;  %v1981_v57 = vrot.slane %v1942_v18, 3  ;;  %v1974_v8 = vsel %vm1965_vm11, %v1972_v36, %v1973_v48  ;;  %v1982_v56 = vrot.slane %v1949_v21, 3 }
 0x228   : > { %v1977_v59 = vsel %vm1965_vm11, %v1975_v49, %v1976_v40  ;;  %v1984_v11 = vrot.slane %v1943_v29, 3  ;;  %v1934_v7 = vadd.f32 %v1905_v10, %v6493_v30  ;;  %v1980_v19 = vsel %vm1965_vm11, %v1978_v61, %v1979_v2 }
 0x229   : > { %v1985_v20 = vrot.slane %v6556_v45, 3  ;;  %v2001_v6 = vadd.f32 %v1968_v44, %v1921_v15  ;;  %v1983_v35 = vsel %vm1965_vm11, %v1981_v57, %v1982_v56  ;;  %v2002_v31 = vadd.f32 %v1971_v51, %v1922_v22 }
 0x22a   : > { %v2003_v14 = vadd.f32 %v1974_v8, %v1923_v3  ;;  %v2004_v63 = vadd.f32 %v1977_v59, %v1924_v47  ;;  %v2005_v54 = vadd.f32 %v1980_v19, %v1925_v26  ;;  %v2006_v52 = vadd.f32 %v1983_v35, %v1926_v27 }
 0x22b   : > { %v1986_v18 = vsel %vm1965_vm11, %v1984_v11, %v1985_v20  ;;  %v2008_v16 = vadd.f32 %v1967_v5, %v1928_v43  ;;  %v2009_v46 = vadd.f32 %v1970_v50, %v1929_v4  ;;  %v2010_v29 = vadd.f32 %v1973_v48, %v1930_v62 }
 0x22c   : > { %v2007_v24 = vadd.f32 %v1986_v18, %v1927_v60  ;;  %v2011_v21 = vadd.f32 %v1976_v40, %v1931_v23  ;;  %v2012_v30 = vadd.f32 %v1979_v2, %v1932_v39  ;;  %v2013_v10 = vadd.f32 %v1982_v56, %v1933_v41 }
 0x22d   : > { %v2017_v45 = vmul.f32 %v6524_v17, %v6384_v55  ;;  %v2018_v15 = vmul.f32 %v6524_v17, %v6387_v13  ;;  %v2019_v22 = vmul.f32 %v6524_v17, %v6390_v0  ;;  %v2020_v3 = vmul.f32 %v6524_v17, %v6393_v38 }
 0x22e   : > { %v2021_v47 = vmul.f32 %v6524_v17, %v6396_v34  ;;  %v2022_v26 = vmul.f32 %v6524_v17, %v6399_v12  ;;  %v2023_v27 = vmul.f32 %v6524_v17, %v6402_v1  ;;  %v2024_v60 = vmul.f32 %v6524_v17, %v6407_v33 }
 0x22f   : > { %v2025_v43 = vmul.f32 %v6524_v17, %v6410_v25  ;;  %v2026_v4 = vmul.f32 %v6524_v17, %v6413_v58  ;;  %v2027_v62 = vmul.f32 %v6524_v17, %v6416_v37  ;;  %v2028_v23 = vmul.f32 %v6524_v17, %v6419_v9 }
 0x230   : > { %v2029_v39 = vmul.f32 %v6524_v17, %v6422_v42  ;;  %v6595_v41 = vmul.f32 %v6524_v17, %v6425_v28  ;;  %v2045_v32 = vrot.slane %v2017_v45, 4  ;;  %v2046_v5 = vrot.slane %v2024_v60, 4 }
 0x231   : > { %v2048_v53 = vrot.slane %v2018_v15, 4  ;;  %v2049_v50 = vrot.slane %v2025_v43, 4  ;;  %v2051_v36 = vrot.slane %v2019_v22, 4  ;;  %v2052_v48 = vrot.slane %v2026_v4, 4 }
 0x232   : > { %v2054_v49 = vrot.slane %v2020_v3, 4  ;;  %v2055_v40 = vrot.slane %v2027_v62, 4  ;;  %v2047_v61 = vsel %vm1736_vm9, %v2045_v32, %v2046_v5  ;;  %v2057_v51 = vrot.slane %v2021_v47, 4 }
 0x233   : > { %v2050_v44 = vsel %vm1736_vm9, %v2048_v53, %v2049_v50  ;;  %v2058_v2 = vrot.slane %v2028_v23, 4  ;;  %v2053_v57 = vsel %vm1736_vm9, %v2051_v36, %v2052_v48  ;;  %v2060_v8 = vrot.slane %v2022_v26, 4 }
 0x234   : > { %v2056_v17 = vsel %vm1736_vm9, %v2054_v49, %v2055_v40  ;;  %v2061_v59 = vrot.slane %v2029_v39, 4  ;;  %v2014_v56 = vadd.f32 %v1985_v20, %v1934_v7  ;;  %v2063_v19 = vrot.slane %v2023_v27, 4 }
 0x235   : > { %v2059_v11 = vsel %vm1736_vm9, %v2057_v51, %v2058_v2  ;;  %v2064_v35 = vrot.slane %v6595_v41, 4  ;;  %v2080_v45 = vadd.f32 %v2047_v61, %v2001_v6  ;;  %v2081_v15 = vadd.f32 %v2050_v44, %v2002_v31 }
 0x236   : > { %v2062_v18 = vsel %vm1736_vm9, %v2060_v8, %v2061_v59  ;;  %v2082_v22 = vadd.f32 %v2053_v57, %v2003_v14  ;;  %v2083_v47 = vadd.f32 %v2056_v17, %v2004_v63  ;;  %v2084_v60 = vadd.f32 %v2059_v11, %v2005_v54 }
 0x237   : > { %v2065_v3 = vsel %vm1736_vm9, %v2063_v19, %v2064_v35  ;;  %v2085_v43 = vadd.f32 %v2062_v18, %v2006_v52  ;;  %v2087_v26 = vadd.f32 %v2046_v5, %v2008_v16  ;;  %v2088_v62 = vadd.f32 %v2049_v50, %v2009_v46 }
 0x238   : > { %v2086_v4 = vadd.f32 %v2065_v3, %v2007_v24  ;;  %v2089_v7 = vadd.f32 %v2052_v48, %v2010_v29  ;;  %v2090_v20 = vadd.f32 %v2055_v40, %v2011_v21  ;;  %v2091_v23 = vadd.f32 %v2058_v2, %v2012_v30 }
 0x239   : > { %v2092_v27 = vadd.f32 %v2061_v59, %v2013_v10  ;;  %v2095_v39 = vstv %s6597_s13  ;;  %v2093_v18 = vadd.f32 %v2064_v35, %v2014_v56  ;;  %vm2203_vm12 = vcmask 1041408  }
 0x23a   : > { %v2096_v41 = vmul.f32 %v2095_v39, %v6384_v55  ;;  %v2097_v32 = vmul.f32 %v2095_v39, %v6387_v13  ;;  %v2098_v6 = vmul.f32 %v2095_v39, %v6390_v0  ;;  %v2099_v31 = vmul.f32 %v2095_v39, %v6393_v38 }
 0x23b   : > { %v2100_v14 = vmul.f32 %v2095_v39, %v6396_v34  ;;  %v2101_v63 = vmul.f32 %v2095_v39, %v6399_v12  ;;  %v2102_v54 = vmul.f32 %v2095_v39, %v6402_v1  ;;  %v2103_v52 = vmul.f32 %v2095_v39, %v6407_v33 }
 0x23c   : > { %v2104_v16 = vmul.f32 %v2095_v39, %v6410_v25  ;;  %v2105_v24 = vmul.f32 %v2095_v39, %v6413_v58  ;;  %v2106_v46 = vmul.f32 %v2095_v39, %v6416_v37  ;;  %v2107_v29 = vmul.f32 %v2095_v39, %v6419_v9 }
 0x23d   : > { %v2108_v21 = vmul.f32 %v2095_v39, %v6422_v42  ;;  %v2109_v30 = vmul.f32 %v2095_v39, %v6425_v28  ;;  %v2124_v10 = vrot.slane %v2096_v41, 5  ;;  %v2125_v5 = vrot.slane %v2103_v52, 5 }
 0x23e   : > { %v2127_v53 = vrot.slane %v2097_v32, 5  ;;  %v2128_v50 = vrot.slane %v2104_v16, 5  ;;  %v2130_v36 = vrot.slane %v2098_v6, 5  ;;  %v2131_v48 = vrot.slane %v2105_v24, 5 }
 0x23f   : > { %v2126_v49 = vsel %vm1728_vm8, %v2124_v10, %v2125_v5  ;;  %v2133_v40 = vrot.slane %v2099_v31, 5  ;;  %v2134_v61 = vrot.slane %v2106_v46, 5  ;;  %v2136_v44 = vrot.slane %v2100_v14, 5 }
 0x240   : > { %v2129_v51 = vsel %vm1728_vm8, %v2127_v53, %v2128_v50  ;;  %v2132_v2 = vsel %vm1728_vm8, %v2130_v36, %v2131_v48  ;;  %v2137_v57 = vrot.slane %v2107_v29, 5  ;;  %v2139_v17 = vrot.slane %v2101_v63, 5 }
 0x241   : > { %v2135_v8 = vsel %vm1728_vm8, %v2133_v40, %v2134_v61  ;;  %v2140_v59 = vrot.slane %v2108_v21, 5  ;;  %v2142_v11 = vrot.slane %v2102_v54, 5  ;;  %v2143_v19 = vrot.slane %v2109_v30, 5 }
 0x242   : > { %v2138_v3 = vsel %vm1728_vm8, %v2136_v44, %v2137_v57  ;;  %v2159_v39 = vadd.f32 %v2126_v49, %v2080_v45  ;;  %v2160_v41 = vadd.f32 %v2129_v51, %v2081_v15  ;;  %v2161_v31 = vadd.f32 %v2132_v2, %v2082_v22 }
 0x243   : > { %v2141_v32 = vsel %vm1728_vm8, %v2139_v17, %v2140_v59  ;;  %v2144_v6 = vsel %vm1728_vm8, %v2142_v11, %v2143_v19  ;;  %v2162_v14 = vadd.f32 %v2135_v8, %v2083_v47  ;;  %v2163_v52 = vadd.f32 %v2138_v3, %v2084_v60 }
 0x244   : > { %v2164_v16 = vadd.f32 %v2141_v32, %v2085_v43  ;;  %v2165_v63 = vadd.f32 %v2144_v6, %v2086_v4  ;;  %v2166_v24 = vadd.f32 %v2125_v5, %v2087_v26  ;;  %v2167_v46 = vadd.f32 %v2128_v50, %v2088_v62 }
 0x245   : > { %v2168_v29 = vadd.f32 %v2131_v48, %v2089_v7  ;;  %v2169_v54 = vadd.f32 %v2134_v61, %v2090_v20  ;;  %v2170_v21 = vadd.f32 %v2137_v57, %v2091_v23  ;;  %v2171_v56 = vadd.f32 %v2140_v59, %v2092_v27 }
 0x246   : > { %v2172_v35 = vadd.f32 %v2143_v19, %v2093_v18  ;;  %v2174_v30 = vstv %s6622_s0  ;;  %vm2253_vm13 = vcmask 1040384   ;;  %vm2487_vm14 = vcmask 1045508  }
 0x247   : > { %v2175_v45 = vmul.f32 %v2174_v30, %v6384_v55  ;;  %v2176_v15 = vmul.f32 %v2174_v30, %v6387_v13  ;;  %v2177_v10 = vmul.f32 %v2174_v30, %v6390_v0  ;;  %v2178_v22 = vmul.f32 %v2174_v30, %v6393_v38 }
 0x248   : > { %v2179_v47 = vmul.f32 %v2174_v30, %v6396_v34  ;;  %v2180_v60 = vmul.f32 %v2174_v30, %v6399_v12  ;;  %v2181_v43 = vmul.f32 %v2174_v30, %v6402_v1  ;;  %v2182_v4 = vmul.f32 %v2174_v30, %v6407_v33 }
 0x249   : > { %v2183_v26 = vmul.f32 %v2174_v30, %v6410_v25  ;;  %v2184_v62 = vmul.f32 %v2174_v30, %v6413_v58  ;;  %v2185_v55 = vmul.f32 %v2174_v30, %v6416_v37  ;;  %v2186_v13 = vmul.f32 %v2174_v30, %v6419_v9 }
 0x24a   : > { %v2187_v0 = vmul.f32 %v2174_v30, %v6422_v42  ;;  %v2188_v38 = vmul.f32 %v2174_v30, %v6425_v28  ;;  %v2204_v7 = vrot.slane %v2175_v45, 6  ;;  %v2205_v34 = vrot.slane %v2182_v4, 6 }
 0x24b   : > { %v2207_v20 = vrot.slane %v2176_v15, 6  ;;  %v2208_v12 = vrot.slane %v2183_v26, 6  ;;  %v2210_v23 = vrot.slane %v2177_v10, 6  ;;  %v2211_v1 = vrot.slane %v2184_v62, 6 }
 0x24c   : > { %v2206_v33 = vsel %vm2203_vm12, %v2204_v7, %v2205_v34  ;;  %v2213_v27 = vrot.slane %v2178_v22, 6  ;;  %v2214_v25 = vrot.slane %v2185_v55, 6  ;;  %v2216_v5 = vrot.slane %v2179_v47, 6 }
 0x24d   : > { %v2209_v58 = vsel %vm2203_vm12, %v2207_v20, %v2208_v12  ;;  %v2212_v37 = vsel %vm2203_vm12, %v2210_v23, %v2211_v1  ;;  %v2217_v9 = vrot.slane %v2186_v13, 6  ;;  %v2219_v53 = vrot.slane %v2180_v60, 6 }
 0x24e   : > { %v2215_v42 = vsel %vm2203_vm12, %v2213_v27, %v2214_v25  ;;  %v2220_v28 = vrot.slane %v2187_v0, 6  ;;  %v2222_v50 = vrot.slane %v2181_v43, 6  ;;  %v2223_v36 = vrot.slane %v2188_v38, 6 }
 0x24f   : > { %v2218_v48 = vsel %vm2203_vm12, %v2216_v5, %v2217_v9  ;;  %v6651_v49 = vadd.f32 %v2206_v33, %v2159_v39  ;;  %v6653_v40 = vadd.f32 %v2209_v58, %v2160_v41  ;;  %v6657_v51 = vadd.f32 %v2212_v37, %v2161_v31 }
 0x250   : > { %v2221_v61 = vsel %vm2203_vm12, %v2219_v53, %v2220_v28  ;;  %v2224_v44 = vsel %vm2203_vm12, %v2222_v50, %v2223_v36  ;;  %v6659_v2 = vadd.f32 %v2215_v42, %v2162_v14  ;;  %v6661_v57 = vadd.f32 %v2218_v48, %v2163_v52 }
 0x251   : > { %v6663_v17 = vadd.f32 %v2221_v61, %v2164_v16  ;;  %v6665_v8 = vadd.f32 %v2205_v34, %v2166_v24  ;;  %v6667_v59 = vadd.f32 %v2208_v12, %v2167_v46  ;;  %v6669_v11 = vadd.f32 %v2211_v1, %v2168_v29 }
 0x252   : > { %v6671_v19 = vadd.f32 %v2214_v25, %v2169_v54  ;;  %v6673_v18 = vadd.f32 %v2217_v9, %v2170_v21  ;;  %v6675_v3 = vadd.f32 %v2220_v28, %v2171_v56  ;;  %v6677_v39 = vadd.f32 %v2224_v44, %v2165_v63 }
 0x253   : > { %v6679_v41 = vadd.f32 %v2223_v36, %v2172_v35  ;;  %v2254_v32 = vsel %vm2253_vm13, %v6665_v8, -inf  ;;  %v2262_v6 = vsel %vm2253_vm13, %v6667_v59, -inf  ;;  %v2270_v52 = vsel %vm2253_vm13, %v6669_v11, -inf }
 0x254   : > { %v2255_v31 = vmax.f32 %v6651_v49, %v2254_v32  ;;  %v2263_v14 = vmax.f32 %v6653_v40, %v2262_v6  ;;  %v2278_v16 = vsel %vm2253_vm13, %v6671_v19, -inf  ;;  %v2271_v63 = vmax.f32 %v6657_v51, %v2270_v52 }
 0x255   : > { %v2279_v24 = vmax.f32 %v6659_v2, %v2278_v16  ;;  %v2286_v46 = vsel %vm2253_vm13, %v6673_v18, -inf  ;;  %v2294_v29 = vsel %vm2253_vm13, %v6675_v3, -inf  ;;  %v2302_v15 = vsel %vm2253_vm13, %v6679_v41, -inf }
 0x256   : > { %v2256_v54 = vrot.slane %v2255_v31, 4  ;;  %v2264_v21 = vrot.slane %v2263_v14, 4  ;;  %v2287_v56 = vmax.f32 %v6661_v57, %v2286_v46  ;;  %v2295_v35 = vmax.f32 %v6663_v17, %v2294_v29 }
 0x257   : > { %v2272_v30 = vrot.slane %v2271_v63, 4  ;;  %v2280_v45 = vrot.slane %v2279_v24, 4  ;;  %v2303_v26 = vmax.f32 %v6677_v39, %v2302_v15  ;;  %vm2492_vm15 = vcmask 1042433  }
 0x258   : > { %v2257_v10 = vmax.f32 %v2255_v31, %v2256_v54  ;;  %v2265_v22 = vmax.f32 %v2263_v14, %v2264_v21  ;;  %v2288_v47 = vrot.slane %v2287_v56, 4  ;;  %v2296_v60 = vrot.slane %v2295_v35, 4 }
 0x259   : > { %v2273_v43 = vmax.f32 %v2271_v63, %v2272_v30  ;;  %v2281_v4 = vmax.f32 %v2279_v24, %v2280_v45  ;;  %v2304_v34 = vrot.slane %v2303_v26, 4  ;;  %vm2495_vm4 = vcmask 1046533  }
 0x25a   : > { %v2258_v62 = vrot.slane %v2257_v10, 2  ;;  %v2266_v55 = vrot.slane %v2265_v22, 2  ;;  %v2289_v13 = vmax.f32 %v2287_v56, %v2288_v47  ;;  %v2297_v0 = vmax.f32 %v2295_v35, %v2296_v60 }
 0x25b   : > { %v2274_v38 = vrot.slane %v2273_v43, 2  ;;  %v2282_v7 = vrot.slane %v2281_v4, 2  ;;  %v2305_v25 = vmax.f32 %v2303_v26, %v2304_v34  ;;  %vm2497_vm8 = vcmask 1044481  }
 0x25c   : > { %v2259_v20 = vmax.f32 %v2257_v10, %v2258_v62  ;;  %v2267_v12 = vmax.f32 %v2265_v22, %v2266_v55  ;;  %v2290_v23 = vrot.slane %v2289_v13, 2  ;;  %v2298_v1 = vrot.slane %v2297_v0, 2 }
 0x25d   : > { %v2275_v33 = vmax.f32 %v2273_v43, %v2274_v38  ;;  %v2283_v27 = vmax.f32 %v2281_v4, %v2282_v7  ;;  %v2306_v28 = vrot.slane %v2305_v25, 2  ;;  %vm8388_vm11 = vcmask 1043458  }
 0x25e   : > { %v2260_v5 = vrot.slane %v2259_v20, 1  ;;  %v2268_v58 = vrot.slane %v2267_v12, 1  ;;  %v2291_v37 = vmax.f32 %v2289_v13, %v2290_v23  ;;  %v2299_v9 = vmax.f32 %v2297_v0, %v2298_v1 }
 0x25f   : > { %v2276_v53 = vrot.slane %v2275_v33, 1  ;;  %v2284_v42 = vrot.slane %v2283_v27, 1  ;;  %v2307_v6 = vmax.f32 %v2305_v25, %v2306_v28 }
 0x260   : > { %v2261_v50 = vmax.f32 %v2259_v20, %v2260_v5  ;;  %v2269_v36 = vmax.f32 %v2267_v12, %v2268_v58  ;;  %v2292_v48 = vrot.slane %v2291_v37, 1  ;;  %v2300_v61 = vrot.slane %v2299_v9, 1 }
 0x261   : > { %v2277_v44 = vmax.f32 %v2275_v33, %v2276_v53  ;;  %v2285_v32 = vmax.f32 %v2283_v27, %v2284_v42  ;;  %v2308_v63 = vrot.slane %v2307_v6, 1 }
 0x262   : > { %v2293_v31 = vmax.f32 %v2291_v37, %v2292_v48  ;;  %v2301_v14 = vmax.f32 %v2299_v9, %v2300_v61  ;;  %v2310_v52 = vsub.f32 %v6651_v49, %v2261_v50  ;;  %v2311_v16 = vsub.f32 %v6653_v40, %v2269_v36 }
 0x263   : > { %v2312_v24 = vsub.f32 %v6657_v51, %v2277_v44  ;;  %v2313_v46 = vsub.f32 %v6659_v2, %v2285_v32  ;;  %v2309_v54 = vmax.f32 %v2307_v6, %v2308_v63  ;;  %v2317_v15 = vsub.f32 %v6665_v8, %v2261_v50 }
 0x264   : > { %v2314_v29 = vsub.f32 %v6661_v57, %v2293_v31  ;;  %v2315_v21 = vsub.f32 %v6663_v17, %v2301_v14  ;;  %v2324_v56 = vmul.f32 1.442695, %v2310_v52  ;;  %v2326_v35 = vmul.f32 1.442695, %v2311_v16 }
 0x265   : > { %v2328_v30 = vmul.f32 1.442695, %v2312_v24  ;;  %v2316_v45 = vsub.f32 %v6677_v39, %v2309_v54  ;;  %v2330_v49 = vmul.f32 1.442695, %v2313_v46  ;;  %v2318_v40 = vsub.f32 %v6667_v59, %v2269_v36 }
 0x266   : > { %4297 = vpow2.f32 %v2324_v56  ;;  %v2332_v10 = vmul.f32 1.442695, %v2314_v29  ;;  %v2319_v51 = vsub.f32 %v6669_v11, %v2277_v44  ;;  %v2334_v2 = vmul.f32 1.442695, %v2315_v21 }
 0x267   : > { %4299 = vpow2.f32 %v2326_v35  ;;  %v2320_v57 = vsub.f32 %v6671_v19, %v2285_v32  ;;  %v2336_v17 = vmul.f32 1.442695, %v2316_v45  ;;  %v2321_v22 = vsub.f32 %v6673_v18, %v2293_v31 }
 0x268   : > { %4301 = vpow2.f32 %v2328_v30  ;;  %v2338_v47 = vmul.f32 1.442695, %v2317_v15  ;;  %v2322_v39 = vsub.f32 %v6675_v3, %v2301_v14  ;;  %v2340_v8 = vmul.f32 1.442695, %v2318_v40 }
 0x269   : > { %4303 = vpow2.f32 %v2330_v49  ;;  %v2323_v59 = vsub.f32 %v6679_v41, %v2309_v54  ;;  %v2342_v60 = vmul.f32 1.442695, %v2319_v51  ;;  %v2344_v11 = vmul.f32 1.442695, %v2320_v57 }
 0x26a   : > { %4305 = vpow2.f32 %v2332_v10  ;;  %v2346_v19 = vmul.f32 1.442695, %v2321_v22  ;;  %v2348_v18 = vmul.f32 1.442695, %v2322_v39 }
 0x26b   : > { %4307 = vpow2.f32 %v2334_v2  ;;  %v2350_v3 = vmul.f32 1.442695, %v2323_v59 }
 0x26c   : > { %v6716_v43 = vpop.eup %4297  ;;  %4309 = vpow2.f32 %v2336_v17 }
 0x26d   : > { %v6718_v4 = vpop.eup %4299  ;;  %4311 = vpow2.f32 %v2338_v47 }
 0x26e   : > { %v6720_v26 = vpop.eup %4301  ;;  %4313 = vpow2.f32 %v2340_v8 }
 0x26f   : > { %v6722_v62 = vpop.eup %4303  ;;  %4315 = vpow2.f32 %v2342_v60 }
 0x270   : > { %v6724_v55 = vpop.eup %4305  ;;  %4317 = vpow2.f32 %v2344_v11 }
 0x271   : > { %v6726_v41 = vpop.eup %4307  ;;  %4319 = vpow2.f32 %v2346_v19 }
 0x272   : > { %v6728_v13 = vpop.eup %4309  ;;  %4321 = vpow2.f32 %v2348_v18 }
 0x273   : > { %v6730_v0 = vpop.eup %4311  ;;  %4323 = vpow2.f32 %v2350_v3 }
 0x274   : > { %v6732_v38 = vpop.eup %4313  ;;  %v2352_v7 = vsel %vm2253_vm13, %v6730_v0, 0.0 }
 0x275   : > { %v6736_v34 = vpop.eup %4315  ;;  %v2353_v20 = vadd.f32 %v6716_v43, %v2352_v7  ;;  %v2360_v12 = vsel %vm2253_vm13, %v6732_v38, 0.0 }
 0x276   : > { %v6741_v23 = vpop.eup %4317  ;;  %v2361_v1 = vadd.f32 %v6718_v4, %v2360_v12  ;;  %v2368_v33 = vsel %vm2253_vm13, %v6736_v34, 0.0 }
 0x277   : > { %v6746_v27 = vpop.eup %4319  ;;  %v2354_v25 = vrot.slane %v2353_v20, 4  ;;  %v2369_v5 = vadd.f32 %v6720_v26, %v2368_v33  ;;  %v2376_v58 = vsel %vm2253_vm13, %v6741_v23, 0.0 }
 0x278   : > { %v6751_v37 = vpop.eup %4321  ;;  %v2362_v9 = vrot.slane %v2361_v1, 4  ;;  %v2377_v53 = vadd.f32 %v6722_v62, %v2376_v58  ;;  %v2384_v42 = vsel %vm2253_vm13, %v6746_v27, 0.0 }
 0x279   : > { %v6756_v28 = vpop.eup %4323  ;;  %v2355_v50 = vadd.f32 %v2354_v25, %v2353_v20  ;;  %v2370_v36 = vrot.slane %v2369_v5, 4  ;;  %v2385_v48 = vadd.f32 %v6724_v55, %v2384_v42  ;;  %v2392_v61 = vsel %vm2253_vm13, %v6751_v37, 0.0 }
 0x27a   : > { %v2363_v44 = vadd.f32 %v2362_v9, %v2361_v1  ;;  %v2378_v32 = vrot.slane %v2377_v53, 4  ;;  %v2393_v6 = vadd.f32 %v6726_v41, %v2392_v61  ;;  %v2400_v31 = vsel %vm2253_vm13, %v6756_v28, 0.0 }
 0x27b   : > { %v2356_v14 = vrot.slane %v2355_v50, 2  ;;  %v2371_v52 = vadd.f32 %v2370_v36, %v2369_v5  ;;  %v2386_v16 = vrot.slane %v2385_v48, 4  ;;  %v2401_v63 = vadd.f32 %v6728_v13, %v2400_v31 }
 0x27c   : > { %v2364_v24 = vrot.slane %v2363_v44, 2  ;;  %v2379_v46 = vadd.f32 %v2378_v32, %v2377_v53  ;;  %v2394_v29 = vrot.slane %v2393_v6, 4 }
 0x27d   : > { %v2357_v54 = vadd.f32 %v2356_v14, %v2355_v50  ;;  %v2372_v21 = vrot.slane %v2371_v52, 2  ;;  %v2387_v56 = vadd.f32 %v2386_v16, %v2385_v48  ;;  %v2402_v35 = vrot.slane %v2401_v63, 4 }
 0x27e   : > { %v2365_v30 = vadd.f32 %v2364_v24, %v2363_v44  ;;  %v2380_v45 = vrot.slane %v2379_v46, 2  ;;  %v2395_v15 = vadd.f32 %v2394_v29, %v2393_v6 }
 0x27f   : > { %v2358_v49 = vrot.slane %v2357_v54, 1  ;;  %v2373_v40 = vadd.f32 %v2372_v21, %v2371_v52  ;;  %v2388_v10 = vrot.slane %v2387_v56, 2  ;;  %v2403_v51 = vadd.f32 %v2402_v35, %v2401_v63 }
 0x280   : > { %v2366_v2 = vrot.slane %v2365_v30, 1  ;;  %v2381_v57 = vadd.f32 %v2380_v45, %v2379_v46  ;;  %v2396_v17 = vrot.slane %v2395_v15, 2 }
 0x281   : > { %v2359_v22 = vadd.f32 %v2358_v49, %v2357_v54  ;;  %v2374_v47 = vrot.slane %v2373_v40, 1  ;;  %v2389_v39 = vadd.f32 %v2388_v10, %v2387_v56  ;;  %v2404_v8 = vrot.slane %v2403_v51, 2 }
 0x282   : > { %v2367_v59 = vadd.f32 %v2366_v2, %v2365_v30  ;;  %v2382_v60 = vrot.slane %v2381_v57, 1  ;;  %v2397_v11 = vadd.f32 %v2396_v17, %v2395_v15 }
 0x283   : > { %v2375_v19 = vadd.f32 %v2374_v47, %v2373_v40  ;;  %v2390_v18 = vrot.slane %v2389_v39, 1  ;;  %v2405_v3 = vadd.f32 %v2404_v8, %v2403_v51  ;;  %4325 = vrcp.f32 %v2359_v22 }
 0x284   : > { %v2383_v7 = vadd.f32 %v2382_v60, %v2381_v57  ;;  %v2398_v20 = vrot.slane %v2397_v11, 1  ;;  %4327 = vrcp.f32 %v2367_v59 }
 0x285   : > { %v2391_v12 = vadd.f32 %v2390_v18, %v2389_v39  ;;  %v2406_v1 = vrot.slane %v2405_v3, 1  ;;  %4329 = vrcp.f32 %v2375_v19 }
 0x286   : > { %v2399_v33 = vadd.f32 %v2398_v20, %v2397_v11  ;;  %4331 = vrcp.f32 %v2383_v7 }
 0x287   : > { %v2407_v25 = vadd.f32 %v2406_v1, %v2405_v3  ;;  %4333 = vrcp.f32 %v2391_v12 }
 0x288   : > { %4335 = vrcp.f32 %v2399_v33 }
 0x289   : > { %v4326_v5 = vpop.eup %4325  ;;  %4337 = vrcp.f32 %v2407_v25 }
 0x28a   : > { %v4328_v58 = vpop.eup %4327  ;;  %v2415_v9 = vmul.f32 %v4326_v5, %v2359_v22 }
 0x28b   : > { %v4330_v53 = vpop.eup %4329  ;;  %v2416_v42 = vmul.f32 %v4328_v58, %v2367_v59 }
 0x28c   : > { %v4332_v50 = vpop.eup %4331  ;;  %v2417_v36 = vmul.f32 %v4330_v53, %v2375_v19  ;;  %v2422_v48 = vsub.f32 2.0, %v2415_v9 }
 0x28d   : > { %v4334_v61 = vpop.eup %4333  ;;  %v2418_v44 = vmul.f32 %v4332_v50, %v2383_v7  ;;  %v2423_v32 = vsub.f32 2.0, %v2416_v42 }
 0x28e   : > { %v4336_v6 = vpop.eup %4335  ;;  %v2419_v31 = vmul.f32 %v4334_v61, %v2391_v12  ;;  %v2424_v14 = vsub.f32 2.0, %v2417_v36  ;;  %v2429_v52 = vmul.f32 %v4326_v5, %v2422_v48  ;;  %v4341_v48 = vld [vmem:[%s5762_s4 + $0x10] sm:$0xff] }
 0x28f   : > { %v4338_v16 = vpop.eup %4337  ;;  %v2420_v63 = vmul.f32 %v4336_v6, %v2399_v33  ;;  %v2425_v24 = vsub.f32 2.0, %v2418_v44  ;;  %v2430_v46 = vmul.f32 %v4328_v58, %v2423_v32  ;;  %v4342_v32 = vld [vmem:[%s5762_s4 + $0x18] sm:$0xff] }
 0x290   : > { %v2421_v29 = vmul.f32 %v4338_v16, %v2407_v25  ;;  %v2426_v54 = vsub.f32 2.0, %v2419_v31  ;;  %v2431_v21 = vmul.f32 %v4330_v53, %v2424_v14  ;;  %v6765_v30 = vmul.f32 9.0, %v2429_v52  ;;  %v4339_v53 = vld [vmem:[%s5762_s4] sm:$0xff] }
 0x291   : > { %v2427_v56 = vsub.f32 2.0, %v2420_v63  ;;  %v2432_v35 = vmul.f32 %v4332_v50, %v2425_v24  ;;  %v6767_v45 = vmul.f32 9.0, %v2430_v46  ;;  %v4340_v50 = vld [vmem:[%s5762_s4 + $0x8] sm:$0xff]  ;;  %v4343_v31 = vld [vmem:[%s5762_s4 + $0x20] sm:$0xff] }
 0x292   : > { %v2428_v15 = vsub.f32 2.0, %v2421_v29  ;;  %v2433_v49 = vmul.f32 %v4334_v61, %v2426_v54  ;;  %v6769_v40 = vmul.f32 9.0, %v2431_v21  ;;  %v6783_v39 = vmul.f32 %v6716_v43, %v6765_v30  ;;  %v4344_v24 = vld [vmem:[%s5762_s4 + $0x28] sm:$0xff]  ;;  %v4345_v29 = vld [vmem:[%s5762_s4 + $0x30] sm:$0xff]  ;;  %v4346_v21 = vld [vmem:[%s5762_s4 + $0x38] sm:$0xff] }
 0x293   : > { %v2434_v10 = vmul.f32 %v4336_v6, %v2427_v56  ;;  %v6771_v51 = vmul.f32 9.0, %v2432_v35  ;;  %v2444_v2 = vmul.f32 %v6718_v4, %v6767_v45 }
 0x294   : > { %v2435_v57 = vmul.f32 %v4338_v16, %v2428_v15  ;;  %v6775_v17 = vmul.f32 9.0, %v2433_v49  ;;  %v2445_v22 = vmul.f32 %v6720_v26, %v6769_v40  ;;  %v4347_v49 = vld [vmem:[%s5762_s4 + $0x40] sm:$0xff] }
 0x295   : > { %v6779_v47 = vmul.f32 9.0, %v2434_v10  ;;  %v2446_v8 = vmul.f32 %v6722_v62, %v6771_v51  ;;  %v6787_v59 = vrot.slane %v2444_v2, 7  ;;  %v4348_v2 = vld [vmem:[%s5762_s4 + $0x48] sm:$0xff] }
 0x296   : > { %v6789_v60 = vmul.f32 9.0, %v2435_v57  ;;  %v2447_v4 = vmul.f32 %v6724_v55, %v6775_v17  ;;  %v6795_v26 = vrot.slane %v2445_v22, 6  ;;  %v4349_v22 = vld [vmem:[%s5762_s4 + $0x50] sm:$0xff] }
 0x297   : > { %v2448_v11 = vmul.f32 %v6726_v41, %v6779_v47  ;;  %v6797_v19 = vrot.slane %v2446_v8, 5  ;;  %v2483_v43 = vsel %vm2253_vm13, %v6783_v39, %v6787_v59  ;;  %v2490_v52 = vsel %vm1690_vm5, %v6783_v39, %v6787_v59 }
 0x298   : > { %v2449_v62 = vmul.f32 %v6728_v13, %v6789_v60  ;;  %v6804_v18 = vrot.slane %v2447_v4, 4 }
 0x299   : > { %v6806_v3 = vrot.slane %v2448_v11, 3  ;;  %v2484_v55 = vsel %vm8386_vm6, %v6795_v26, %v6797_v19  ;;  %v2491_v16 = vsel %vm8389_vm7, %v6795_v26, %v6797_v19  ;;  %v4350_v11 = vld [vmem:[%s5762_s4 + $0x58] sm:$0xff] }
 0x29a   : > { %v6811_v41 = vrot.slane %v2449_v62, 2  ;;  %v2485_v7 = vsel %vm2203_vm12, %v2483_v43, %v2484_v55  ;;  %v2493_v35 = vsel %vm2492_vm15, %v2490_v52, %v2491_v16  ;;  %v4351_v62 = vld [vmem:[%s5762_s4 + $0x60] sm:$0xff] }
 0x29b   : > { %v2486_v20 = vsel %vm1658_vm1, %v6804_v18, %v6806_v3  ;;  %v2494_v63 = vsel %vm1660_vm2, %v6804_v18, %v6806_v3 }
 0x29c   : > { %v2488_v13 = vsel %vm2487_vm14, %v2486_v20, %v6811_v41  ;;  %v2496_v15 = vsel %vm2495_vm4, %v2494_v63, %v6811_v41 }
 0x29d   : > { %v2489_v12 = vsel %vm1736_vm9, %v2485_v7, %v2488_v13  ;;  %v2498_v4 = vsel %vm2497_vm8, %v2493_v35, %v2496_v15  ;;  %v4352_v7 = vld [vmem:[%s5762_s4 + $0x68] sm:$0xff]  ;;  %v4363_v35 = vld [vmem:[%s5762_s4 + $0xc0] sm:$0xff] }
 0x29e   : > { %v2553_v1 = vperm.slane %v2489_v12, 0  ;;  %v2554_v33 = vperm.slane %v2489_v12, 1  ;;  %v2555_v25 = vperm.slane %v2489_v12, 2  ;;  %v6820_v5 = vperm.slane %v2489_v12, 3 }
 0x29f   : > { %v6822_v58 = vperm.slane %v2489_v12, 4  ;;  %v6824_v9 = vperm.slane %v2489_v12, 5  ;;  %v6829_v44 = vperm.slane %v2489_v12, 6  ;;  %v2499_v13 = vrot.slane %v2498_v4, 1  ;;  %v4353_v12 = vld [vmem:[%s5762_s4 + $0x70] sm:$0x3f] }
 0x2a0   : > { %v2679_v42 = vmul.f32 %v4339_v53, %v2553_v1  ;;  %v2680_v36 = vmul.f32 %v4340_v50, %v2554_v33  ;;  %v2681_v61 = vmul.f32 %v4341_v48, %v2555_v25  ;;  %v2682_v6 = vmul.f32 %v4342_v32, %v6820_v5 }
 0x2a1   : > { %v2683_v14 = vmul.f32 %v4343_v31, %v6822_v58  ;;  %v2684_v46 = vmul.f32 %v4344_v24, %v6824_v9  ;;  %v2685_v54 = vmul.f32 %v4345_v29, %v6829_v44  ;;  %v2686_v56 = vmul.f32 %v4346_v21, %v2553_v1 }
 0x2a2   : > { %2868 = vst [vmem:[%s6834_s2] sm:$0xff] %v2679_v42  ;;  %v2687_v10 = vmul.f32 %v4347_v49, %v2554_v33  ;;  %v2688_v57 = vmul.f32 %v4348_v2, %v2555_v25  ;;  %v2689_v8 = vmul.f32 %v4349_v22, %v6820_v5  ;;  %v2690_v43 = vmul.f32 %v4350_v11, %v6822_v58  ;;  %v4354_v42 = vld [vmem:[%s5762_s4 + $0x78] sm:$0x3f] }
 0x2a3   : > { %2869 = vst [vmem:[%s6834_s2 + $0x8] sm:$0xff] %v2680_v36  ;;  %v2691_v55 = vmul.f32 %v4351_v62, %v6824_v9  ;;  %v2692_v20 = vmul.f32 %v4352_v7, %v6829_v44  ;;  %v2693_v53 = vmul.f32 %v4353_v12, %v2553_v1  ;;  %v2694_v50 = vmul.f32 %v4354_v42, %v2554_v33  ;;  %v4355_v36 = vld [vmem:[%s5762_s4 + $0x80] sm:$0x3f]  ;;  %v4357_v1 = vld [vmem:[%s5762_s4 + $0x90] sm:$0x3f]  ;;  %v4366_v11 = vld [vmem:[%s5762_s4 + $0xd8] sm:$0xff] }
 0x2a4   : > { %2870 = vst [vmem:[%s6834_s2 + $0x10] sm:$0xff] %v2681_v61  ;;  %v2695_v48 = vmul.f32 %v4355_v36, %v2555_v25  ;;  %v4356_v61 = vld [vmem:[%s5762_s4 + $0x88] sm:$0x3f]  ;;  %v2697_v31 = vmul.f32 %v4357_v1, %v6822_v58  ;;  %v6890_v33 = vperm.slane %v2499_v13, 1  ;;  %v6895_v52 = vperm.slane %v2499_v13, 2  ;;  %v4367_v62 = vld [vmem:[%s5762_s4 + $0xe0] sm:$0xff] }
 0x2a5   : > { %2871 = vst [vmem:[%s6834_s2 + $0x18] sm:$0xff] %v2682_v6  ;;  %v2696_v32 = vmul.f32 %v4356_v61, %v6820_v5  ;;  %v6885_v6 = vperm.slane %v2499_v13, 0  ;;  %v4359_v5 = vld [vmem:[%s5762_s4 + $0xa0] sm:$0x3f]  ;;  %v6900_v63 = vperm.slane %v2499_v13, 3  ;;  %v4360_v58 = vld [vmem:[%s5762_s4 + $0xa8] sm:$0xff]  ;;  %v2500_v49 = vsel %vm8386_vm6, %v6783_v39, %v6787_v59 }
 0x2a6   : > { %2872 = vst [vmem:[%s6834_s2 + $0x20] sm:$0xff] %v2683_v14  ;;  %v4358_v14 = vld [vmem:[%s5762_s4 + $0x98] sm:$0x3f]  ;;  %v2699_v16 = vmul.f32 %v4359_v5, %v6829_v44  ;;  %v2504_v22 = vsel %vm1662_vm3, %v6804_v18, %v6806_v3  ;;  %vm8387_vm6 = vcmask 1045506   ;;  %v4371_v61 = vld [vmem:[%s5762_s4 + $0x100] sm:$0xff]  ;;  %v4372_v1 = vld [vmem:[%s5762_s4 + $0x108] sm:$0xff] }
 0x2a7   : > { %2873 = vst [vmem:[%s6834_s2 + $0x28] sm:$0xff] %v2684_v46  ;;  %v2698_v25 = vmul.f32 %v4358_v14, %v6824_v9  ;;  %v2700_v24 = vmul.f32 %v4360_v58, %v6885_v6  ;;  %v6905_v46 = vperm.slane %v2499_v13, 4  ;;  %v4361_v9 = vld [vmem:[%s5762_s4 + $0xb0] sm:$0xff]  ;;  %v4362_v44 = vld [vmem:[%s5762_s4 + $0xb8] sm:$0xff]  ;;  %v2703_v15 = vmul.f32 %v4363_v35, %v6900_v63 }
 0x2a8   : > { %2874 = vst [vmem:[%s6834_s2 + $0x30] sm:$0xff] %v2685_v54  ;;  %v2701_v29 = vmul.f32 %v4361_v9, %v6890_v33  ;;  %v6910_v54 = vperm.slane %v2499_v13, 5  ;;  %v2702_v21 = vmul.f32 %v4362_v44, %v6895_v52  ;;  %v4373_v14 = vld [vmem:[%s5762_s4 + $0x110] sm:$0xff] }
 0x2a9   : > { %2875 = vst [vmem:[%s6834_s2 + $0x38] sm:$0xff] %v2686_v56  ;;  %v6915_v56 = vperm.slane %v2499_v13, 6  ;;  %v4368_v13 = vld [vmem:[%s5762_s4 + $0xe8] sm:$0xff] }
 0x2aa   : > { %2876 = vst [vmem:[%s6834_s2 + $0x40] sm:$0xff] %v2687_v10  ;;  %v4364_v10 = vld [vmem:[%s5762_s4 + $0xc8] sm:$0xff]  ;;  %v2708_v12 = vmul.f32 %v4368_v13, %v6890_v33  ;;  %v4385_v13 = vld [vmem:[%s5762_s4 + $0x170] sm:$0xff] }
 0x2ab   : > { %2877 = vst [vmem:[%s6834_s2 + $0x48] sm:$0xff] %v2688_v57  ;;  %v2704_v2 = vmul.f32 %v4364_v10, %v6905_v46  ;;  %v2501_v57 = vsel %vm1658_vm1, %v6795_v26, %v6797_v19  ;;  %v4379_v10 = vld [vmem:[%s5762_s4 + $0x140] sm:$0x3f] }
 0x2ac   : > { %2878 = vst [vmem:[%s6834_s2 + $0x50] sm:$0xff] %v2689_v8  ;;  %v4365_v8 = vld [vmem:[%s5762_s4 + $0xd0] sm:$0xff]  ;;  %v2503_v7 = vsel %vm8388_vm11, %v2500_v49, %v2501_v57  ;;  %vm2514_vm11 = vcmask 1046529  }
 0x2ad   : > { %2879 = vst [vmem:[%s6834_s2 + $0x58] sm:$0xff] %v2690_v43  ;;  %v2705_v4 = vmul.f32 %v4365_v8, %v6910_v54  ;;  %v2706_v43 = vmul.f32 %v4366_v11, %v6915_v56  ;;  %v4381_v8 = vld [vmem:[%s5762_s4 + $0x150] sm:$0xff] }
 0x2ae   : > { %2880 = vst [vmem:[%s6834_s2 + $0x60] sm:$0xff] %v2691_v55  ;;  %v2707_v55 = vmul.f32 %v4367_v62, %v6885_v6 }
 0x2af   : > { %2881 = vst [vmem:[%s6834_s2 + $0x68] sm:$0xff] %v2692_v20  ;;  %v2505_v20 = vsel %vm965_vm0, %v6811_v41, %v2504_v22 }
 0x2b0   : > { %2882 = vst [vmem:[%s6834_s2 + $0x70] sm:$0x3f] %v2693_v53  ;;  %v4369_v53 = vld [vmem:[%s5762_s4 + $0xf0] sm:$0xff] }
 0x2b1   : > { %2883 = vst [vmem:[%s6834_s2 + $0x78] sm:$0x3f] %v2694_v50  ;;  %v2709_v42 = vmul.f32 %v4369_v53, %v6895_v52  ;;  %v4370_v50 = vld [vmem:[%s5762_s4 + $0xf8] sm:$0xff]  ;;  %v2509_v53 = vsel %vm8389_vm7, %v6783_v39, %v6787_v59  ;;  %vm2516_vm7 = vcmask 1046531  }
 0x2b2   : > { %2884 = vst [vmem:[%s6834_s2 + $0x80] sm:$0x3f] %v2695_v48  ;;  %v2710_v36 = vmul.f32 %v4370_v50, %v6900_v63  ;;  %v2507_v48 = vsel %vm8387_vm6, %v2503_v7, %v2505_v20  ;;  %v4384_v7 = vld [vmem:[%s5762_s4 + $0x168] sm:$0xff]  ;;  %vm2511_vm6 = vcmask 1044483   ;;  %v2513_v50 = vsel %vm1806_vm10, %v6806_v3, %v6804_v18 }
 0x2b3   : > { %2885 = vst [vmem:[%s6834_s2 + $0x88] sm:$0x3f] %v2696_v32  ;;  %v2711_v32 = vmul.f32 %v4371_v61, %v6905_v46  ;;  %v2508_v5 = vrot.slane %v2507_v48, 2  ;;  %v4387_v61 = vld [vmem:[%s5762_s4 + $0x180] sm:$0xff] }
 0x2b4   : > { %2886 = vst [vmem:[%s6834_s2 + $0x90] sm:$0x3f] %v2697_v31  ;;  %v2712_v31 = vmul.f32 %v4372_v1, %v6910_v54  ;;  %v4388_v1 = vld [vmem:[%s5762_s4 + $0x188] sm:$0xff] }
 0x2b5   : > { %2887 = vst [vmem:[%s6834_s2 + $0x98] sm:$0x3f] %v2698_v25  ;;  %v2713_v25 = vmul.f32 %v4373_v14, %v6915_v56  ;;  %v6980_v49 = vperm.slane %v2508_v5, 1  ;;  %v6990_v22 = vperm.slane %v2508_v5, 3 }
 0x2b6   : > { %2888 = vst [vmem:[%s6834_s2 + $0xa0] sm:$0x3f] %v2699_v16  ;;  %v4374_v16 = vld [vmem:[%s5762_s4 + $0x118] sm:$0x3f] }
 0x2b7   : > { %2889 = vst [vmem:[%s6834_s2 + $0xa8] sm:$0xff] %v2700_v24  ;;  %v2714_v58 = vmul.f32 %v4374_v16, %v6885_v6  ;;  %v4375_v24 = vld [vmem:[%s5762_s4 + $0x120] sm:$0x3f]  ;;  %v4378_v6 = vld [vmem:[%s5762_s4 + $0x138] sm:$0x3f]  ;;  %v2724_v20 = vmul.f32 %v4384_v7, %v6990_v22 }
 0x2b8   : > { %2890 = vst [vmem:[%s6834_s2 + $0xb0] sm:$0xff] %v2701_v29  ;;  %v2715_v9 = vmul.f32 %v4375_v24, %v6890_v33  ;;  %v4376_v29 = vld [vmem:[%s5762_s4 + $0x128] sm:$0x3f]  ;;  %v2718_v33 = vmul.f32 %v4378_v6, %v6905_v46  ;;  %v6992_v46 = vperm.slane %v2508_v5, 4  ;;  %v4393_v6 = vld [vmem:[%s5762_s4 + $0x1b0] sm:$0xff] }
 0x2b9   : > { %2891 = vst [vmem:[%s6834_s2 + $0xb8] sm:$0xff] %v2702_v21  ;;  %v2716_v44 = vmul.f32 %v4376_v29, %v6895_v52  ;;  %v4377_v21 = vld [vmem:[%s5762_s4 + $0x130] sm:$0x3f]  ;;  %v2719_v52 = vmul.f32 %v4379_v10, %v6910_v54  ;;  %v4382_v54 = vld [vmem:[%s5762_s4 + $0x158] sm:$0xff] }
 0x2ba   : > { %2892 = vst [vmem:[%s6834_s2 + $0xc0] sm:$0xff] %v2703_v15  ;;  %v2717_v35 = vmul.f32 %v4377_v21, %v6900_v63  ;;  %v6975_v15 = vperm.slane %v2508_v5, 0  ;;  %v4380_v63 = vld [vmem:[%s5762_s4 + $0x148] sm:$0x3f]  ;;  %v2722_v11 = vmul.f32 %v4382_v54, %v6980_v49  ;;  %v4394_v10 = vld [vmem:[%s5762_s4 + $0x1b8] sm:$0xff] }
 0x2bb   : > { %2893 = vst [vmem:[%s6834_s2 + $0xc8] sm:$0xff] %v2704_v2  ;;  %v6985_v2 = vperm.slane %v2508_v5, 2  ;;  %v2720_v57 = vmul.f32 %v4380_v63, %v6915_v56  ;;  %v4383_v56 = vld [vmem:[%s5762_s4 + $0x160] sm:$0xff]  ;;  %v4392_v21 = vld [vmem:[%s5762_s4 + $0x1a8] sm:$0xff] }
 0x2bc   : > { %2894 = vst [vmem:[%s6834_s2 + $0xd0] sm:$0xff] %v2705_v4  ;;  %v2721_v4 = vmul.f32 %v4381_v8, %v6975_v15 }
 0x2bd   : > { %2895 = vst [vmem:[%s6834_s2 + $0xd8] sm:$0xff] %v2706_v43  ;;  %v7000_v43 = vperm.slane %v2508_v5, 5  ;;  %v2723_v62 = vmul.f32 %v4383_v56, %v6985_v2 }
 0x2be   : > { %2896 = vst [vmem:[%s6834_s2 + $0xe0] sm:$0xff] %v2707_v55  ;;  %v7005_v55 = vperm.slane %v2508_v5, 6  ;;  %v4389_v5 = vld [vmem:[%s5762_s4 + $0x190] sm:$0xff] }
 0x2bf   : > { %2897 = vst [vmem:[%s6834_s2 + $0xe8] sm:$0xff] %v2708_v12  ;;  %v2725_v12 = vmul.f32 %v4385_v13, %v6992_v46  ;;  %v2729_v16 = vmul.f32 %v4389_v5, %v6980_v49  ;;  %v2519_v5 = vsel %vm1658_vm1, %v6783_v39, %v6787_v59 }
 0x2c0   : > { %2898 = vst [vmem:[%s6834_s2 + $0xf0] sm:$0xff] %v2709_v42  ;;  %v2510_v42 = vsel %vm1660_vm2, %v6795_v26, %v6797_v19 }
 0x2c1   : > { %2899 = vst [vmem:[%s6834_s2 + $0xf8] sm:$0xff] %v2710_v36  ;;  %v4386_v36 = vld [vmem:[%s5762_s4 + $0x178] sm:$0xff]  ;;  %v2512_v14 = vsel %vm2511_vm6, %v2509_v53, %v2510_v42 }
 0x2c2   : > { %2900 = vst [vmem:[%s6834_s2 + $0x100] sm:$0xff] %v2711_v32  ;;  %v2726_v48 = vmul.f32 %v4386_v36, %v7000_v43  ;;  %v2727_v32 = vmul.f32 %v4387_v61, %v7005_v55 }
 0x2c3   : > { %2901 = vst [vmem:[%s6834_s2 + $0x108] sm:$0xff] %v2712_v31  ;;  %v2728_v31 = vmul.f32 %v4388_v1, %v6975_v15 }
 0x2c4   : > { %2902 = vst [vmem:[%s6834_s2 + $0x110] sm:$0xff] %v2713_v25  ;;  %v2515_v25 = vsel %vm2514_vm11, %v6811_v41, %v2513_v50 }
 0x2c5   : > { %2903 = vst [vmem:[%s6834_s2 + $0x118] sm:$0x3f] %v2714_v58  ;;  %v4390_v58 = vld [vmem:[%s5762_s4 + $0x198] sm:$0xff] }
 0x2c6   : > { %2904 = vst [vmem:[%s6834_s2 + $0x120] sm:$0x3f] %v2715_v9  ;;  %v2730_v24 = vmul.f32 %v4390_v58, %v6985_v2  ;;  %v4391_v9 = vld [vmem:[%s5762_s4 + $0x1a0] sm:$0xff]  ;;  %v2522_v58 = vsel %vm2253_vm13, %v6804_v18, %v6806_v3 }
 0x2c7   : > { %2905 = vst [vmem:[%s6834_s2 + $0x128] sm:$0x3f] %v2716_v44  ;;  %v2731_v29 = vmul.f32 %v4391_v9, %v6990_v22  ;;  %v2517_v44 = vsel %vm2516_vm7, %v2512_v14, %v2515_v25  ;;  %v4405_v14 = vld [vmem:[%s5762_s4 + $0x210] sm:$0xff] }
 0x2c8   : > { %2906 = vst [vmem:[%s6834_s2 + $0x130] sm:$0x3f] %v2717_v35  ;;  %v2732_v35 = vmul.f32 %v4392_v21, %v6992_v46  ;;  %v2518_v63 = vrot.slane %v2517_v44, 3  ;;  %v4408_v21 = vld [vmem:[%s5762_s4 + $0x228] sm:$0xff] }
 0x2c9   : > { %2907 = vst [vmem:[%s6834_s2 + $0x138] sm:$0x3f] %v2718_v33  ;;  %v2733_v33 = vmul.f32 %v4393_v6, %v7000_v43 }
 0x2ca   : > { %2908 = vst [vmem:[%s6834_s2 + $0x140] sm:$0x3f] %v2719_v52  ;;  %v2734_v52 = vmul.f32 %v4394_v10, %v7005_v55  ;;  %v7070_v13 = vperm.slane %v2518_v63, 1  ;;  %v7075_v53 = vperm.slane %v2518_v63, 2  ;;  %v7080_v50 = vperm.slane %v2518_v63, 3  ;;  %v4409_v10 = vld [vmem:[%s5762_s4 + $0x230] sm:$0xff] }
 0x2cb   : > { %2909 = vst [vmem:[%s6834_s2 + $0x148] sm:$0x3f] %v2720_v57  ;;  %v4395_v57 = vld [vmem:[%s5762_s4 + $0x1c0] sm:$0x3f] }
 0x2cc   : > { %2910 = vst [vmem:[%s6834_s2 + $0x150] sm:$0xff] %v2721_v4  ;;  %v2735_v8 = vmul.f32 %v4395_v57, %v6975_v15  ;;  %v4396_v4 = vld [vmem:[%s5762_s4 + $0x1c8] sm:$0x3f]  ;;  %v4399_v15 = vld [vmem:[%s5762_s4 + $0x1e0] sm:$0x3f]  ;;  %v2745_v25 = vmul.f32 %v4405_v14, %v7080_v50 }
 0x2cd   : > { %2911 = vst [vmem:[%s6834_s2 + $0x158] sm:$0xff] %v2722_v11  ;;  %v2736_v54 = vmul.f32 %v4396_v4, %v6980_v49  ;;  %v4397_v11 = vld [vmem:[%s5762_s4 + $0x1d0] sm:$0x3f]  ;;  %v2739_v49 = vmul.f32 %v4399_v15, %v6992_v46  ;;  %v4402_v46 = vld [vmem:[%s5762_s4 + $0x1f8] sm:$0xff] }
 0x2ce   : > { %2912 = vst [vmem:[%s6834_s2 + $0x160] sm:$0xff] %v2723_v62  ;;  %v2737_v56 = vmul.f32 %v4397_v11, %v6985_v2  ;;  %v4398_v62 = vld [vmem:[%s5762_s4 + $0x1d8] sm:$0x3f]  ;;  %v4412_v11 = vld [vmem:[%s5762_s4 + $0x248] sm:$0xff] }
 0x2cf   : > { %2913 = vst [vmem:[%s6834_s2 + $0x168] sm:$0xff] %v2724_v20  ;;  %v2738_v7 = vmul.f32 %v4398_v62, %v6990_v22  ;;  %v7065_v20 = vperm.slane %v2518_v63, 0  ;;  %v4401_v22 = vld [vmem:[%s5762_s4 + $0x1f0] sm:$0x3f]  ;;  %v4414_v15 = vld [vmem:[%s5762_s4 + $0x258] sm:$0xff] }
 0x2d0   : > { %2914 = vst [vmem:[%s6834_s2 + $0x170] sm:$0xff] %v2725_v12  ;;  %v4400_v12 = vld [vmem:[%s5762_s4 + $0x1e8] sm:$0x3f]  ;;  %v2741_v42 = vmul.f32 %v4401_v22, %v7005_v55  ;;  %v4413_v62 = vld [vmem:[%s5762_s4 + $0x250] sm:$0xff] }
 0x2d1   : > { %2915 = vst [vmem:[%s6834_s2 + $0x178] sm:$0xff] %v2726_v48  ;;  %v2740_v2 = vmul.f32 %v4400_v12, %v7000_v43  ;;  %v2742_v36 = vmul.f32 %v4402_v46, %v7065_v20  ;;  %v7085_v48 = vperm.slane %v2518_v63, 4  ;;  %v4403_v43 = vld [vmem:[%s5762_s4 + $0x200] sm:$0xff]  ;;  %v4404_v55 = vld [vmem:[%s5762_s4 + $0x208] sm:$0xff] }
 0x2d2   : > { %2916 = vst [vmem:[%s6834_s2 + $0x180] sm:$0xff] %v2727_v32  ;;  %v2743_v61 = vmul.f32 %v4403_v43, %v7070_v13  ;;  %v7090_v32 = vperm.slane %v2518_v63, 5  ;;  %v2744_v1 = vmul.f32 %v4404_v55, %v7075_v53 }
 0x2d3   : > { %2917 = vst [vmem:[%s6834_s2 + $0x188] sm:$0xff] %v2728_v31  ;;  %v7095_v31 = vperm.slane %v2518_v63, 6  ;;  %v4410_v63 = vld [vmem:[%s5762_s4 + $0x238] sm:$0xff] }
 0x2d4   : > { %2918 = vst [vmem:[%s6834_s2 + $0x190] sm:$0xff] %v2729_v16  ;;  %v2520_v16 = vsel %vm1662_vm3, %v6795_v26, %v6797_v19  ;;  %v2750_v57 = vmul.f32 %v4410_v63, %v7070_v13  ;;  %v4427_v63 = vld [vmem:[%s5762_s4 + $0x2c0] sm:$0xff] }
 0x2d5   : > { %2919 = vst [vmem:[%s6834_s2 + $0x198] sm:$0xff] %v2730_v24  ;;  %v4406_v24 = vld [vmem:[%s5762_s4 + $0x218] sm:$0xff]  ;;  %v2521_v6 = vsel %vm2487_vm14, %v2519_v5, %v2520_v16  ;;  %v4421_v16 = vld [vmem:[%s5762_s4 + $0x290] sm:$0x3f] }
 0x2d6   : > { %2920 = vst [vmem:[%s6834_s2 + $0x1a0] sm:$0xff] %v2731_v29  ;;  %v2746_v9 = vmul.f32 %v4406_v24, %v7085_v48  ;;  %v4407_v29 = vld [vmem:[%s5762_s4 + $0x220] sm:$0xff] }
 0x2d7   : > { %2921 = vst [vmem:[%s6834_s2 + $0x1a8] sm:$0xff] %v2732_v35  ;;  %v2747_v44 = vmul.f32 %v4407_v29, %v7090_v32  ;;  %v2748_v35 = vmul.f32 %v4408_v21, %v7095_v31 }
 0x2d8   : > { %2922 = vst [vmem:[%s6834_s2 + $0x1b0] sm:$0xff] %v2733_v33  ;;  %v2523_v33 = vsel %vm2203_vm12, %v2522_v58, %v6811_v41 }
 0x2d9   : > { %2923 = vst [vmem:[%s6834_s2 + $0x1b8] sm:$0xff] %v2734_v52  ;;  %v2749_v52 = vmul.f32 %v4409_v10, %v7065_v20  ;;  %v4426_v10 = vld [vmem:[%s5762_s4 + $0x2b8] sm:$0xff] }
 0x2da   : > { %2924 = vst [vmem:[%s6834_s2 + $0x1c0] sm:$0x3f] %v2735_v8  ;;  %v4411_v8 = vld [vmem:[%s5762_s4 + $0x240] sm:$0xff] }
 0x2db   : > { %2925 = vst [vmem:[%s6834_s2 + $0x1c8] sm:$0x3f] %v2736_v54  ;;  %v2751_v4 = vmul.f32 %v4411_v8, %v7075_v53  ;;  %v2524_v54 = vsel %vm1736_vm9, %v2523_v33, %v2521_v6  ;;  %v2526_v8 = vsel %vm1660_vm2, %v6783_v39, %v6787_v59  ;;  %vm8484_vm2 = vcmask 1042434  }
 0x2dc   : > { %2926 = vst [vmem:[%s6834_s2 + $0x1d0] sm:$0x3f] %v2737_v56  ;;  %v2752_v56 = vmul.f32 %v4412_v11, %v7080_v50  ;;  %v2525_v12 = vrot.slane %v2524_v54, 4  ;;  %v2529_v54 = vsel %vm1690_vm5, %v6804_v18, %v6806_v3  ;;  %v4428_v11 = vld [vmem:[%s5762_s4 + $0x2c8] sm:$0xff] }
 0x2dd   : > { %2927 = vst [vmem:[%s6834_s2 + $0x1d8] sm:$0x3f] %v2738_v7  ;;  %v2753_v7 = vmul.f32 %v4413_v62, %v7085_v48  ;;  %v4429_v62 = vld [vmem:[%s5762_s4 + $0x2d0] sm:$0xff] }
 0x2de   : > { %2928 = vst [vmem:[%s6834_s2 + $0x1e0] sm:$0x3f] %v2739_v49  ;;  %v2754_v49 = vmul.f32 %v4414_v15, %v7090_v32  ;;  %v7160_v5 = vperm.slane %v2525_v12, 1  ;;  %v7165_v58 = vperm.slane %v2525_v12, 2  ;;  %v7185_v33 = vperm.slane %v2525_v12, 6  ;;  %v4430_v15 = vld [vmem:[%s5762_s4 + $0x2d8] sm:$0xff] }
 0x2df   : > { %2929 = vst [vmem:[%s6834_s2 + $0x1e8] sm:$0x3f] %v2740_v2  ;;  %v4415_v2 = vld [vmem:[%s5762_s4 + $0x260] sm:$0xff] }
 0x2e0   : > { %2930 = vst [vmem:[%s6834_s2 + $0x1f0] sm:$0x3f] %v2741_v42  ;;  %v2755_v22 = vmul.f32 %v4415_v2, %v7095_v31  ;;  %v4416_v42 = vld [vmem:[%s5762_s4 + $0x268] sm:$0x3f]  ;;  %v2530_v2 = vsel %vm2492_vm15, %v2529_v54, %v6811_v41  ;;  %vm8487_vm15 = vcmask 1043459  }
 0x2e1   : > { %2931 = vst [vmem:[%s6834_s2 + $0x1f8] sm:$0xff] %v2742_v36  ;;  %v2756_v46 = vmul.f32 %v4416_v42, %v7065_v20  ;;  %v4417_v36 = vld [vmem:[%s5762_s4 + $0x270] sm:$0x3f]  ;;  %v4420_v20 = vld [vmem:[%s5762_s4 + $0x288] sm:$0x3f] }
 0x2e2   : > { %2932 = vst [vmem:[%s6834_s2 + $0x200] sm:$0xff] %v2743_v61  ;;  %v2757_v43 = vmul.f32 %v4417_v36, %v7070_v13  ;;  %v4418_v61 = vld [vmem:[%s5762_s4 + $0x278] sm:$0x3f]  ;;  %v2760_v13 = vmul.f32 %v4420_v20, %v7085_v48  ;;  %v4423_v48 = vld [vmem:[%s5762_s4 + $0x2a0] sm:$0xff] }
 0x2e3   : > { %2933 = vst [vmem:[%s6834_s2 + $0x208] sm:$0xff] %v2744_v1  ;;  %v2758_v55 = vmul.f32 %v4418_v61, %v7075_v53  ;;  %v4419_v1 = vld [vmem:[%s5762_s4 + $0x280] sm:$0x3f]  ;;  %v2761_v53 = vmul.f32 %v4421_v16, %v7090_v32  ;;  %v4424_v32 = vld [vmem:[%s5762_s4 + $0x2a8] sm:$0xff] }
 0x2e4   : > { %2934 = vst [vmem:[%s6834_s2 + $0x210] sm:$0xff] %v2745_v25  ;;  %v2759_v14 = vmul.f32 %v4419_v1, %v7080_v50  ;;  %v7155_v25 = vperm.slane %v2525_v12, 0  ;;  %v4422_v50 = vld [vmem:[%s5762_s4 + $0x298] sm:$0x3f]  ;;  %v2764_v21 = vmul.f32 %v4424_v32, %v7160_v5  ;;  %v4435_v20 = vld [vmem:[%s5762_s4 + $0x300] sm:$0xff]  ;;  %v4436_v16 = vld [vmem:[%s5762_s4 + $0x308] sm:$0xff] }
 0x2e5   : > { %2935 = vst [vmem:[%s6834_s2 + $0x218] sm:$0xff] %v2746_v9  ;;  %v2762_v24 = vmul.f32 %v4422_v50, %v7095_v31  ;;  %v7170_v9 = vperm.slane %v2525_v12, 3  ;;  %v4425_v31 = vld [vmem:[%s5762_s4 + $0x2b0] sm:$0xff]  ;;  %v4434_v1 = vld [vmem:[%s5762_s4 + $0x2f8] sm:$0xff] }
 0x2e6   : > { %2936 = vst [vmem:[%s6834_s2 + $0x220] sm:$0xff] %v2747_v44  ;;  %v2763_v29 = vmul.f32 %v4423_v48, %v7155_v25  ;;  %v7175_v44 = vperm.slane %v2525_v12, 4  ;;  %v2765_v6 = vmul.f32 %v4425_v31, %v7165_v58 }
 0x2e7   : > { %2937 = vst [vmem:[%s6834_s2 + $0x228] sm:$0xff] %v2748_v35  ;;  %v7180_v35 = vperm.slane %v2525_v12, 5 }
 0x2e8   : > { %2938 = vst [vmem:[%s6834_s2 + $0x230] sm:$0xff] %v2749_v52  ;;  %v2766_v52 = vmul.f32 %v4426_v10, %v7170_v9 }
 0x2e9   : > { %2939 = vst [vmem:[%s6834_s2 + $0x238] sm:$0xff] %v2750_v57  ;;  %v2767_v57 = vmul.f32 %v4427_v63, %v7175_v44 }
 0x2ea   : > { %2940 = vst [vmem:[%s6834_s2 + $0x240] sm:$0xff] %v2751_v4  ;;  %v2527_v4 = vsel %vm1806_vm10, %v6797_v19, %v6795_v26 }
 0x2eb   : > { %2941 = vst [vmem:[%s6834_s2 + $0x248] sm:$0xff] %v2752_v56  ;;  %v2768_v56 = vmul.f32 %v4428_v11, %v7180_v35  ;;  %v2528_v12 = vsel %vm2495_vm4, %v2526_v8, %v2527_v4 }
 0x2ec   : > { %2942 = vst [vmem:[%s6834_s2 + $0x250] sm:$0xff] %v2753_v7  ;;  %v2769_v7 = vmul.f32 %v4429_v62, %v7185_v33 }
 0x2ed   : > { %2943 = vst [vmem:[%s6834_s2 + $0x258] sm:$0xff] %v2754_v49  ;;  %v2770_v49 = vmul.f32 %v4430_v15, %v7155_v25 }
 0x2ee   : > { %2944 = vst [vmem:[%s6834_s2 + $0x260] sm:$0xff] %v2755_v22  ;;  %v4431_v22 = vld [vmem:[%s5762_s4 + $0x2e0] sm:$0xff] }
 0x2ef   : > { %2945 = vst [vmem:[%s6834_s2 + $0x268] sm:$0x3f] %v2756_v46  ;;  %v2771_v42 = vmul.f32 %v4431_v22, %v7160_v5  ;;  %v4432_v46 = vld [vmem:[%s5762_s4 + $0x2e8] sm:$0xff] }
 0x2f0   : > { %2946 = vst [vmem:[%s6834_s2 + $0x270] sm:$0x3f] %v2757_v43  ;;  %v2772_v36 = vmul.f32 %v4432_v46, %v7165_v58  ;;  %v4433_v43 = vld [vmem:[%s5762_s4 + $0x2f0] sm:$0xff]  ;;  %v4448_v22 = vld [vmem:[%s5762_s4 + $0x368] sm:$0xff]  ;;  %v2533_v46 = vsel %vm1662_vm3, %v6783_v39, %v6787_v59  ;;  %vm8485_vm3 = vcmask 1043458  }
 0x2f1   : > { %2947 = vst [vmem:[%s6834_s2 + $0x278] sm:$0x3f] %v2758_v55  ;;  %v2773_v61 = vmul.f32 %v4433_v43, %v7170_v9  ;;  %v2531_v55 = vsel %vm2497_vm8, %v2530_v2, %v2528_v12  ;;  %v4447_v12 = vld [vmem:[%s5762_s4 + $0x360] sm:$0xff]  ;;  %v2536_v43 = vsel %vm8484_vm2, %v6804_v18, %v6806_v3 }
 0x2f2   : > { %2948 = vst [vmem:[%s6834_s2 + $0x280] sm:$0x3f] %v2759_v14  ;;  %v2774_v14 = vmul.f32 %v4434_v1, %v7175_v44  ;;  %v2532_v50 = vrot.slane %v2531_v55, 5  ;;  %v4450_v1 = vld [vmem:[%s5762_s4 + $0x378] sm:$0xff] }
 0x2f3   : > { %2949 = vst [vmem:[%s6834_s2 + $0x288] sm:$0x3f] %v2760_v13  ;;  %v2775_v13 = vmul.f32 %v4435_v20, %v7180_v35  ;;  %v4451_v20 = vld [vmem:[%s5762_s4 + $0x380] sm:$0xff] }
 0x2f4   : > { %2950 = vst [vmem:[%s6834_s2 + $0x290] sm:$0x3f] %v2761_v53  ;;  %v2776_v53 = vmul.f32 %v4436_v16, %v7185_v33  ;;  %v7250_v63 = vperm.slane %v2532_v50, 1  ;;  %v7255_v8 = vperm.slane %v2532_v50, 2  ;;  %v7260_v54 = vperm.slane %v2532_v50, 3 }
 0x2f5   : > { %2951 = vst [vmem:[%s6834_s2 + $0x298] sm:$0x3f] %v2762_v24  ;;  %v4437_v24 = vld [vmem:[%s5762_s4 + $0x310] sm:$0x3f] }
 0x2f6   : > { %2952 = vst [vmem:[%s6834_s2 + $0x2a0] sm:$0xff] %v2763_v29  ;;  %v2777_v48 = vmul.f32 %v4437_v24, %v7155_v25  ;;  %v4438_v29 = vld [vmem:[%s5762_s4 + $0x318] sm:$0x3f]  ;;  %v4441_v25 = vld [vmem:[%s5762_s4 + $0x330] sm:$0x3f]  ;;  %v2787_v2 = vmul.f32 %v4447_v12, %v7260_v54 }
 0x2f7   : > { %2953 = vst [vmem:[%s6834_s2 + $0x2a8] sm:$0xff] %v2764_v21  ;;  %v2778_v32 = vmul.f32 %v4438_v29, %v7160_v5  ;;  %v4439_v21 = vld [vmem:[%s5762_s4 + $0x320] sm:$0x3f]  ;;  %v2781_v5 = vmul.f32 %v4441_v25, %v7175_v44  ;;  %v4444_v44 = vld [vmem:[%s5762_s4 + $0x348] sm:$0xff] }
 0x2f8   : > { %2954 = vst [vmem:[%s6834_s2 + $0x2b0] sm:$0xff] %v2765_v6  ;;  %v2779_v31 = vmul.f32 %v4439_v21, %v7165_v58  ;;  %v4440_v6 = vld [vmem:[%s5762_s4 + $0x328] sm:$0x3f] }
 0x2f9   : > { %2955 = vst [vmem:[%s6834_s2 + $0x2b8] sm:$0xff] %v2766_v52  ;;  %v2780_v10 = vmul.f32 %v4440_v6, %v7170_v9  ;;  %v7245_v52 = vperm.slane %v2532_v50, 0  ;;  %v4443_v9 = vld [vmem:[%s5762_s4 + $0x340] sm:$0x3f]  ;;  %v4456_v25 = vld [vmem:[%s5762_s4 + $0x3a8] sm:$0xff] }
 0x2fa   : > { %2956 = vst [vmem:[%s6834_s2 + $0x2c0] sm:$0xff] %v2767_v57  ;;  %v4442_v57 = vld [vmem:[%s5762_s4 + $0x338] sm:$0x3f]  ;;  %v2783_v4 = vmul.f32 %v4443_v9, %v7185_v33  ;;  %v4455_v6 = vld [vmem:[%s5762_s4 + $0x3a0] sm:$0xff] }
 0x2fb   : > { %2957 = vst [vmem:[%s6834_s2 + $0x2c8] sm:$0xff] %v2768_v56  ;;  %v2782_v58 = vmul.f32 %v4442_v57, %v7180_v35  ;;  %v2784_v11 = vmul.f32 %v4444_v44, %v7245_v52  ;;  %v7265_v56 = vperm.slane %v2532_v50, 4  ;;  %v4445_v35 = vld [vmem:[%s5762_s4 + $0x350] sm:$0xff]  ;;  %v4446_v33 = vld [vmem:[%s5762_s4 + $0x358] sm:$0xff] }
 0x2fc   : > { %2958 = vst [vmem:[%s6834_s2 + $0x2d0] sm:$0xff] %v2769_v7  ;;  %v2785_v62 = vmul.f32 %v4445_v35, %v7250_v63  ;;  %v7270_v7 = vperm.slane %v2532_v50, 5  ;;  %v2786_v15 = vmul.f32 %v4446_v33, %v7255_v8  ;;  %v4457_v57 = vld [vmem:[%s5762_s4 + $0x3b0] sm:$0xff] }
 0x2fd   : > { %2959 = vst [vmem:[%s6834_s2 + $0x2d8] sm:$0xff] %v2770_v49  ;;  %v7275_v49 = vperm.slane %v2532_v50, 6  ;;  %v4452_v50 = vld [vmem:[%s5762_s4 + $0x388] sm:$0xff] }
 0x2fe   : > { %2960 = vst [vmem:[%s6834_s2 + $0x2e0] sm:$0xff] %v2771_v42  ;;  %v2788_v42 = vmul.f32 %v4448_v22, %v7265_v56  ;;  %v2792_v24 = vmul.f32 %v4452_v50, %v7250_v63  ;;  %v2540_v50 = vsel %vm1806_vm10, %v6787_v59, %v6783_v39  ;;  %v4471_v59 = vld [vmem:[%s5762_s4 + $0x420] sm:$0xff] }
 0x2ff   : > { %2961 = vst [vmem:[%s6834_s2 + $0x2e8] sm:$0xff] %v2772_v36  ;;  %v2534_v36 = vsel %vm2253_vm13, %v6795_v26, %v6797_v19 }
 0x300   : > { %2962 = vst [vmem:[%s6834_s2 + $0x2f0] sm:$0xff] %v2773_v61  ;;  %v4449_v61 = vld [vmem:[%s5762_s4 + $0x370] sm:$0xff]  ;;  %v2535_v16 = vsel %vm965_vm0, %v2534_v36, %v2533_v46  ;;  %vm8486_vm0 = vcmask 1045506  }
 0x301   : > { %2963 = vst [vmem:[%s6834_s2 + $0x2f8] sm:$0xff] %v2774_v14  ;;  %v2789_v55 = vmul.f32 %v4449_v61, %v7270_v7  ;;  %v2790_v14 = vmul.f32 %v4450_v1, %v7275_v49 }
 0x302   : > { %2964 = vst [vmem:[%s6834_s2 + $0x300] sm:$0xff] %v2775_v13  ;;  %v2791_v13 = vmul.f32 %v4451_v20, %v7245_v52 }
 0x303   : > { %2965 = vst [vmem:[%s6834_s2 + $0x308] sm:$0xff] %v2776_v53  ;;  %v2537_v53 = vsel %vm8485_vm3, %v2536_v43, %v6811_v41 }
 0x304   : > { %2966 = vst [vmem:[%s6834_s2 + $0x310] sm:$0x3f] %v2777_v48  ;;  %v4453_v48 = vld [vmem:[%s5762_s4 + $0x390] sm:$0xff] }
 0x305   : > { %2967 = vst [vmem:[%s6834_s2 + $0x318] sm:$0x3f] %v2778_v32  ;;  %v2793_v29 = vmul.f32 %v4453_v48, %v7255_v8  ;;  %v4454_v32 = vld [vmem:[%s5762_s4 + $0x398] sm:$0xff]  ;;  %v2543_v48 = vsel %vm8487_vm15, %v6804_v18, %v6806_v3  ;;  %v4472_v3 = vld [vmem:[%s5762_s4 + $0x428] sm:$0xff] }
 0x306   : > { %2968 = vst [vmem:[%s6834_s2 + $0x320] sm:$0x3f] %v2779_v31  ;;  %v2794_v21 = vmul.f32 %v4454_v32, %v7260_v54  ;;  %v2538_v31 = vsel %vm8486_vm0, %v2537_v53, %v2535_v16  ;;  %v4468_v16 = vld [vmem:[%s5762_s4 + $0x408] sm:$0xff]  ;;  %v2544_v18 = vsel %vm2511_vm6, %v2543_v48, %v6811_v41  ;;  %v2455_v48 = vmul.f32 %v6751_v37, %v6779_v47  ;;  %v4490_v37 = vld [vmem:[%s5762_s4 + $0x4b8] sm:$0xff] }
 0x307   : > { %2969 = vst [vmem:[%s6834_s2 + $0x328] sm:$0x3f] %v2780_v10  ;;  %v2795_v10 = vmul.f32 %v4455_v6, %v7265_v56  ;;  %v2539_v9 = vrot.slane %v2538_v31, 6  ;;  %v4473_v6 = vld [vmem:[%s5762_s4 + $0x430] sm:$0xff]  ;;  %v2456_v47 = vmul.f32 %v6756_v28, %v6789_v60 }
 0x308   : > { %2970 = vst [vmem:[%s6834_s2 + $0x330] sm:$0x3f] %v2781_v5  ;;  %v2796_v5 = vmul.f32 %v4456_v25, %v7270_v7  ;;  %v4474_v25 = vld [vmem:[%s5762_s4 + $0x438] sm:$0xff] }
 0x309   : > { %2971 = vst [vmem:[%s6834_s2 + $0x338] sm:$0x3f] %v2782_v58  ;;  %v2797_v58 = vmul.f32 %v4457_v57, %v7275_v49  ;;  %v7340_v22 = vperm.slane %v2539_v9, 1  ;;  %v7345_v46 = vperm.slane %v2539_v9, 2  ;;  %v7350_v43 = vperm.slane %v2539_v9, 3  ;;  %v4475_v57 = vld [vmem:[%s5762_s4 + $0x440] sm:$0xff] }
 0x30a   : > { %2972 = vst [vmem:[%s6834_s2 + $0x340] sm:$0x3f] %v2783_v4  ;;  %v4458_v4 = vld [vmem:[%s5762_s4 + $0x3b8] sm:$0x3f] }
 0x30b   : > { %2973 = vst [vmem:[%s6834_s2 + $0x348] sm:$0xff] %v2784_v11  ;;  %v2798_v44 = vmul.f32 %v4458_v4, %v7245_v52  ;;  %v4459_v11 = vld [vmem:[%s5762_s4 + $0x3c0] sm:$0x3f]  ;;  %v4462_v52 = vld [vmem:[%s5762_s4 + $0x3d8] sm:$0x3f]  ;;  %v2808_v53 = vmul.f32 %v4468_v16, %v7350_v43 }
 0x30c   : > { %2974 = vst [vmem:[%s6834_s2 + $0x350] sm:$0xff] %v2785_v62  ;;  %v2799_v35 = vmul.f32 %v4459_v11, %v7250_v63  ;;  %v4460_v62 = vld [vmem:[%s5762_s4 + $0x3c8] sm:$0x3f]  ;;  %v2802_v63 = vmul.f32 %v4462_v52, %v7265_v56  ;;  %v4465_v56 = vld [vmem:[%s5762_s4 + $0x3f0] sm:$0xff]  ;;  %v4486_v16 = vld [vmem:[%s5762_s4 + $0x498] sm:$0xff] }
 0x30d   : > { %2975 = vst [vmem:[%s6834_s2 + $0x358] sm:$0xff] %v2786_v15  ;;  %v2800_v33 = vmul.f32 %v4460_v62, %v7255_v8  ;;  %v4461_v15 = vld [vmem:[%s5762_s4 + $0x3d0] sm:$0x3f]  ;;  %v4478_v62 = vld [vmem:[%s5762_s4 + $0x458] sm:$0xff]  ;;  %v4480_v52 = vld [vmem:[%s5762_s4 + $0x468] sm:$0x3f] }
 0x30e   : > { %2976 = vst [vmem:[%s6834_s2 + $0x360] sm:$0xff] %v2787_v2  ;;  %v2801_v12 = vmul.f32 %v4461_v15, %v7260_v54  ;;  %v7335_v2 = vperm.slane %v2539_v9, 0  ;;  %v4464_v54 = vld [vmem:[%s5762_s4 + $0x3e8] sm:$0x3f]  ;;  %v4479_v15 = vld [vmem:[%s5762_s4 + $0x460] sm:$0x3f] }
 0x30f   : > { %2977 = vst [vmem:[%s6834_s2 + $0x368] sm:$0xff] %v2788_v42  ;;  %v4463_v42 = vld [vmem:[%s5762_s4 + $0x3e0] sm:$0x3f]  ;;  %v2804_v36 = vmul.f32 %v4464_v54, %v7275_v49 }
 0x310   : > { %2978 = vst [vmem:[%s6834_s2 + $0x370] sm:$0xff] %v2789_v55  ;;  %v2803_v8 = vmul.f32 %v4463_v42, %v7270_v7  ;;  %v2805_v61 = vmul.f32 %v4465_v56, %v7335_v2  ;;  %v7355_v55 = vperm.slane %v2539_v9, 4  ;;  %v4466_v7 = vld [vmem:[%s5762_s4 + $0x3f8] sm:$0xff]  ;;  %v4467_v49 = vld [vmem:[%s5762_s4 + $0x400] sm:$0xff]  ;;  %v2812_v31 = vmul.f32 %v4472_v3, %v7335_v2  ;;  %v4481_v42 = vld [vmem:[%s5762_s4 + $0x470] sm:$0x3f] }
 0x311   : > { %2979 = vst [vmem:[%s6834_s2 + $0x378] sm:$0xff] %v2790_v14  ;;  %v2806_v1 = vmul.f32 %v4466_v7, %v7340_v22  ;;  %v7360_v14 = vperm.slane %v2539_v9, 5  ;;  %v2807_v20 = vmul.f32 %v4467_v49, %v7345_v46 }
 0x312   : > { %2980 = vst [vmem:[%s6834_s2 + $0x380] sm:$0xff] %v2791_v13  ;;  %v7365_v13 = vperm.slane %v2539_v9, 6  ;;  %v4476_v9 = vld [vmem:[%s5762_s4 + $0x448] sm:$0xff] }
 0x313   : > { %2981 = vst [vmem:[%s6834_s2 + $0x388] sm:$0xff] %v2792_v24  ;;  %v2541_v24 = vsel %vm1690_vm5, %v6795_v26, %v6797_v19  ;;  %v2816_v4 = vmul.f32 %v4476_v9, %v7355_v55  ;;  %vm8488_vm5 = vmmov %vm8484_vm2  ;;  %v4496_v9 = vld [vmem:[%s5762_s4 + $0x4e8] sm:$0xff] }
 0x314   : > { %2982 = vst [vmem:[%s6834_s2 + $0x390] sm:$0xff] %v2793_v29  ;;  %v4469_v29 = vld [vmem:[%s5762_s4 + $0x410] sm:$0xff]  ;;  %v2811_v26 = vmul.f32 %v4471_v59, %v7365_v13  ;;  %v2542_v19 = vsel %vm2514_vm11, %v2541_v24, %v2540_v50  ;;  %v2452_v50 = vmul.f32 %v6736_v34, %v6769_v40  ;;  %v2453_v24 = vmul.f32 %v6741_v23, %v6771_v51 }
 0x315   : > { %2983 = vst [vmem:[%s6834_s2 + $0x398] sm:$0xff] %v2794_v21  ;;  %v2809_v32 = vmul.f32 %v4469_v29, %v7355_v55  ;;  %v4470_v21 = vld [vmem:[%s5762_s4 + $0x418] sm:$0xff]  ;;  %v2545_v41 = vsel %vm2516_vm7, %v2544_v18, %v2542_v19  ;;  %v4487_v29 = vld [vmem:[%s5762_s4 + $0x4a0] sm:$0xff]  ;;  %v4489_v23 = vld [vmem:[%s5762_s4 + $0x4b0] sm:$0xff]  ;;  %v2481_v19 = vrot.slane %v2455_v48, 3 }
 0x316   : > { %2984 = vst [vmem:[%s6834_s2 + $0x3a0] sm:$0xff] %v2795_v10  ;;  %v2810_v39 = vmul.f32 %v4470_v21, %v7360_v14  ;;  %v2813_v10 = vmul.f32 %v4473_v6, %v7340_v22  ;;  %v2479_v59 = vrot.slane %v2453_v24, 5  ;;  %v4491_v18 = vld [vmem:[%s5762_s4 + $0x4c0] sm:$0xff]  ;;  %v4494_v6 = vld [vmem:[%s5762_s4 + $0x4d8] sm:$0xff]  ;;  %v4508_v48 = vld [vmem:[%s5762_s4 + $0x548] sm:$0xff] }
 0x317   : > { %2985 = vst [vmem:[%s6834_s2 + $0x3a8] sm:$0xff] %v2796_v5  ;;  %v2814_v5 = vmul.f32 %v4474_v25, %v7345_v46  ;;  %v4507_v24 = vld [vmem:[%s5762_s4 + $0x540] sm:$0xff] }
 0x318   : > { %2986 = vst [vmem:[%s6834_s2 + $0x3b0] sm:$0xff] %v2797_v58  ;;  %v2815_v58 = vmul.f32 %v4475_v57, %v7350_v43  ;;  %v4495_v57 = vld [vmem:[%s5762_s4 + $0x4e0] sm:$0xff] }
 0x319   : > { %2987 = vst [vmem:[%s6834_s2 + $0x3b8] sm:$0x3f] %v2798_v44  ;;  %v4477_v44 = vld [vmem:[%s5762_s4 + $0x450] sm:$0xff] }
 0x31a   : > { %2988 = vst [vmem:[%s6834_s2 + $0x3c0] sm:$0x3f] %v2799_v35  ;;  %v2817_v11 = vmul.f32 %v4477_v44, %v7360_v14  ;;  %v2546_v35 = vrot.slane %v2545_v41, 7  ;;  %v4497_v44 = vld [vmem:[%s5762_s4 + $0x4f0] sm:$0xff] }
 0x31b   : > { %2989 = vst [vmem:[%s6834_s2 + $0x3c8] sm:$0x3f] %v2800_v33  ;;  %v2818_v33 = vmul.f32 %v4478_v62, %v7365_v13 }
 0x31c   : > { %2990 = vst [vmem:[%s6834_s2 + $0x3d0] sm:$0x3f] %v2801_v12  ;;  %v2819_v12 = vmul.f32 %v4479_v15, %v7335_v2  ;;  %v7422_v54 = vperm.slane %v2546_v35, 0  ;;  %v4483_v2 = vld [vmem:[%s5762_s4 + $0x480] sm:$0x3f]  ;;  %v7430_v7 = vperm.slane %v2546_v35, 1 }
 0x31d   : > { %2991 = vst [vmem:[%s6834_s2 + $0x3d8] sm:$0x3f] %v2802_v63  ;;  %v2820_v63 = vmul.f32 %v4480_v52, %v7340_v22  ;;  %v4484_v22 = vld [vmem:[%s5762_s4 + $0x488] sm:$0x3f]  ;;  %v7437_v49 = vperm.slane %v2546_v35, 3 }
 0x31e   : > { %2992 = vst [vmem:[%s6834_s2 + $0x3e0] sm:$0x3f] %v2803_v8  ;;  %v2821_v8 = vmul.f32 %v4481_v42, %v7345_v46  ;;  %v7435_v46 = vperm.slane %v2546_v35, 2 }
 0x31f   : > { %2993 = vst [vmem:[%s6834_s2 + $0x3e8] sm:$0x3f] %v2804_v36  ;;  %v4482_v36 = vld [vmem:[%s5762_s4 + $0x478] sm:$0x3f]  ;;  %v2829_v40 = vmul.f32 %v4489_v23, %v7437_v49 }
 0x320   : > { %2994 = vst [vmem:[%s6834_s2 + $0x3f0] sm:$0xff] %v2805_v61  ;;  %v2822_v56 = vmul.f32 %v4482_v36, %v7350_v43  ;;  %v2823_v61 = vmul.f32 %v4483_v2, %v7355_v55  ;;  %v4485_v43 = vld [vmem:[%s5762_s4 + $0x490] sm:$0x3f]  ;;  %v2826_v55 = vmul.f32 %v4486_v16, %v7422_v54  ;;  %v4502_v2 = vld [vmem:[%s5762_s4 + $0x518] sm:$0x3f] }
 0x321   : > { %2995 = vst [vmem:[%s6834_s2 + $0x3f8] sm:$0xff] %v2806_v1  ;;  %v2824_v1 = vmul.f32 %v4484_v22, %v7360_v14  ;;  %v2451_v14 = vmul.f32 %v6732_v38, %v6767_v45  ;;  %v2827_v38 = vmul.f32 %v4487_v29, %v7430_v7  ;;  %v7460_v45 = vperm.slane %v2546_v35, 5  ;;  %v4501_v36 = vld [vmem:[%s5762_s4 + $0x510] sm:$0x3f]  ;;  %v4503_v22 = vld [vmem:[%s5762_s4 + $0x520] sm:$0x3f] }
 0x322   : > { %2996 = vst [vmem:[%s6834_s2 + $0x400] sm:$0xff] %v2807_v20  ;;  %v2825_v20 = vmul.f32 %v4485_v43, %v7365_v13  ;;  %v2454_v13 = vmul.f32 %v6746_v27, %v6775_v17  ;;  %v7467_v27 = vperm.slane %v2546_v35, 6  ;;  %v2450_v17 = vmul.f32 %v6730_v0, %v6765_v30  ;;  %v4492_v0 = vld [vmem:[%s5762_s4 + $0x4c8] sm:$0xff]  ;;  %v4493_v30 = vld [vmem:[%s5762_s4 + $0x4d0] sm:$0xff]  ;;  %v4510_v23 = vld [vmem:[%s5762_s4 + $0x558] sm:$0xff] }
 0x323   : > { %2997 = vst [vmem:[%s6834_s2 + $0x408] sm:$0xff] %v2808_v53  ;;  %v7444_v53 = vperm.slane %v2546_v35, 4  ;;  %v2477_v21 = vrot.slane %v2451_v14, 7  ;;  %v2831_v3 = vmul.f32 %v4491_v18, %v7460_v45  ;;  %v2833_v60 = vmul.f32 %v4493_v30, %v7422_v54  ;;  %v4504_v43 = vld [vmem:[%s5762_s4 + $0x528] sm:$0x3f]  ;;  %v4518_v30 = vld [vmem:[%s5762_s4 + $0x598] sm:$0xff] }
 0x324   : > { %2998 = vst [vmem:[%s6834_s2 + $0x410] sm:$0xff] %v2809_v32  ;;  %v4488_v32 = vld [vmem:[%s5762_s4 + $0x4a8] sm:$0xff]  ;;  %v2832_v28 = vmul.f32 %v4492_v0, %v7467_v27  ;;  %v4505_v16 = vld [vmem:[%s5762_s4 + $0x530] sm:$0x3f]  ;;  %v4506_v14 = vld [vmem:[%s5762_s4 + $0x538] sm:$0x3f] }
 0x325   : > { %2999 = vst [vmem:[%s6834_s2 + $0x418] sm:$0xff] %v2810_v39  ;;  %v2828_v34 = vmul.f32 %v4488_v32, %v7435_v46  ;;  %v2830_v51 = vmul.f32 %v4490_v37, %v7444_v53  ;;  %v2478_v39 = vrot.slane %v2452_v50, 6  ;;  %v2547_v25 = vsel %vm2253_vm13, %v2450_v17, %v2477_v21  ;;  %v4516_v18 = vld [vmem:[%s5762_s4 + $0x588] sm:$0xff]  ;;  %v4517_v0 = vld [vmem:[%s5762_s4 + $0x590] sm:$0xff] }
 0x326   : > { %3000 = vst [vmem:[%s6834_s2 + $0x420] sm:$0xff] %v2811_v26  ;;  %v2480_v26 = vrot.slane %v2454_v13, 4 }
 0x327   : > { %3001 = vst [vmem:[%s6834_s2 + $0x428] sm:$0xff] %v2812_v31  ;;  %v2482_v31 = vrot.slane %v2456_v47, 2  ;;  %v4513_v47 = vld [vmem:[%s5762_s4 + $0x570] sm:$0xff] }
 0x328   : > { %3002 = vst [vmem:[%s6834_s2 + $0x430] sm:$0xff] %v2813_v10  ;;  %v2834_v10 = vmul.f32 %v4494_v6, %v7430_v7  ;;  %v2550_v41 = vsel %vm1658_vm1, %v2480_v26, %v2481_v19  ;;  %v4515_v26 = vld [vmem:[%s5762_s4 + $0x580] sm:$0xff] }
 0x329   : > { %3003 = vst [vmem:[%s6834_s2 + $0x438] sm:$0xff] %v2814_v5  ;;  %v2548_v5 = vsel %vm8488_vm5, %v2478_v39, %v2479_v59  ;;  %v2551_v62 = vsel %vm2487_vm14, %v2550_v41, %v2482_v31  ;;  %v4514_v39 = vld [vmem:[%s5762_s4 + $0x578] sm:$0xff]  ;;  %v4519_v31 = vld [vmem:[%s5762_s4 + $0x5a0] sm:$0xff] }
 0x32a   : > { %3004 = vst [vmem:[%s6834_s2 + $0x440] sm:$0xff] %v2815_v58  ;;  %v2835_v58 = vmul.f32 %v4495_v57, %v7435_v46  ;;  %v2549_v35 = vsel %vm2203_vm12, %v2547_v25, %v2548_v5  ;;  %v4521_v5 = vld [vmem:[%s5762_s4 + $0x5b0] sm:$0x3f]  ;;  %v4522_v57 = vld [vmem:[%s5762_s4 + $0x5b8] sm:$0x3f] }
 0x32b   : > { %3005 = vst [vmem:[%s6834_s2 + $0x448] sm:$0xff] %v2816_v4  ;;  %v2836_v4 = vmul.f32 %v4496_v9, %v7437_v49  ;;  %v4523_v9 = vld [vmem:[%s5762_s4 + $0x5c0] sm:$0x3f] }
 0x32c   : > { %3006 = vst [vmem:[%s6834_s2 + $0x450] sm:$0xff] %v2817_v11  ;;  %v2837_v11 = vmul.f32 %v4497_v44, %v7444_v53  ;;  %v4524_v44 = vld [vmem:[%s5762_s4 + $0x5c8] sm:$0x3f] }
 0x32d   : > { %3007 = vst [vmem:[%s6834_s2 + $0x458] sm:$0xff] %v2818_v33  ;;  %v4498_v33 = vld [vmem:[%s5762_s4 + $0x4f8] sm:$0xff] }
 0x32e   : > { %3008 = vst [vmem:[%s6834_s2 + $0x460] sm:$0x3f] %v2819_v12  ;;  %v2838_v15 = vmul.f32 %v4498_v33, %v7460_v45  ;;  %v4499_v12 = vld [vmem:[%s5762_s4 + $0x500] sm:$0xff]  ;;  %v4526_v33 = vld [vmem:[%s5762_s4 + $0x5d8] sm:$0x3f] }
 0x32f   : > { %3009 = vst [vmem:[%s6834_s2 + $0x468] sm:$0x3f] %v2820_v63  ;;  %v2839_v52 = vmul.f32 %v4499_v12, %v7467_v27  ;;  %v4500_v63 = vld [vmem:[%s5762_s4 + $0x508] sm:$0x3f]  ;;  %v4527_v12 = vld [vmem:[%s5762_s4 + $0x5e0] sm:$0x3f] }
 0x330   : > { %3010 = vst [vmem:[%s6834_s2 + $0x470] sm:$0x3f] %v2821_v8  ;;  %v2840_v42 = vmul.f32 %v4500_v63, %v7422_v54  ;;  %v2552_v8 = vsel %vm1736_vm9, %v2549_v35, %v2551_v62  ;;  %v2843_v54 = vmul.f32 %v4503_v22, %v7437_v49  ;;  %v2846_v49 = vmul.f32 %v4506_v14, %v7467_v27  ;;  %v4511_v27 = vld [vmem:[%s5762_s4 + $0x560] sm:$0xff]  ;;  %v4525_v35 = vld [vmem:[%s5762_s4 + $0x5d0] sm:$0x3f] }
 0x331   : > { %3011 = vst [vmem:[%s6834_s2 + $0x478] sm:$0x3f] %v2822_v56  ;;  %v2841_v56 = vmul.f32 %v4501_v36, %v7430_v7  ;;  %v2610_v7 = vperm.slane %v2552_v8, 1  ;;  %v2612_v50 = vperm.slane %v2552_v8, 3  ;;  %v2613_v13 = vperm.slane %v2552_v8, 4 }
 0x332   : > { %3012 = vst [vmem:[%s6834_s2 + $0x480] sm:$0x3f] %v2823_v61  ;;  %v2842_v61 = vmul.f32 %v4502_v2, %v7435_v46  ;;  %v2845_v46 = vmul.f32 %v4505_v16, %v7460_v45  ;;  %v4509_v45 = vld [vmem:[%s5762_s4 + $0x550] sm:$0xff] }
 0x333   : > { %3013 = vst [vmem:[%s6834_s2 + $0x488] sm:$0x3f] %v2824_v1  ;;  %v2609_v1 = vperm.slane %v2552_v8, 0  ;;  %v2848_v29 = vmul.f32 %v4508_v48, %v2610_v7  ;;  %v2851_v37 = vmul.f32 %v4511_v27, %v2613_v13  ;;  %v2855_v19 = vmul.f32 %v4515_v26, %v2610_v7 }
 0x334   : > { %3014 = vst [vmem:[%s6834_s2 + $0x490] sm:$0x3f] %v2825_v20  ;;  %v2844_v20 = vmul.f32 %v4504_v43, %v7444_v53  ;;  %v2865_v62 = vmul.f32 %v4525_v35, %v2613_v13 }
 0x335   : > { %3015 = vst [vmem:[%s6834_s2 + $0x498] sm:$0xff] %v2826_v55  ;;  %v2611_v55 = vperm.slane %v2552_v8, 2  ;;  %v2847_v53 = vmul.f32 %v4507_v24, %v2609_v1  ;;  %v2854_v59 = vmul.f32 %v4514_v39, %v2609_v1  ;;  %v2861_v41 = vmul.f32 %v4521_v5, %v2609_v1 }
 0x336   : > { %3016 = vst [vmem:[%s6834_s2 + $0x4a0] sm:$0xff] %v2827_v38  ;;  %v2614_v38 = vperm.slane %v2552_v8, 5 }
 0x337   : > { %3017 = vst [vmem:[%s6834_s2 + $0x4a8] sm:$0xff] %v2828_v34  ;;  %v2849_v32 = vmul.f32 %v4509_v45, %v2611_v55  ;;  %v2615_v34 = vperm.slane %v2552_v8, 6 }
 0x338   : > { %3018 = vst [vmem:[%s6834_s2 + $0x4b0] sm:$0xff] %v2829_v40  ;;  %v2850_v40 = vmul.f32 %v4510_v23, %v2612_v50  ;;  %v2859_v6 = vmul.f32 %v4519_v31, %v2614_v38 }
 0x339   : > { %3019 = vst [vmem:[%s6834_s2 + $0x4b8] sm:$0xff] %v2830_v51  ;;  %v4512_v51 = vld [vmem:[%s5762_s4 + $0x568] sm:$0xff]  ;;  %v2853_v21 = vmul.f32 %v4513_v47, %v2615_v34 }
 0x33a   : > { %3020 = vst [vmem:[%s6834_s2 + $0x4c0] sm:$0xff] %v2831_v3  ;;  %v2852_v17 = vmul.f32 %v4512_v51, %v2614_v38  ;;  %v2856_v3 = vmul.f32 %v4516_v18, %v2611_v55 }
 0x33b   : > { %3021 = vst [vmem:[%s6834_s2 + $0x4c8] sm:$0xff] %v2832_v28  ;;  %v2857_v28 = vmul.f32 %v4517_v0, %v2612_v50 }
 0x33c   : > { %3022 = vst [vmem:[%s6834_s2 + $0x4d0] sm:$0xff] %v2833_v60  ;;  %v2858_v60 = vmul.f32 %v4518_v30, %v2613_v13 }
 0x33d   : > { %3023 = vst [vmem:[%s6834_s2 + $0x4d8] sm:$0xff] %v2834_v10  ;;  %v4520_v10 = vld [vmem:[%s5762_s4 + $0x5a8] sm:$0xff] }
 0x33e   : > { %3024 = vst [vmem:[%s6834_s2 + $0x4e0] sm:$0xff] %v2835_v58  ;;  %v2860_v25 = vmul.f32 %v4520_v10, %v2615_v34  ;;  %v2862_v58 = vmul.f32 %v4522_v57, %v2610_v7 }
 0x33f   : > { %3025 = vst [vmem:[%s6834_s2 + $0x4e8] sm:$0xff] %v2836_v4  ;;  %v2863_v4 = vmul.f32 %v4523_v9, %v2611_v55 }
 0x340   : > { %3026 = vst [vmem:[%s6834_s2 + $0x4f0] sm:$0xff] %v2837_v11  ;;  %v2864_v11 = vmul.f32 %v4524_v44, %v2612_v50 }
 0x341   : > { %3027 = vst [vmem:[%s6834_s2 + $0x4f8] sm:$0xff] %v2838_v15  ;;  %v2866_v15 = vmul.f32 %v4526_v33, %v2614_v38 }
 0x342   : > { %3028 = vst [vmem:[%s6834_s2 + $0x500] sm:$0xff] %v2839_v52  ;;  %v2867_v52 = vmul.f32 %v4527_v12, %v2615_v34 }
 0x343   : > { %3029 = vst [vmem:[%s6834_s2 + $0x508] sm:$0x3f] %v2840_v42 }
 0x344   : > { %3030 = vst [vmem:[%s6834_s2 + $0x510] sm:$0x3f] %v2841_v56 }
 0x345   : > { %3031 = vst [vmem:[%s6834_s2 + $0x518] sm:$0x3f] %v2842_v61 }
 0x346   : > { %3032 = vst [vmem:[%s6834_s2 + $0x520] sm:$0x3f] %v2843_v54 }
 0x347   : > { %3033 = vst [vmem:[%s6834_s2 + $0x528] sm:$0x3f] %v2844_v20 }
 0x348   : > { %3034 = vst [vmem:[%s6834_s2 + $0x530] sm:$0x3f] %v2845_v46 }
 0x349   : > { %3035 = vst [vmem:[%s6834_s2 + $0x538] sm:$0x3f] %v2846_v49 }
 0x34a   : > { %3036 = vst [vmem:[%s6834_s2 + $0x540] sm:$0xff] %v2847_v53 }
 0x34b   : > { %3037 = vst [vmem:[%s6834_s2 + $0x548] sm:$0xff] %v2848_v29 }
 0x34c   : > { %3038 = vst [vmem:[%s6834_s2 + $0x550] sm:$0xff] %v2849_v32 }
 0x34d   : > { %3039 = vst [vmem:[%s6834_s2 + $0x558] sm:$0xff] %v2850_v40 }
 0x34e   : > { %3040 = vst [vmem:[%s6834_s2 + $0x560] sm:$0xff] %v2851_v37 }
 0x34f   : > { %3041 = vst [vmem:[%s6834_s2 + $0x568] sm:$0xff] %v2852_v17 }
 0x350   : > { %3042 = vst [vmem:[%s6834_s2 + $0x570] sm:$0xff] %v2853_v21 }
 0x351   : > { %3043 = vst [vmem:[%s6834_s2 + $0x578] sm:$0xff] %v2854_v59 }
 0x352   : > { %3044 = vst [vmem:[%s6834_s2 + $0x580] sm:$0xff] %v2855_v19 }
 0x353   : > { %3045 = vst [vmem:[%s6834_s2 + $0x588] sm:$0xff] %v2856_v3 }
 0x354   : > { %3046 = vst [vmem:[%s6834_s2 + $0x590] sm:$0xff] %v2857_v28 }
 0x355   : > { %3047 = vst [vmem:[%s6834_s2 + $0x598] sm:$0xff] %v2858_v60 }
 0x356   : > { %3048 = vst [vmem:[%s6834_s2 + $0x5a0] sm:$0xff] %v2859_v6 }
 0x357   : > { %3049 = vst [vmem:[%s6834_s2 + $0x5a8] sm:$0xff] %v2860_v25 }
 0x358   : > { %3050 = vst [vmem:[%s6834_s2 + $0x5b0] sm:$0x3f] %v2861_v41 }
 0x359   : > { %3051 = vst [vmem:[%s6834_s2 + $0x5b8] sm:$0x3f] %v2862_v58 }
 0x35a   : > { %3052 = vst [vmem:[%s6834_s2 + $0x5c0] sm:$0x3f] %v2863_v4  ;;  %3063 = sbr.rel (!%p4941_p7) target bundleno = 1148 (0x47c), region = 106 }
 0x35b   : > { %3053 = vst [vmem:[%s6834_s2 + $0x5c8] sm:$0x3f] %v2864_v11 }
 0x35c   : > { %3054 = vst [vmem:[%s6834_s2 + $0x5d0] sm:$0x3f] %v2865_v62 }
 0x35d   : > { %3055 = vst [vmem:[%s6834_s2 + $0x5d8] sm:$0x3f] %v2866_v15 }
 0x35e   : > { %3056 = vst [vmem:[%s6834_s2 + $0x5e0] sm:$0x3f] %v2867_v52 }
 0x35f   : > { %s8534_s10 = smov (!%p3066_p9, %s3065_s10), 7 }
 0x360   : > { %s3068_s22 = smul.u32 216, %s8534_s10  ;;  %s7586_s6 = sshll.u32 %s8534_s10, 3 }
 0x362   : > { %p3933_p11 = scmp.eq.s32.totalorder %s3068_s22, 0 }
 0x363   : > { %p3078_p7 = scmp.lt.u32.totalorder (!%p3933_p11), %s7586_s6, 8 }
 0x364   : > { %3077 = sbr.rel (%p3933_p11) target bundleno = 1148 (0x47c), region = 110 }
 0x369   : > { %3081 = sbr.rel (%p3078_p7) target bundleno = 1113 (0x459), region = 114  ;;  %s7590_s16 = sand.u32 (!%p3078_p7), 7, %s7586_s6  }
 0x36a   : > { %p3150_p10 = scmp.eq.s32.totalorder (!%p3078_p7), %s7590_s16, 0  ;;  %p3934_p12 = scmp.ne.s32.totalorder (!%p3078_p7), %s7590_s16, 0 }
 0x36e   : > { %3153 = sbr.rel (%p3934_p12) target bundleno = 980 (0x3d4), region = 129  ;;  %s3154_s17 = sshrl.u32 (!%p3934_p12), %s7586_s6, 3 }
 0x36f   : > { %s7597_s26 = sshrl.u32 (!%p3934_p12), %s3154_s17, 1 }
 0x370   : > { %p3935_p13 = scmp.le.s32.totalorder (!%p3934_p12), %s7597_s26, 0 }
 0x373   : > { %3799 = sbr.rel (%p3935_p13) target bundleno = 943 (0x3af), region = 278  ;;  %s8489_s25 = smov (!%p3935_p13), %s7584_s21 }
 0x374   : > { %s8490_s9 = smov (!%p3935_p13), %s6834_s2  ;;  %s7606_s4 = smov (!%p3935_p13), 0  }
 0x375   : > { %s7608_s14 = smov (!%p3935_p13), 0  }
 0x378 LB: >> { %v3165_v63 = vld [vmem:[%s4801_s9] sm:$0xff]  ;;  %v3167_v42 = vld [vmem:[%s4801_s9 + $0x8] sm:$0xff]  ;;  %v3169_v8 = vld [vmem:[%s4801_s9 + $0x38] sm:$0xff]  ;;  %s3273_s29 = sadd.s32 1, %s4805_s4  ;;  %s3159_s14 = sadd.s32 1, %s4809_s14   ;;  %s4809_s14 = sphi %s7608_s14, %s3159_s14   ;;  %s4805_s4 = sphi %s7606_s4, %s8493_s4   ;;  %s4801_s9 = sphi %s8490_s9, %s8492_s9   ;;  %s4797_s25 = sphi %s8489_s25, %s8491_s25  }
 0x379   : >> { %3166 = vst [vmem:[%s4797_s25] sm:$0xff] %v3165_v63  ;;  %v3171_v36 = vld [vmem:[%s4801_s9 + $0x40] sm:$0xff]  ;;  %p3274_p0 = scmp.ge.s32.totalorder %s3273_s29, %s7597_s26  ;;  %v3173_v56 = vld [vmem:[%s4801_s9 + $0x70] sm:$0xff]  ;;  %v3175_v2 = vld [vmem:[%s4801_s9 + $0x78] sm:$0xff]  ;;  %p3158_p1 = scmp.ge.s32.totalorder %s3159_s14, %s7597_s26 }
 0x37a   : >> { %3168 = vst [vmem:[%s4797_s25 + $0x8] sm:$0xff] %v3167_v42  ;;  %v3177_v61 = vld [vmem:[%s4801_s9 + $0xa8] sm:$0xff]  ;;  %v3179_v22 = vld [vmem:[%s4801_s9 + $0xb0] sm:$0xff]  ;;  %v3181_v54 = vld [vmem:[%s4801_s9 + $0xe0] sm:$0xff] }
 0x37b   : >> { %3170 = vst [vmem:[%s4797_s25 + $0x40] sm:$0xff] %v3169_v8  ;;  %s8536_s29 = smov (%p3274_p0, %s3273_s29), 0  ;;  %v3183_v1 = vld [vmem:[%s4801_s9 + $0xe8] sm:$0xff]  ;;  %v3185_v43 = vld [vmem:[%s4801_s9 + $0x118] sm:$0xff]  ;;  %v3187_v20 = vld [vmem:[%s4801_s9 + $0x120] sm:$0xff] }
 0x37c   : >> { %3172 = vst [vmem:[%s4797_s25 + $0x48] sm:$0xff] %v3171_v36  ;;  %s3936_s30 = sshll.u32 %s8536_s29, 4  ;;  %v3189_v7 = vld [vmem:[%s4801_s9 + $0x150] sm:$0xff]  ;;  %v3191_v16 = vld [vmem:[%s4801_s9 + $0x158] sm:$0xff]  ;;  %v3193_v46 = vld [vmem:[%s4801_s9 + $0x188] sm:$0xff]  ;;  %s8493_s4 = smov %s8536_s29 }
 0x37d   : >> { %3174 = vst [vmem:[%s4797_s25 + $0x80] sm:$0xff] %v3173_v56  ;;  %s7640_s5 = scalar_lea.vmem %s6834_s2, %s3936_s30 [#allocation6]   ;;  %s7643_s1 = scalar_lea.vmem %s7584_s21, %s3936_s30   ;;  %v3195_v55 = vld [vmem:[%s4801_s9 + $0x190] sm:$0xff]  ;;  %v3197_v14 = vld [vmem:[%s4801_s9 + $0x1c0] sm:$0xff]  ;;  %v3199_v49 = vld [vmem:[%s4801_s9 + $0x1c8] sm:$0xff] }
 0x37e   : >> { %3176 = vst [vmem:[%s4797_s25 + $0x88] sm:$0xff] %v3175_v2  ;;  %v3201_v50 = vld [vmem:[%s4801_s9 + $0x1f8] sm:$0xff]  ;;  %v3203_v24 = vld [vmem:[%s4801_s9 + $0x200] sm:$0xff]  ;;  %v3205_v53 = vld [vmem:[%s4801_s9 + $0x230] sm:$0xff] }
 0x37f   : >> { %3178 = vst [vmem:[%s4797_s25 + $0xc0] sm:$0xff] %v3177_v61  ;;  %v3207_v13 = vld [vmem:[%s4801_s9 + $0x238] sm:$0xff]  ;;  %v3209_v48 = vld [vmem:[%s4801_s9 + $0x268] sm:$0xff]  ;;  %v3211_v29 = vld [vmem:[%s4801_s9 + $0x270] sm:$0xff] }
 0x380   : >> { %3180 = vst [vmem:[%s4797_s25 + $0xc8] sm:$0xff] %v3179_v22  ;;  %v3213_v38 = vld [vmem:[%s4801_s9 + $0x2a0] sm:$0xff]  ;;  %v3215_v45 = vld [vmem:[%s4801_s9 + $0x2a8] sm:$0xff]  ;;  %v3217_v32 = vld [vmem:[%s4801_s9 + $0x2d8] sm:$0xff] }
 0x381   : >> { %3182 = vst [vmem:[%s4797_s25 + $0x100] sm:$0xff] %v3181_v54  ;;  %v3219_v34 = vld [vmem:[%s4801_s9 + $0x2e0] sm:$0xff]  ;;  %v3221_v23 = vld [vmem:[%s4801_s9 + $0x310] sm:$0xff]  ;;  %v3223_v40 = vld [vmem:[%s4801_s9 + $0x318] sm:$0xff] }
 0x382   : >> { %3184 = vst [vmem:[%s4797_s25 + $0x108] sm:$0xff] %v3183_v1  ;;  %v3225_v27 = vld [vmem:[%s4801_s9 + $0x348] sm:$0xff]  ;;  %v3227_v37 = vld [vmem:[%s4801_s9 + $0x350] sm:$0xff]  ;;  %v3229_v51 = vld [vmem:[%s4801_s9 + $0x380] sm:$0xff] }
 0x383   : >> { %3186 = vst [vmem:[%s4797_s25 + $0x140] sm:$0xff] %v3185_v43  ;;  %v3231_v17 = vld [vmem:[%s4801_s9 + $0x388] sm:$0xff]  ;;  %v3233_v47 = vld [vmem:[%s4801_s9 + $0x3b8] sm:$0xff]  ;;  %v3235_v21 = vld [vmem:[%s4801_s9 + $0x3c0] sm:$0xff] }
 0x384   : >> { %3188 = vst [vmem:[%s4797_s25 + $0x148] sm:$0xff] %v3187_v20  ;;  %v3237_v39 = vld [vmem:[%s4801_s9 + $0x3f0] sm:$0xff]  ;;  %v3239_v59 = vld [vmem:[%s4801_s9 + $0x3f8] sm:$0xff]  ;;  %v3241_v26 = vld [vmem:[%s4801_s9 + $0x428] sm:$0xff] }
 0x385   : >> { %3190 = vst [vmem:[%s4797_s25 + $0x180] sm:$0xff] %v3189_v7  ;;  %v3243_v19 = vld [vmem:[%s4801_s9 + $0x430] sm:$0xff]  ;;  %v3245_v18 = vld [vmem:[%s4801_s9 + $0x460] sm:$0xff]  ;;  %v3247_v3 = vld [vmem:[%s4801_s9 + $0x468] sm:$0xff] }
 0x386   : >> { %3192 = vst [vmem:[%s4797_s25 + $0x188] sm:$0xff] %v3191_v16  ;;  %v3249_v0 = vld [vmem:[%s4801_s9 + $0x498] sm:$0xff]  ;;  %v3251_v28 = vld [vmem:[%s4801_s9 + $0x4a0] sm:$0xff]  ;;  %v3253_v30 = vld [vmem:[%s4801_s9 + $0x4d0] sm:$0xff] }
 0x387   : >> { %3194 = vst [vmem:[%s4797_s25 + $0x1c0] sm:$0xff] %v3193_v46  ;;  %v3255_v60 = vld [vmem:[%s4801_s9 + $0x4d8] sm:$0xff]  ;;  %v3257_v31 = vld [vmem:[%s4801_s9 + $0x508] sm:$0xff]  ;;  %v3259_v6 = vld [vmem:[%s4801_s9 + $0x510] sm:$0xff] }
 0x388   : >> { %3196 = vst [vmem:[%s4797_s25 + $0x1c8] sm:$0xff] %v3195_v55  ;;  %v3261_v10 = vld [vmem:[%s4801_s9 + $0x540] sm:$0xff]  ;;  %v3263_v25 = vld [vmem:[%s4801_s9 + $0x548] sm:$0xff]  ;;  %v3265_v5 = vld [vmem:[%s4801_s9 + $0x578] sm:$0xff] }
 0x389   : >> { %3198 = vst [vmem:[%s4797_s25 + $0x200] sm:$0xff] %v3197_v14  ;;  %v3267_v41 = vld [vmem:[%s4801_s9 + $0x580] sm:$0xff]  ;;  %v3269_v57 = vld [vmem:[%s4801_s9 + $0x5b0] sm:$0xff]  ;;  %v3271_v58 = vld [vmem:[%s4801_s9 + $0x5b8] sm:$0xff]  ;;  %s8492_s9 = smov %s7640_s5 }
 0x38a   : >> { %3200 = vst [vmem:[%s4797_s25 + $0x208] sm:$0xff] %v3199_v49 }
 0x38b   : >> { %3202 = vst [vmem:[%s4797_s25 + $0x240] sm:$0xff] %v3201_v50 }
 0x38c   : >> { %3204 = vst [vmem:[%s4797_s25 + $0x248] sm:$0xff] %v3203_v24 }
 0x38d   : >> { %3206 = vst [vmem:[%s4797_s25 + $0x280] sm:$0xff] %v3205_v53 }
 0x38e   : >> { %3208 = vst [vmem:[%s4797_s25 + $0x288] sm:$0xff] %v3207_v13 }
 0x38f   : >> { %3210 = vst [vmem:[%s4797_s25 + $0x2c0] sm:$0xff] %v3209_v48 }
 0x390   : >> { %3212 = vst [vmem:[%s4797_s25 + $0x2c8] sm:$0xff] %v3211_v29 }
 0x391   : >> { %3214 = vst [vmem:[%s4797_s25 + $0x300] sm:$0xff] %v3213_v38 }
 0x392   : >> { %3216 = vst [vmem:[%s4797_s25 + $0x308] sm:$0xff] %v3215_v45 }
 0x393   : >> { %3218 = vst [vmem:[%s4797_s25 + $0x340] sm:$0xff] %v3217_v32 }
 0x394   : >> { %3220 = vst [vmem:[%s4797_s25 + $0x348] sm:$0xff] %v3219_v34 }
 0x395   : >> { %3222 = vst [vmem:[%s4797_s25 + $0x380] sm:$0xff] %v3221_v23 }
 0x396   : >> { %3224 = vst [vmem:[%s4797_s25 + $0x388] sm:$0xff] %v3223_v40 }
 0x397   : >> { %3226 = vst [vmem:[%s4797_s25 + $0x3c0] sm:$0xff] %v3225_v27 }
 0x398   : >> { %3228 = vst [vmem:[%s4797_s25 + $0x3c8] sm:$0xff] %v3227_v37 }
 0x399   : >> { %3230 = vst [vmem:[%s4797_s25 + $0x400] sm:$0xff] %v3229_v51 }
 0x39a   : >> { %3232 = vst [vmem:[%s4797_s25 + $0x408] sm:$0xff] %v3231_v17 }
 0x39b   : >> { %3234 = vst [vmem:[%s4797_s25 + $0x440] sm:$0xff] %v3233_v47 }
 0x39c   : >> { %3236 = vst [vmem:[%s4797_s25 + $0x448] sm:$0xff] %v3235_v21 }
 0x39d   : >> { %3238 = vst [vmem:[%s4797_s25 + $0x480] sm:$0xff] %v3237_v39 }
 0x39e   : >> { %3240 = vst [vmem:[%s4797_s25 + $0x488] sm:$0xff] %v3239_v59 }
 0x39f   : >> { %3242 = vst [vmem:[%s4797_s25 + $0x4c0] sm:$0xff] %v3241_v26 }
 0x3a0   : >> { %3244 = vst [vmem:[%s4797_s25 + $0x4c8] sm:$0xff] %v3243_v19 }
 0x3a1   : >> { %3246 = vst [vmem:[%s4797_s25 + $0x500] sm:$0xff] %v3245_v18 }
 0x3a2   : >> { %3248 = vst [vmem:[%s4797_s25 + $0x508] sm:$0xff] %v3247_v3 }
 0x3a3   : >> { %3250 = vst [vmem:[%s4797_s25 + $0x540] sm:$0xff] %v3249_v0 }
 0x3a4   : >> { %3252 = vst [vmem:[%s4797_s25 + $0x548] sm:$0xff] %v3251_v28 }
 0x3a5   : >> { %3254 = vst [vmem:[%s4797_s25 + $0x580] sm:$0xff] %v3253_v30 }
 0x3a6   : >> { %3256 = vst [vmem:[%s4797_s25 + $0x588] sm:$0xff] %v3255_v60 }
 0x3a7   : >> { %3258 = vst [vmem:[%s4797_s25 + $0x5c0] sm:$0xff] %v3257_v31 }
 0x3a8   : >> { %3260 = vst [vmem:[%s4797_s25 + $0x5c8] sm:$0xff] %v3259_v6 }
 0x3a9   : >> { %3262 = vst [vmem:[%s4797_s25 + $0x600] sm:$0xff] %v3261_v10 }
 0x3aa   : >> { %3264 = vst [vmem:[%s4797_s25 + $0x608] sm:$0xff] %v3263_v25  ;;  %3161 = sbr.rel (!%p3158_p1) target bundleno = 888 (0x378), region = 284 }
 0x3ab   : >> { %3266 = vst [vmem:[%s4797_s25 + $0x640] sm:$0xff] %v3265_v5 }
 0x3ac   : >> { %3268 = vst [vmem:[%s4797_s25 + $0x648] sm:$0xff] %v3267_v41 }
 0x3ad   : >> { %3270 = vst [vmem:[%s4797_s25 + $0x680] sm:$0xff] %v3269_v57 }
 0x3ae   : >> { %3272 = vst [vmem:[%s4797_s25 + $0x688] sm:$0xff] %v3271_v58  ;;  %s8491_s25 = smov %s7643_s1 }
 0x3af PF: > { %s7753_s27 = sand.u32 1, %s3154_s17   ;;  %s3962_s13 = sshll.u32 %s7597_s26, 4 }
 0x3b0   : > { %s7757_s0 = scalar_lea.vmem %s6834_s2, %s3962_s13 [#allocation6]   ;;  %s7760_s23 = scalar_lea.vmem %s7584_s21, %s3962_s13  }
 0x3b1   : > { %p3941_p2 = scmp.le.s32.totalorder %s7753_s27, 0 }
 0x3b2   : > { %s8494_s12 = smov (!%p3941_p2), %s7760_s23  ;;  %s8495_s10 = smov (!%p3941_p2), %s7757_s0 }
 0x3b3   : > { %3813 = sbr.rel (%p3941_p2) target bundleno = 980 (0x3d4), region = 289  ;;  %s7769_s8 = smov (!%p3941_p2), 0  }
 0x3b4   : > { %s7771_s24 = smov (!%p3941_p2), 0  }
 0x3b8 LB: >> { %v3296_v9 = vld [vmem:[%s4817_s10] sm:$0xff]  ;;  %v3298_v4 = vld [vmem:[%s4817_s10 + $0x38] sm:$0xff]  ;;  %v3300_v44 = vld [vmem:[%s4817_s10 + $0x70] sm:$0xff]  ;;  %s3350_s11 = sadd.s32 1, %s4821_s8  ;;  %s3290_s24 = sadd.s32 1, %s4825_s24   ;;  %s4825_s24 = sphi %s7771_s24, %s3290_s24   ;;  %s4821_s8 = sphi %s7769_s8, %s8498_s8   ;;  %s4817_s10 = sphi %s8495_s10, %s8497_s10   ;;  %s4813_s12 = sphi %s8494_s12, %s8496_s12  }
 0x3b9   : >> { %3297 = vst [vmem:[%s4813_s12] sm:$0xff] %v3296_v9  ;;  %v3302_v11 = vld [vmem:[%s4817_s10 + $0xa8] sm:$0xff]  ;;  %p3351_p3 = scmp.ge.s32.totalorder %s3350_s11, %s7753_s27  ;;  %v3304_v35 = vld [vmem:[%s4817_s10 + $0xe0] sm:$0xff]  ;;  %v3306_v62 = vld [vmem:[%s4817_s10 + $0x118] sm:$0xff]  ;;  %p3289_p4 = scmp.ge.s32.totalorder %s3290_s24, %s7753_s27 }
 0x3ba   : >> { %3299 = vst [vmem:[%s4813_s12 + $0x40] sm:$0xff] %v3298_v4  ;;  %v3308_v33 = vld [vmem:[%s4817_s10 + $0x150] sm:$0xff]  ;;  %v3310_v15 = vld [vmem:[%s4817_s10 + $0x188] sm:$0xff]  ;;  %v3312_v12 = vld [vmem:[%s4817_s10 + $0x1c0] sm:$0xff] }
 0x3bb   : >> { %3301 = vst [vmem:[%s4813_s12 + $0x80] sm:$0xff] %v3300_v44  ;;  %s8538_s11 = smov (%p3351_p3, %s3350_s11), 0  ;;  %v3314_v52 = vld [vmem:[%s4817_s10 + $0x1f8] sm:$0xff]  ;;  %v3316_v63 = vld [vmem:[%s4817_s10 + $0x230] sm:$0xff]  ;;  %v3318_v42 = vld [vmem:[%s4817_s10 + $0x268] sm:$0xff] }
 0x3bc   : >> { %3303 = vst [vmem:[%s4813_s12 + $0xc0] sm:$0xff] %v3302_v11  ;;  %s3942_s28 = sshll.u32 %s8538_s11, 3  ;;  %v3320_v8 = vld [vmem:[%s4817_s10 + $0x2a0] sm:$0xff]  ;;  %v3322_v36 = vld [vmem:[%s4817_s10 + $0x2d8] sm:$0xff]  ;;  %v3324_v56 = vld [vmem:[%s4817_s10 + $0x310] sm:$0xff]  ;;  %s8498_s8 = smov %s8538_s11 }
 0x3bd   : >> { %3305 = vst [vmem:[%s4813_s12 + $0x100] sm:$0xff] %v3304_v35  ;;  %s7803_s22 = scalar_lea.vmem %s7757_s0, %s3942_s28 [#allocation6]   ;;  %s7806_s17 = scalar_lea.vmem %s7760_s23, %s3942_s28   ;;  %v3326_v2 = vld [vmem:[%s4817_s10 + $0x348] sm:$0xff]  ;;  %v3328_v61 = vld [vmem:[%s4817_s10 + $0x380] sm:$0xff]  ;;  %v3330_v22 = vld [vmem:[%s4817_s10 + $0x3b8] sm:$0xff] }
 0x3be   : >> { %3307 = vst [vmem:[%s4813_s12 + $0x140] sm:$0xff] %v3306_v62  ;;  %v3332_v54 = vld [vmem:[%s4817_s10 + $0x3f0] sm:$0xff]  ;;  %v3334_v1 = vld [vmem:[%s4817_s10 + $0x428] sm:$0xff]  ;;  %v3336_v43 = vld [vmem:[%s4817_s10 + $0x460] sm:$0xff] }
 0x3bf   : >> { %3309 = vst [vmem:[%s4813_s12 + $0x180] sm:$0xff] %v3308_v33  ;;  %v3338_v20 = vld [vmem:[%s4817_s10 + $0x498] sm:$0xff]  ;;  %v3340_v7 = vld [vmem:[%s4817_s10 + $0x4d0] sm:$0xff]  ;;  %v3342_v16 = vld [vmem:[%s4817_s10 + $0x508] sm:$0xff] }
 0x3c0   : >> { %3311 = vst [vmem:[%s4813_s12 + $0x1c0] sm:$0xff] %v3310_v15  ;;  %v3344_v46 = vld [vmem:[%s4817_s10 + $0x540] sm:$0xff]  ;;  %v3346_v55 = vld [vmem:[%s4817_s10 + $0x578] sm:$0xff]  ;;  %v3348_v14 = vld [vmem:[%s4817_s10 + $0x5b0] sm:$0xff]  ;;  %s8497_s10 = smov %s7803_s22 }
 0x3c1   : >> { %3313 = vst [vmem:[%s4813_s12 + $0x200] sm:$0xff] %v3312_v12 }
 0x3c2   : >> { %3315 = vst [vmem:[%s4813_s12 + $0x240] sm:$0xff] %v3314_v52 }
 0x3c3   : >> { %3317 = vst [vmem:[%s4813_s12 + $0x280] sm:$0xff] %v3316_v63 }
 0x3c4   : >> { %3319 = vst [vmem:[%s4813_s12 + $0x2c0] sm:$0xff] %v3318_v42 }
 0x3c5   : >> { %3321 = vst [vmem:[%s4813_s12 + $0x300] sm:$0xff] %v3320_v8 }
 0x3c6   : >> { %3323 = vst [vmem:[%s4813_s12 + $0x340] sm:$0xff] %v3322_v36 }
 0x3c7   : >> { %3325 = vst [vmem:[%s4813_s12 + $0x380] sm:$0xff] %v3324_v56 }
 0x3c8   : >> { %3327 = vst [vmem:[%s4813_s12 + $0x3c0] sm:$0xff] %v3326_v2 }
 0x3c9   : >> { %3329 = vst [vmem:[%s4813_s12 + $0x400] sm:$0xff] %v3328_v61 }
 0x3ca   : >> { %3331 = vst [vmem:[%s4813_s12 + $0x440] sm:$0xff] %v3330_v22 }
 0x3cb   : >> { %3333 = vst [vmem:[%s4813_s12 + $0x480] sm:$0xff] %v3332_v54 }
 0x3cc   : >> { %3335 = vst [vmem:[%s4813_s12 + $0x4c0] sm:$0xff] %v3334_v1 }
 0x3cd   : >> { %3337 = vst [vmem:[%s4813_s12 + $0x500] sm:$0xff] %v3336_v43 }
 0x3ce   : >> { %3339 = vst [vmem:[%s4813_s12 + $0x540] sm:$0xff] %v3338_v20 }
 0x3cf   : >> { %3341 = vst [vmem:[%s4813_s12 + $0x580] sm:$0xff] %v3340_v7  ;;  %3292 = sbr.rel (!%p3289_p4) target bundleno = 952 (0x3b8), region = 295 }
 0x3d0   : >> { %3343 = vst [vmem:[%s4813_s12 + $0x5c0] sm:$0xff] %v3342_v16 }
 0x3d1   : >> { %3345 = vst [vmem:[%s4813_s12 + $0x600] sm:$0xff] %v3344_v46 }
 0x3d2   : >> { %3347 = vst [vmem:[%s4813_s12 + $0x640] sm:$0xff] %v3346_v55 }
 0x3d3   : >> { %3349 = vst [vmem:[%s4813_s12 + $0x680] sm:$0xff] %v3348_v14  ;;  %s8496_s12 = smov %s7806_s17 }
 0x3d4 PF: > { %3359 = sbr.rel (%p3150_p10) target bundleno = 1113 (0x459), region = 147  ;;  %s3361_s26 = ssub.s32 (!%p3150_p10), %s7586_s6, %s7590_s16 }
 0x3d5   : > { %s3365_s25 = sshrl.u32 (!%p3150_p10), %s7586_s6, 3  ;;  %s7866_s9 = scalar_lea.vmem (!%p3150_p10), %s6834_s2, %s3361_s26 [#allocation6] }
 0x3d6   : > { %s7869_s4 = scalar_lea.vmem (!%p3150_p10), %s7584_s21, %s3361_s26  ;;  %s7873_s14 = sshrl.u32 (!%p3150_p10), %s3365_s25, 1 }
 0x3d7   : > { %p3944_p5 = scmp.le.s32.totalorder (!%p3150_p10), %s7873_s14, 0 }
 0x3d9   : > { %3827 = sbr.rel (%p3944_p5) target bundleno = 1045 (0x415), region = 300  ;;  %s8499_s29 = smov (!%p3944_p5), %s7584_s21 }
 0x3da   : > { %s8500_s30 = smov (!%p3944_p5), %s6834_s2  ;;  %s7882_s5 = smov (!%p3944_p5), 0  }
 0x3db   : > { %s7884_s1 = smov (!%p3944_p5), 0  }
 0x3de LB: >> { %v3376_v49 = vld [vmem:[%s4833_s30] sm:$0xff]  ;;  %v3378_v50 = vld [vmem:[%s4833_s30 + $0x8] sm:$0xff]  ;;  %v3380_v24 = vld [vmem:[%s4833_s30 + $0x38] sm:$0xff]  ;;  %s3484_s27 = sadd.s32 1, %s4837_s5  ;;  %s3370_s1 = sadd.s32 1, %s4841_s1   ;;  %s4841_s1 = sphi %s7884_s1, %s3370_s1   ;;  %s4837_s5 = sphi %s7882_s5, %s8503_s5   ;;  %s4833_s30 = sphi %s8500_s30, %s8502_s30   ;;  %s4829_s29 = sphi %s8499_s29, %s8501_s29  }
 0x3df   : >> { %3377 = vst [vmem:[%s4829_s29] sm:$0xff] %v3376_v49  ;;  %v3382_v53 = vld [vmem:[%s4833_s30 + $0x40] sm:$0xff]  ;;  %p3485_p6 = scmp.ge.s32.totalorder %s3484_s27, %s7873_s14  ;;  %v3384_v13 = vld [vmem:[%s4833_s30 + $0x70] sm:$0xff]  ;;  %v3386_v48 = vld [vmem:[%s4833_s30 + $0x78] sm:$0xff]  ;;  %p3369_p8 = scmp.ge.s32.totalorder %s3370_s1, %s7873_s14 }
 0x3e0   : >> { %3379 = vst [vmem:[%s4829_s29 + $0x8] sm:$0xff] %v3378_v50  ;;  %v3388_v29 = vld [vmem:[%s4833_s30 + $0xa8] sm:$0xff]  ;;  %v3390_v38 = vld [vmem:[%s4833_s30 + $0xb0] sm:$0xff]  ;;  %v3392_v45 = vld [vmem:[%s4833_s30 + $0xe0] sm:$0xff] }
 0x3e1   : >> { %3381 = vst [vmem:[%s4829_s29 + $0x40] sm:$0xff] %v3380_v24  ;;  %s8540_s27 = smov (%p3485_p6, %s3484_s27), 0  ;;  %v3394_v32 = vld [vmem:[%s4833_s30 + $0xe8] sm:$0xff]  ;;  %v3396_v34 = vld [vmem:[%s4833_s30 + $0x118] sm:$0xff]  ;;  %v3398_v23 = vld [vmem:[%s4833_s30 + $0x120] sm:$0xff] }
 0x3e2   : >> { %3383 = vst [vmem:[%s4829_s29 + $0x48] sm:$0xff] %v3382_v53  ;;  %s3945_s13 = sshll.u32 %s8540_s27, 4  ;;  %v3400_v40 = vld [vmem:[%s4833_s30 + $0x150] sm:$0xff]  ;;  %v3402_v27 = vld [vmem:[%s4833_s30 + $0x158] sm:$0xff]  ;;  %v3404_v37 = vld [vmem:[%s4833_s30 + $0x188] sm:$0xff]  ;;  %s8503_s5 = smov %s8540_s27 }
 0x3e3   : >> { %3385 = vst [vmem:[%s4829_s29 + $0x80] sm:$0xff] %v3384_v13  ;;  %s7916_s0 = scalar_lea.vmem %s6834_s2, %s3945_s13 [#allocation6]   ;;  %s7919_s23 = scalar_lea.vmem %s7584_s21, %s3945_s13   ;;  %v3406_v51 = vld [vmem:[%s4833_s30 + $0x190] sm:$0xff]  ;;  %v3408_v17 = vld [vmem:[%s4833_s30 + $0x1c0] sm:$0xff]  ;;  %v3410_v47 = vld [vmem:[%s4833_s30 + $0x1c8] sm:$0xff] }
 0x3e4   : >> { %3387 = vst [vmem:[%s4829_s29 + $0x88] sm:$0xff] %v3386_v48  ;;  %v3412_v21 = vld [vmem:[%s4833_s30 + $0x1f8] sm:$0xff]  ;;  %v3414_v39 = vld [vmem:[%s4833_s30 + $0x200] sm:$0xff]  ;;  %v3416_v59 = vld [vmem:[%s4833_s30 + $0x230] sm:$0xff] }
 0x3e5   : >> { %3389 = vst [vmem:[%s4829_s29 + $0xc0] sm:$0xff] %v3388_v29  ;;  %v3418_v26 = vld [vmem:[%s4833_s30 + $0x238] sm:$0xff]  ;;  %v3420_v19 = vld [vmem:[%s4833_s30 + $0x268] sm:$0xff]  ;;  %v3422_v18 = vld [vmem:[%s4833_s30 + $0x270] sm:$0xff] }
 0x3e6   : >> { %3391 = vst [vmem:[%s4829_s29 + $0xc8] sm:$0xff] %v3390_v38  ;;  %v3424_v3 = vld [vmem:[%s4833_s30 + $0x2a0] sm:$0xff]  ;;  %v3426_v0 = vld [vmem:[%s4833_s30 + $0x2a8] sm:$0xff]  ;;  %v3428_v28 = vld [vmem:[%s4833_s30 + $0x2d8] sm:$0xff] }
 0x3e7   : >> { %3393 = vst [vmem:[%s4829_s29 + $0x100] sm:$0xff] %v3392_v45  ;;  %v3430_v30 = vld [vmem:[%s4833_s30 + $0x2e0] sm:$0xff]  ;;  %v3432_v60 = vld [vmem:[%s4833_s30 + $0x310] sm:$0xff]  ;;  %v3434_v31 = vld [vmem:[%s4833_s30 + $0x318] sm:$0xff] }
 0x3e8   : >> { %3395 = vst [vmem:[%s4829_s29 + $0x108] sm:$0xff] %v3394_v32  ;;  %v3436_v6 = vld [vmem:[%s4833_s30 + $0x348] sm:$0xff]  ;;  %v3438_v10 = vld [vmem:[%s4833_s30 + $0x350] sm:$0xff]  ;;  %v3440_v25 = vld [vmem:[%s4833_s30 + $0x380] sm:$0xff] }
 0x3e9   : >> { %3397 = vst [vmem:[%s4829_s29 + $0x140] sm:$0xff] %v3396_v34  ;;  %v3442_v5 = vld [vmem:[%s4833_s30 + $0x388] sm:$0xff]  ;;  %v3444_v41 = vld [vmem:[%s4833_s30 + $0x3b8] sm:$0xff]  ;;  %v3446_v57 = vld [vmem:[%s4833_s30 + $0x3c0] sm:$0xff] }
 0x3ea   : >> { %3399 = vst [vmem:[%s4829_s29 + $0x148] sm:$0xff] %v3398_v23  ;;  %v3448_v58 = vld [vmem:[%s4833_s30 + $0x3f0] sm:$0xff]  ;;  %v3450_v9 = vld [vmem:[%s4833_s30 + $0x3f8] sm:$0xff]  ;;  %v3452_v4 = vld [vmem:[%s4833_s30 + $0x428] sm:$0xff] }
 0x3eb   : >> { %3401 = vst [vmem:[%s4829_s29 + $0x180] sm:$0xff] %v3400_v40  ;;  %v3454_v44 = vld [vmem:[%s4833_s30 + $0x430] sm:$0xff]  ;;  %v3456_v11 = vld [vmem:[%s4833_s30 + $0x460] sm:$0xff]  ;;  %v3458_v35 = vld [vmem:[%s4833_s30 + $0x468] sm:$0xff] }
 0x3ec   : >> { %3403 = vst [vmem:[%s4829_s29 + $0x188] sm:$0xff] %v3402_v27  ;;  %v3460_v62 = vld [vmem:[%s4833_s30 + $0x498] sm:$0xff]  ;;  %v3462_v33 = vld [vmem:[%s4833_s30 + $0x4a0] sm:$0xff]  ;;  %v3464_v15 = vld [vmem:[%s4833_s30 + $0x4d0] sm:$0xff] }
 0x3ed   : >> { %3405 = vst [vmem:[%s4829_s29 + $0x1c0] sm:$0xff] %v3404_v37  ;;  %v3466_v12 = vld [vmem:[%s4833_s30 + $0x4d8] sm:$0xff]  ;;  %v3468_v52 = vld [vmem:[%s4833_s30 + $0x508] sm:$0xff]  ;;  %v3470_v63 = vld [vmem:[%s4833_s30 + $0x510] sm:$0xff] }
 0x3ee   : >> { %3407 = vst [vmem:[%s4829_s29 + $0x1c8] sm:$0xff] %v3406_v51  ;;  %v3472_v42 = vld [vmem:[%s4833_s30 + $0x540] sm:$0xff]  ;;  %v3474_v8 = vld [vmem:[%s4833_s30 + $0x548] sm:$0xff]  ;;  %v3476_v36 = vld [vmem:[%s4833_s30 + $0x578] sm:$0xff] }
 0x3ef   : >> { %3409 = vst [vmem:[%s4829_s29 + $0x200] sm:$0xff] %v3408_v17  ;;  %v3478_v56 = vld [vmem:[%s4833_s30 + $0x580] sm:$0xff]  ;;  %v3480_v2 = vld [vmem:[%s4833_s30 + $0x5b0] sm:$0xff]  ;;  %v3482_v61 = vld [vmem:[%s4833_s30 + $0x5b8] sm:$0xff]  ;;  %s8502_s30 = smov %s7916_s0 }
 0x3f0   : >> { %3411 = vst [vmem:[%s4829_s29 + $0x208] sm:$0xff] %v3410_v47 }
 0x3f1   : >> { %3413 = vst [vmem:[%s4829_s29 + $0x240] sm:$0xff] %v3412_v21 }
 0x3f2   : >> { %3415 = vst [vmem:[%s4829_s29 + $0x248] sm:$0xff] %v3414_v39 }
 0x3f3   : >> { %3417 = vst [vmem:[%s4829_s29 + $0x280] sm:$0xff] %v3416_v59 }
 0x3f4   : >> { %3419 = vst [vmem:[%s4829_s29 + $0x288] sm:$0xff] %v3418_v26 }
 0x3f5   : >> { %3421 = vst [vmem:[%s4829_s29 + $0x2c0] sm:$0xff] %v3420_v19 }
 0x3f6   : >> { %3423 = vst [vmem:[%s4829_s29 + $0x2c8] sm:$0xff] %v3422_v18 }
 0x3f7   : >> { %3425 = vst [vmem:[%s4829_s29 + $0x300] sm:$0xff] %v3424_v3 }
 0x3f8   : >> { %3427 = vst [vmem:[%s4829_s29 + $0x308] sm:$0xff] %v3426_v0 }
 0x3f9   : >> { %3429 = vst [vmem:[%s4829_s29 + $0x340] sm:$0xff] %v3428_v28 }
 0x3fa   : >> { %3431 = vst [vmem:[%s4829_s29 + $0x348] sm:$0xff] %v3430_v30 }
 0x3fb   : >> { %3433 = vst [vmem:[%s4829_s29 + $0x380] sm:$0xff] %v3432_v60 }
 0x3fc   : >> { %3435 = vst [vmem:[%s4829_s29 + $0x388] sm:$0xff] %v3434_v31 }
 0x3fd   : >> { %3437 = vst [vmem:[%s4829_s29 + $0x3c0] sm:$0xff] %v3436_v6 }
 0x3fe   : >> { %3439 = vst [vmem:[%s4829_s29 + $0x3c8] sm:$0xff] %v3438_v10 }
 0x3ff   : >> { %3441 = vst [vmem:[%s4829_s29 + $0x400] sm:$0xff] %v3440_v25 }
 0x400   : >> { %3443 = vst [vmem:[%s4829_s29 + $0x408] sm:$0xff] %v3442_v5 }
 0x401   : >> { %3445 = vst [vmem:[%s4829_s29 + $0x440] sm:$0xff] %v3444_v41 }
 0x402   : >> { %3447 = vst [vmem:[%s4829_s29 + $0x448] sm:$0xff] %v3446_v57 }
 0x403   : >> { %3449 = vst [vmem:[%s4829_s29 + $0x480] sm:$0xff] %v3448_v58 }
 0x404   : >> { %3451 = vst [vmem:[%s4829_s29 + $0x488] sm:$0xff] %v3450_v9 }
 0x405   : >> { %3453 = vst [vmem:[%s4829_s29 + $0x4c0] sm:$0xff] %v3452_v4 }
 0x406   : >> { %3455 = vst [vmem:[%s4829_s29 + $0x4c8] sm:$0xff] %v3454_v44 }
 0x407   : >> { %3457 = vst [vmem:[%s4829_s29 + $0x500] sm:$0xff] %v3456_v11 }
 0x408   : >> { %3459 = vst [vmem:[%s4829_s29 + $0x508] sm:$0xff] %v3458_v35 }
 0x409   : >> { %3461 = vst [vmem:[%s4829_s29 + $0x540] sm:$0xff] %v3460_v62 }
 0x40a   : >> { %3463 = vst [vmem:[%s4829_s29 + $0x548] sm:$0xff] %v3462_v33 }
 0x40b   : >> { %3465 = vst [vmem:[%s4829_s29 + $0x580] sm:$0xff] %v3464_v15 }
 0x40c   : >> { %3467 = vst [vmem:[%s4829_s29 + $0x588] sm:$0xff] %v3466_v12 }
 0x40d   : >> { %3469 = vst [vmem:[%s4829_s29 + $0x5c0] sm:$0xff] %v3468_v52 }
 0x40e   : >> { %3471 = vst [vmem:[%s4829_s29 + $0x5c8] sm:$0xff] %v3470_v63 }
 0x40f   : >> { %3473 = vst [vmem:[%s4829_s29 + $0x600] sm:$0xff] %v3472_v42 }
 0x410   : >> { %3475 = vst [vmem:[%s4829_s29 + $0x608] sm:$0xff] %v3474_v8  ;;  %3372 = sbr.rel (!%p3369_p8) target bundleno = 990 (0x3de), region = 306 }
 0x411   : >> { %3477 = vst [vmem:[%s4829_s29 + $0x640] sm:$0xff] %v3476_v36 }
 0x412   : >> { %3479 = vst [vmem:[%s4829_s29 + $0x648] sm:$0xff] %v3478_v56 }
 0x413   : >> { %3481 = vst [vmem:[%s4829_s29 + $0x680] sm:$0xff] %v3480_v2 }
 0x414   : >> { %3483 = vst [vmem:[%s4829_s29 + $0x688] sm:$0xff] %v3482_v61  ;;  %s8501_s29 = smov %s7919_s23 }
 0x415 PF: > { %s8029_s12 = sand.u32 1, %s3365_s25   ;;  %s3964_s10 = sshll.u32 %s7873_s14, 4 }
 0x416   : > { %s8033_s8 = scalar_lea.vmem %s6834_s2, %s3964_s10 [#allocation6]   ;;  %s8036_s24 = scalar_lea.vmem %s7584_s21, %s3964_s10  }
 0x417   : > { %p3950_p9 = scmp.le.s32.totalorder %s8029_s12, 0 }
 0x418   : > { %s8504_s11 = smov (!%p3950_p9), %s8036_s24  ;;  %s8505_s28 = smov (!%p3950_p9), %s8033_s8 }
 0x419   : > { %3841 = sbr.rel (%p3950_p9) target bundleno = 1082 (0x43a), region = 311  ;;  %s8045_s22 = smov (!%p3950_p9), 0  }
 0x41a   : > { %s8047_s17 = smov (!%p3950_p9), 0  }
 0x41e LB: >> { %v3507_v22 = vld [vmem:[%s4849_s28] sm:$0xff]  ;;  %v3509_v54 = vld [vmem:[%s4849_s28 + $0x38] sm:$0xff]  ;;  %v3511_v1 = vld [vmem:[%s4849_s28 + $0x70] sm:$0xff]  ;;  %s3561_s26 = sadd.s32 1, %s4853_s22  ;;  %s3501_s17 = sadd.s32 1, %s4857_s17   ;;  %s4857_s17 = sphi %s8047_s17, %s3501_s17   ;;  %s4853_s22 = sphi %s8045_s22, %s8508_s22   ;;  %s4849_s28 = sphi %s8505_s28, %s8507_s28   ;;  %s4845_s11 = sphi %s8504_s11, %s8506_s11  }
 0x41f   : >> { %3508 = vst [vmem:[%s4845_s11] sm:$0xff] %v3507_v22  ;;  %v3513_v43 = vld [vmem:[%s4849_s28 + $0xa8] sm:$0xff]  ;;  %p3562_p11 = scmp.ge.s32.totalorder %s3561_s26, %s8029_s12  ;;  %v3515_v20 = vld [vmem:[%s4849_s28 + $0xe0] sm:$0xff]  ;;  %v3517_v7 = vld [vmem:[%s4849_s28 + $0x118] sm:$0xff]  ;;  %p3500_p7 = scmp.ge.s32.totalorder %s3501_s17, %s8029_s12 }
 0x420   : >> { %3510 = vst [vmem:[%s4845_s11 + $0x40] sm:$0xff] %v3509_v54  ;;  %v3519_v16 = vld [vmem:[%s4849_s28 + $0x150] sm:$0xff]  ;;  %v3521_v46 = vld [vmem:[%s4849_s28 + $0x188] sm:$0xff]  ;;  %v3523_v55 = vld [vmem:[%s4849_s28 + $0x1c0] sm:$0xff] }
 0x421   : >> { %3512 = vst [vmem:[%s4845_s11 + $0x80] sm:$0xff] %v3511_v1  ;;  %s8542_s26 = smov (%p3562_p11, %s3561_s26), 0  ;;  %v3525_v14 = vld [vmem:[%s4849_s28 + $0x1f8] sm:$0xff]  ;;  %v3527_v49 = vld [vmem:[%s4849_s28 + $0x230] sm:$0xff]  ;;  %v3529_v50 = vld [vmem:[%s4849_s28 + $0x268] sm:$0xff] }
 0x422   : >> { %3514 = vst [vmem:[%s4845_s11 + $0xc0] sm:$0xff] %v3513_v43  ;;  %s3951_s25 = sshll.u32 %s8542_s26, 3  ;;  %v3531_v24 = vld [vmem:[%s4849_s28 + $0x2a0] sm:$0xff]  ;;  %v3533_v53 = vld [vmem:[%s4849_s28 + $0x2d8] sm:$0xff]  ;;  %v3535_v13 = vld [vmem:[%s4849_s28 + $0x310] sm:$0xff]  ;;  %s8508_s22 = smov %s8542_s26 }
 0x423   : >> { %3516 = vst [vmem:[%s4845_s11 + $0x100] sm:$0xff] %v3515_v20  ;;  %s8079_s14 = scalar_lea.vmem %s8033_s8, %s3951_s25 [#allocation6]   ;;  %s8082_s29 = scalar_lea.vmem %s8036_s24, %s3951_s25   ;;  %v3537_v48 = vld [vmem:[%s4849_s28 + $0x348] sm:$0xff]  ;;  %v3539_v29 = vld [vmem:[%s4849_s28 + $0x380] sm:$0xff]  ;;  %v3541_v38 = vld [vmem:[%s4849_s28 + $0x3b8] sm:$0xff] }
 0x424   : >> { %3518 = vst [vmem:[%s4845_s11 + $0x140] sm:$0xff] %v3517_v7  ;;  %v3543_v45 = vld [vmem:[%s4849_s28 + $0x3f0] sm:$0xff]  ;;  %v3545_v32 = vld [vmem:[%s4849_s28 + $0x428] sm:$0xff]  ;;  %v3547_v34 = vld [vmem:[%s4849_s28 + $0x460] sm:$0xff] }
 0x425   : >> { %3520 = vst [vmem:[%s4845_s11 + $0x180] sm:$0xff] %v3519_v16  ;;  %v3549_v23 = vld [vmem:[%s4849_s28 + $0x498] sm:$0xff]  ;;  %v3551_v40 = vld [vmem:[%s4849_s28 + $0x4d0] sm:$0xff]  ;;  %v3553_v27 = vld [vmem:[%s4849_s28 + $0x508] sm:$0xff] }
 0x426   : >> { %3522 = vst [vmem:[%s4845_s11 + $0x1c0] sm:$0xff] %v3521_v46  ;;  %v3555_v37 = vld [vmem:[%s4849_s28 + $0x540] sm:$0xff]  ;;  %v3557_v51 = vld [vmem:[%s4849_s28 + $0x578] sm:$0xff]  ;;  %v3559_v17 = vld [vmem:[%s4849_s28 + $0x5b0] sm:$0xff]  ;;  %s8507_s28 = smov %s8079_s14 }
 0x427   : >> { %3524 = vst [vmem:[%s4845_s11 + $0x200] sm:$0xff] %v3523_v55 }
 0x428   : >> { %3526 = vst [vmem:[%s4845_s11 + $0x240] sm:$0xff] %v3525_v14 }
 0x429   : >> { %3528 = vst [vmem:[%s4845_s11 + $0x280] sm:$0xff] %v3527_v49 }
 0x42a   : >> { %3530 = vst [vmem:[%s4845_s11 + $0x2c0] sm:$0xff] %v3529_v50 }
 0x42b   : >> { %3532 = vst [vmem:[%s4845_s11 + $0x300] sm:$0xff] %v3531_v24 }
 0x42c   : >> { %3534 = vst [vmem:[%s4845_s11 + $0x340] sm:$0xff] %v3533_v53 }
 0x42d   : >> { %3536 = vst [vmem:[%s4845_s11 + $0x380] sm:$0xff] %v3535_v13 }
 0x42e   : >> { %3538 = vst [vmem:[%s4845_s11 + $0x3c0] sm:$0xff] %v3537_v48 }
 0x42f   : >> { %3540 = vst [vmem:[%s4845_s11 + $0x400] sm:$0xff] %v3539_v29 }
 0x430   : >> { %3542 = vst [vmem:[%s4845_s11 + $0x440] sm:$0xff] %v3541_v38 }
 0x431   : >> { %3544 = vst [vmem:[%s4845_s11 + $0x480] sm:$0xff] %v3543_v45 }
 0x432   : >> { %3546 = vst [vmem:[%s4845_s11 + $0x4c0] sm:$0xff] %v3545_v32 }
 0x433   : >> { %3548 = vst [vmem:[%s4845_s11 + $0x500] sm:$0xff] %v3547_v34 }
 0x434   : >> { %3550 = vst [vmem:[%s4845_s11 + $0x540] sm:$0xff] %v3549_v23 }
 0x435   : >> { %3552 = vst [vmem:[%s4845_s11 + $0x580] sm:$0xff] %v3551_v40  ;;  %3503 = sbr.rel (!%p3500_p7) target bundleno = 1054 (0x41e), region = 317 }
 0x436   : >> { %3554 = vst [vmem:[%s4845_s11 + $0x5c0] sm:$0xff] %v3553_v27 }
 0x437   : >> { %3556 = vst [vmem:[%s4845_s11 + $0x600] sm:$0xff] %v3555_v37 }
 0x438   : >> { %3558 = vst [vmem:[%s4845_s11 + $0x640] sm:$0xff] %v3557_v51 }
 0x439   : >> { %3560 = vst [vmem:[%s4845_s11 + $0x680] sm:$0xff] %v3559_v17  ;;  %s8506_s11 = smov %s8082_s29 }
 0x43a PF: > { %s4862_s30 = smov 1  }
 0x43b   : > { %s3568_s5 = sshll.u32 %s4862_s30, %s7590_s16 }
 0x43c   : > { %s8137_s1 = sadd.s32 4294967295, %s3568_s5 }
 0x43d   : > { %v3578_v47 = vld [vmem:[%s7866_s9] sm:%s8137_s1]  ;;  %v3580_v21 = vld [vmem:[%s7866_s9 + $0x38] sm:%s8137_s1] }
 0x43e   : > { %3579 = vst [vmem:[%s7869_s4] sm:%s8137_s1] %v3578_v47  ;;  %v3582_v39 = vld [vmem:[%s7866_s9 + $0x70] sm:%s8137_s1] }
 0x43f   : > { %3581 = vst [vmem:[%s7869_s4 + $0x40] sm:%s8137_s1] %v3580_v21  ;;  %v3584_v59 = vld [vmem:[%s7866_s9 + $0xa8] sm:%s8137_s1] }
 0x440   : > { %3583 = vst [vmem:[%s7869_s4 + $0x80] sm:%s8137_s1] %v3582_v39  ;;  %v3586_v26 = vld [vmem:[%s7866_s9 + $0xe0] sm:%s8137_s1] }
 0x441   : > { %3585 = vst [vmem:[%s7869_s4 + $0xc0] sm:%s8137_s1] %v3584_v59  ;;  %v3588_v19 = vld [vmem:[%s7866_s9 + $0x118] sm:%s8137_s1] }
 0x442   : > { %3587 = vst [vmem:[%s7869_s4 + $0x100] sm:%s8137_s1] %v3586_v26  ;;  %v3590_v18 = vld [vmem:[%s7866_s9 + $0x150] sm:%s8137_s1] }
 0x443   : > { %3589 = vst [vmem:[%s7869_s4 + $0x140] sm:%s8137_s1] %v3588_v19  ;;  %v3592_v3 = vld [vmem:[%s7866_s9 + $0x188] sm:%s8137_s1] }
 0x444   : > { %3591 = vst [vmem:[%s7869_s4 + $0x180] sm:%s8137_s1] %v3590_v18  ;;  %v3594_v0 = vld [vmem:[%s7866_s9 + $0x1c0] sm:%s8137_s1] }
 0x445   : > { %3593 = vst [vmem:[%s7869_s4 + $0x1c0] sm:%s8137_s1] %v3592_v3  ;;  %v3596_v28 = vld [vmem:[%s7866_s9 + $0x1f8] sm:%s8137_s1] }
 0x446   : > { %3595 = vst [vmem:[%s7869_s4 + $0x200] sm:%s8137_s1] %v3594_v0  ;;  %v3598_v30 = vld [vmem:[%s7866_s9 + $0x230] sm:%s8137_s1] }
 0x447   : > { %3597 = vst [vmem:[%s7869_s4 + $0x240] sm:%s8137_s1] %v3596_v28  ;;  %v3600_v60 = vld [vmem:[%s7866_s9 + $0x268] sm:%s8137_s1] }
 0x448   : > { %3599 = vst [vmem:[%s7869_s4 + $0x280] sm:%s8137_s1] %v3598_v30  ;;  %v3602_v31 = vld [vmem:[%s7866_s9 + $0x2a0] sm:%s8137_s1] }
 0x449   : > { %3601 = vst [vmem:[%s7869_s4 + $0x2c0] sm:%s8137_s1] %v3600_v60  ;;  %v3604_v6 = vld [vmem:[%s7866_s9 + $0x2d8] sm:%s8137_s1] }
 0x44a   : > { %3603 = vst [vmem:[%s7869_s4 + $0x300] sm:%s8137_s1] %v3602_v31  ;;  %v3606_v10 = vld [vmem:[%s7866_s9 + $0x310] sm:%s8137_s1] }
 0x44b   : > { %3605 = vst [vmem:[%s7869_s4 + $0x340] sm:%s8137_s1] %v3604_v6  ;;  %v3608_v25 = vld [vmem:[%s7866_s9 + $0x348] sm:%s8137_s1] }
 0x44c   : > { %3607 = vst [vmem:[%s7869_s4 + $0x380] sm:%s8137_s1] %v3606_v10  ;;  %v3610_v5 = vld [vmem:[%s7866_s9 + $0x380] sm:%s8137_s1] }
 0x44d   : > { %3609 = vst [vmem:[%s7869_s4 + $0x3c0] sm:%s8137_s1] %v3608_v25  ;;  %v3612_v41 = vld [vmem:[%s7866_s9 + $0x3b8] sm:%s8137_s1] }
 0x44e   : > { %3611 = vst [vmem:[%s7869_s4 + $0x400] sm:%s8137_s1] %v3610_v5  ;;  %v3614_v57 = vld [vmem:[%s7866_s9 + $0x3f0] sm:%s8137_s1] }
 0x44f   : > { %3613 = vst [vmem:[%s7869_s4 + $0x440] sm:%s8137_s1] %v3612_v41  ;;  %v3616_v58 = vld [vmem:[%s7866_s9 + $0x428] sm:%s8137_s1] }
 0x450   : > { %3615 = vst [vmem:[%s7869_s4 + $0x480] sm:%s8137_s1] %v3614_v57  ;;  %v3618_v9 = vld [vmem:[%s7866_s9 + $0x460] sm:%s8137_s1] }
 0x451   : > { %3617 = vst [vmem:[%s7869_s4 + $0x4c0] sm:%s8137_s1] %v3616_v58  ;;  %v3620_v4 = vld [vmem:[%s7866_s9 + $0x498] sm:%s8137_s1] }
 0x452   : > { %3619 = vst [vmem:[%s7869_s4 + $0x500] sm:%s8137_s1] %v3618_v9  ;;  %v3622_v44 = vld [vmem:[%s7866_s9 + $0x4d0] sm:%s8137_s1] }
 0x453   : > { %3621 = vst [vmem:[%s7869_s4 + $0x540] sm:%s8137_s1] %v3620_v4  ;;  %v3624_v11 = vld [vmem:[%s7866_s9 + $0x508] sm:%s8137_s1] }
 0x454   : > { %3623 = vst [vmem:[%s7869_s4 + $0x580] sm:%s8137_s1] %v3622_v44  ;;  %v3626_v35 = vld [vmem:[%s7866_s9 + $0x540] sm:%s8137_s1] }
 0x455   : > { %3625 = vst [vmem:[%s7869_s4 + $0x5c0] sm:%s8137_s1] %v3624_v11  ;;  %v3628_v62 = vld [vmem:[%s7866_s9 + $0x578] sm:%s8137_s1] }
 0x456   : > { %3627 = vst [vmem:[%s7869_s4 + $0x600] sm:%s8137_s1] %v3626_v35  ;;  %v3630_v33 = vld [vmem:[%s7866_s9 + $0x5b0] sm:%s8137_s1] }
 0x457   : > { %3629 = vst [vmem:[%s7869_s4 + $0x640] sm:%s8137_s1] %v3628_v62 }
 0x458   : > { %3631 = vst [vmem:[%s7869_s4 + $0x680] sm:%s8137_s1] %v3630_v33 }
 0x459 PF: > { %p3954_p10 = scmp.ge.u32.totalorder %s7586_s6, 8 }
 0x45a   : > { %s4863_s16 = smov (!%p3954_p10), 1  }
 0x45b   : > { %3084 = sbr.rel (%p3954_p10) target bundleno = 1148 (0x47c), region = 118  ;;  %s3085_s9 = sshll.u32 (!%p3954_p10), %s4863_s16, %s7586_s6 }
 0x45c   : > { %s8249_s4 = sadd.s32 (!%p3954_p10), 4294967295, %s3085_s9 }
 0x460   : > { %v3095_v15 = vld [vmem:[%s6834_s2] sm:%s8249_s4]  ;;  %v3097_v12 = vld [vmem:[%s6834_s2 + $0x38] sm:%s8249_s4] }
 0x461   : > { %3096 = vst [vmem:[%s7584_s21] sm:%s8249_s4] %v3095_v15  ;;  %v3099_v52 = vld [vmem:[%s6834_s2 + $0x70] sm:%s8249_s4] }
 0x462   : > { %3098 = vst [vmem:[%s7584_s21 + $0x40] sm:%s8249_s4] %v3097_v12  ;;  %v3101_v63 = vld [vmem:[%s6834_s2 + $0xa8] sm:%s8249_s4] }
 0x463   : > { %3100 = vst [vmem:[%s7584_s21 + $0x80] sm:%s8249_s4] %v3099_v52  ;;  %v3103_v42 = vld [vmem:[%s6834_s2 + $0xe0] sm:%s8249_s4] }
 0x464   : > { %3102 = vst [vmem:[%s7584_s21 + $0xc0] sm:%s8249_s4] %v3101_v63  ;;  %v3105_v8 = vld [vmem:[%s6834_s2 + $0x118] sm:%s8249_s4] }
 0x465   : > { %3104 = vst [vmem:[%s7584_s21 + $0x100] sm:%s8249_s4] %v3103_v42  ;;  %v3107_v36 = vld [vmem:[%s6834_s2 + $0x150] sm:%s8249_s4] }
 0x466   : > { %3106 = vst [vmem:[%s7584_s21 + $0x140] sm:%s8249_s4] %v3105_v8  ;;  %v3109_v56 = vld [vmem:[%s6834_s2 + $0x188] sm:%s8249_s4] }
 0x467   : > { %3108 = vst [vmem:[%s7584_s21 + $0x180] sm:%s8249_s4] %v3107_v36  ;;  %v3111_v2 = vld [vmem:[%s6834_s2 + $0x1c0] sm:%s8249_s4] }
 0x468   : > { %3110 = vst [vmem:[%s7584_s21 + $0x1c0] sm:%s8249_s4] %v3109_v56  ;;  %v3113_v61 = vld [vmem:[%s6834_s2 + $0x1f8] sm:%s8249_s4] }
 0x469   : > { %3112 = vst [vmem:[%s7584_s21 + $0x200] sm:%s8249_s4] %v3111_v2  ;;  %v3115_v22 = vld [vmem:[%s6834_s2 + $0x230] sm:%s8249_s4] }
 0x46a   : > { %3114 = vst [vmem:[%s7584_s21 + $0x240] sm:%s8249_s4] %v3113_v61  ;;  %v3117_v54 = vld [vmem:[%s6834_s2 + $0x268] sm:%s8249_s4] }
 0x46b   : > { %3116 = vst [vmem:[%s7584_s21 + $0x280] sm:%s8249_s4] %v3115_v22  ;;  %v3119_v1 = vld [vmem:[%s6834_s2 + $0x2a0] sm:%s8249_s4] }
 0x46c   : > { %3118 = vst [vmem:[%s7584_s21 + $0x2c0] sm:%s8249_s4] %v3117_v54  ;;  %v3121_v43 = vld [vmem:[%s6834_s2 + $0x2d8] sm:%s8249_s4] }
 0x46d   : > { %3120 = vst [vmem:[%s7584_s21 + $0x300] sm:%s8249_s4] %v3119_v1  ;;  %v3123_v20 = vld [vmem:[%s6834_s2 + $0x310] sm:%s8249_s4] }
 0x46e   : > { %3122 = vst [vmem:[%s7584_s21 + $0x340] sm:%s8249_s4] %v3121_v43  ;;  %v3125_v7 = vld [vmem:[%s6834_s2 + $0x348] sm:%s8249_s4] }
 0x46f   : > { %3124 = vst [vmem:[%s7584_s21 + $0x380] sm:%s8249_s4] %v3123_v20  ;;  %v3127_v16 = vld [vmem:[%s6834_s2 + $0x380] sm:%s8249_s4] }
 0x470   : > { %3126 = vst [vmem:[%s7584_s21 + $0x3c0] sm:%s8249_s4] %v3125_v7  ;;  %v3129_v46 = vld [vmem:[%s6834_s2 + $0x3b8] sm:%s8249_s4] }
 0x471   : > { %3128 = vst [vmem:[%s7584_s21 + $0x400] sm:%s8249_s4] %v3127_v16  ;;  %v3131_v55 = vld [vmem:[%s6834_s2 + $0x3f0] sm:%s8249_s4] }
 0x472   : > { %3130 = vst [vmem:[%s7584_s21 + $0x440] sm:%s8249_s4] %v3129_v46  ;;  %v3133_v14 = vld [vmem:[%s6834_s2 + $0x428] sm:%s8249_s4] }
 0x473   : > { %3132 = vst [vmem:[%s7584_s21 + $0x480] sm:%s8249_s4] %v3131_v55  ;;  %v3135_v49 = vld [vmem:[%s6834_s2 + $0x460] sm:%s8249_s4] }
 0x474   : > { %3134 = vst [vmem:[%s7584_s21 + $0x4c0] sm:%s8249_s4] %v3133_v14  ;;  %v3137_v50 = vld [vmem:[%s6834_s2 + $0x498] sm:%s8249_s4] }
 0x475   : > { %3136 = vst [vmem:[%s7584_s21 + $0x500] sm:%s8249_s4] %v3135_v49  ;;  %v3139_v24 = vld [vmem:[%s6834_s2 + $0x4d0] sm:%s8249_s4] }
 0x476   : > { %3138 = vst [vmem:[%s7584_s21 + $0x540] sm:%s8249_s4] %v3137_v50  ;;  %v3141_v53 = vld [vmem:[%s6834_s2 + $0x508] sm:%s8249_s4] }
 0x477   : > { %3140 = vst [vmem:[%s7584_s21 + $0x580] sm:%s8249_s4] %v3139_v24  ;;  %v3143_v13 = vld [vmem:[%s6834_s2 + $0x540] sm:%s8249_s4] }
 0x478   : > { %3142 = vst [vmem:[%s7584_s21 + $0x5c0] sm:%s8249_s4] %v3141_v53  ;;  %v3145_v48 = vld [vmem:[%s6834_s2 + $0x578] sm:%s8249_s4] }
 0x479   : > { %3144 = vst [vmem:[%s7584_s21 + $0x600] sm:%s8249_s4] %v3143_v13  ;;  %v3147_v29 = vld [vmem:[%s6834_s2 + $0x5b0] sm:%s8249_s4] }
 0x47a   : > { %3146 = vst [vmem:[%s7584_s21 + $0x640] sm:%s8249_s4] %v3145_v48 }
 0x47b   : > { %3148 = vst [vmem:[%s7584_s21 + $0x680] sm:%s8249_s4] %v3147_v29 }
 0x47c PF: > { %s15_s20 = sadd.s32 1, %s4729_s20   ;;  %s8509_s6 = sld [smem:[#allocation8_spill]] }
 0x47d   : > { %p12_p12 = scmp.ge.s32.totalorder %s15_s20, 6   ;;  %s8510_s27 = sld [smem:[#allocation9_spill]] }
 0x47e   : > { %s8511_s14 = smov %s4709_s15  ;;  %s8512_s15 = smov %s4962_s7 }
 0x47f   : > { %s8513_s16 = smov %s4721_s18  ;;  %s8514_s17 = smov %s4725_s19 }
 0x480   :  { %14 = sbr.rel (!%p12_p12) target bundleno = 8 (0x8), region = 328 }
 0x482   : > { %s8515_s18 = smov %s8509_s6 }
 0x483   : > { %s8516_s19 = smov %s8510_s27 }
 0x485   :  { %3645 = vsyncpa [#allocation4], 1 }
 0x486   :  { %3647 = vsyncpa [#allocation4 + $0x1], 1 }

</bundles_post_ra>
